<compile_context>
chip_gen: v6e
topology: v6e:2x2x1
jax: 0.10.0
libtpu: 0.0.40
codegen_flags: <defaults>
</compile_context>

<pallas_src>
import math
from functools import partial

import jax
import jax.numpy as jnp
from jax.experimental import pallas as pl
from jax.experimental.pallas import tpu as pltpu

D_MODEL = 64
N_HEADS = 4
HEAD_DIM = 16
FF_MULT = 4          # flash_attn FusedMLP default hidden = 4 * d_model (gelu tanh approx)
KERNEL_SIZE = 9      # conv_kernel_size (odd, 'same' padding)
LN_EPS = 1e-5
BN_EPS = 1e-5


# ----------------------------- kernel helpers -------------------------------
def _ln_core(x):
    """LayerNorm without affine (gamma/beta folded into the following matmul)."""
    mu = jnp.mean(x, axis=-1, keepdims=True)
    xc = x - mu
    var = jnp.mean(xc * xc, axis=-1, keepdims=True)
    return xc * jax.lax.rsqrt(var + LN_EPS)


def _gelu_tanh(x):
    c = math.sqrt(2.0 / math.pi)
    return 0.5 * x * (1.0 + jnp.tanh(c * (x + 0.044715 * x * x * x)))


# ------------------------------- the kernel ---------------------------------
def conformer_layer_kernel(
    x_ref,
    # ff1 (Scale(0.5, PreNorm(LN, FusedMLP))) -- LN affine folded into w1/b1
    w1, b1, w2, b2,
    # attention (PreNorm(LN, Attention)) -- LN affine folded; split q / kv projections
    wq, bq, wkv, bkv, wout,
    # conv (PreNorm(LN, ConformerConvolution)) -- LN folded into wp1*, BN folded into wdw/bdw
    wp1a, bp1a, wp1b, bp1b, wdw, bdw, wp2, bp2,
    # ff2 -- LN affine folded into w3/b3
    w3, b3, w4, b4,
    # norm_out (kept as a full LayerNorm; it IS the output)
    lno_g, lno_b,
    # outputs
    y_ref, kv_ref,
    # scratch
    hp_ref,
    *, batch, seq,
):
    B, N = batch, seq
    M, C = x_ref.shape          # M = B * N rows, channels-last
    H, D = N_HEADS, HEAD_DIM
    HD = H * D
    K = KERNEL_SIZE
    pad = (K - 1) // 2

    x = x_ref[...]              # (M, C) f32, whole batch in one tile

    def mm(a16, w_ref):
        return jnp.dot(a16, w_ref[...], preferred_element_type=jnp.float32)

    # ---------------- ff1: x = 0.5 * MLP(LN(x)) + x ----------------
    h = _gelu_tanh(mm(_ln_core(x).astype(jnp.bfloat16), w1) + b1[...])
    h = mm(h.astype(jnp.bfloat16), w2) + b2[...]
    x = 0.5 * h + x

    # ---------------- attention: x = out_proj(SDPA(qkv(LN(x)))) + x ----------------
    a16 = _ln_core(x).astype(jnp.bfloat16)
    q = mm(a16, wq) + bq[...]                        # (M, HD)
    kv = mm(a16, wkv) + bkv[...]                     # (M, 2HD), lane-dense [k | v]
    kv16 = kv.astype(jnp.bfloat16)
    # kv_to_cache (cached_kv is None -> cache is just this step's [k|v]), bf16 writeback
    kv_ref[...] = kv16

    q16 = q.astype(jnp.bfloat16)
    scale = 1.0 / math.sqrt(D)
    o_rows = []
    for b in range(B):                               # per-batch, per-head SDPA loops
        r0 = b * N
        o_heads = []
        for hi in range(H):
            c0 = hi * D
            qh = q16[r0:r0 + N, c0:c0 + D]
            kh = kv16[r0:r0 + N, c0:c0 + D]
            vh = kv16[r0:r0 + N, HD + c0:HD + c0 + D]
            s = jax.lax.dot_general(qh, kh, (((1,), (1,)), ((), ())),
                                    preferred_element_type=jnp.float32) * scale
            s = s - jnp.max(s, axis=-1, keepdims=True)
            p = jnp.exp(s)
            # approx reciprocal (EUP); revisit for tighter production numerics.
            p = p * pl.reciprocal(jnp.sum(p, axis=-1, keepdims=True), approx=True)
            o_heads.append(jnp.dot(p.astype(jnp.bfloat16), vh,
                                   preferred_element_type=jnp.float32))
        o_rows.append(jnp.concatenate(o_heads, axis=-1))      # (N, HD) '(h d)' packed
    o_all = jnp.concatenate(o_rows, axis=0)                    # (M, HD)
    x = mm(o_all.astype(jnp.bfloat16), wout) + x               # single out-proj matmul

    # -------- conv: PW1 -> GLU -> depthwise conv (BN folded) -> SiLU -> PW2, + x --------
    c16 = _ln_core(x).astype(jnp.bfloat16)           # cast once, feeds both GLU matmuls
    ha = mm(c16, wp1a) + bp1a[...]                   # GLU value half (M, C)
    hb = mm(c16, wp1b) + bp1b[...]                   # GLU gate  half (M, C)
    h = ha * jax.nn.sigmoid(hb)

    # zero 'same' padding via VMEM scratch; single grid step so fill once, no guard needed
    zpad = jnp.zeros((pad, C), jnp.float32)
    for b in range(B):
        hp_ref[b, 0:pad, :] = zpad
        hp_ref[b, pad + N:pad + N + pad, :] = zpad
        hp_ref[b, pad:pad + N, :] = h[b * N:(b + 1) * N, :]

    # TODO(synk): in the tiled production kernel replace these sublane-offset reads with
    #             register-resident pltpu.roll on the padded tile (XLU slot has slack).
    accs = [jnp.zeros((N, C), jnp.float32) for _ in range(B)]
    for kk in range(K):
        wk = wdw[kk:kk + 1, :]                       # (1, C) tap row, VPU-broadcast below
        for b in range(B):
            accs[b] = accs[b] + hp_ref[b, kk:kk + N, :] * wk
    acc = jnp.concatenate(accs, axis=0) + bdw[...]   # batch_renorm already folded
    acc = acc * jax.nn.sigmoid(acc)                  # Swish
    h = mm(acc.astype(jnp.bfloat16), wp2) + bp2[...]
    x = h + x

    # ---------------- ff2 ----------------
    h = _gelu_tanh(mm(_ln_core(x).astype(jnp.bfloat16), w3) + b3[...])
    h = mm(h.astype(jnp.bfloat16), w4) + b4[...]
    x = 0.5 * h + x

    # ---------------- norm_out ----------------
    mu = jnp.mean(x, axis=-1, keepdims=True)
    xc = x - mu
    var = jnp.mean(xc * xc, axis=-1, keepdims=True)
    y = xc * jax.lax.rsqrt(var + LN_EPS) * lno_g[...] + lno_b[...]     # (M, C)

    # lane-dense store: pack rows [0, M/2) into lanes [0, C) and rows [M/2, M) into
    # lanes [C, 2C) -> unmasked 128-wide vst instead of masked 64-wide partial stores.
    half = M // 2
    y_ref[...] = jnp.concatenate([y[:half, :], y[half:, :]], axis=1)


# ------------------------------ wrapper / glue -------------------------------
def conformer_layer(x, weights):
    B, N, C = x.shape
    HD = N_HEADS * HEAD_DIM
    pad = (KERNEL_SIZE - 1) // 2
    M = B * N
    assert C == D_MODEL and 2 * C == 128     # lane-dense y packing assumes d_model == 64
    assert M % 2 == 0 and N % 8 == 0

    x2 = x.reshape(M, C)                     # fold batch: whole problem in one grid step

    in_specs = [pl.BlockSpec((M, C), lambda i: (0, 0))]
    for w in weights:
        in_specs.append(pl.BlockSpec(w.shape, lambda i, _nd=w.ndim: (0,) * _nd))

    out_shape = (
        jax.ShapeDtypeStruct((M // 2, 2 * C), jnp.float32),   # lane-dense packed y
        jax.ShapeDtypeStruct((M, 2 * HD), jnp.bfloat16),      # lane-dense packed [k | v], bf16
    )
    out_specs = [
        pl.BlockSpec((M // 2, 2 * C), lambda i: (0, 0)),
        pl.BlockSpec((M, 2 * HD), lambda i: (0, 0)),
    ]

    kernel = partial(conformer_layer_kernel, batch=B, seq=N)
    y_packed, kv_packed = pl.pallas_call(
        kernel,
        out_shape=out_shape,
        grid_spec=pltpu.PrefetchScalarGridSpec(
            num_scalar_prefetch=0,
            grid=(1,),
            in_specs=in_specs,
            out_specs=out_specs,
            scratch_shapes=[pltpu.VMEM((B, N + 2 * pad, C), jnp.float32)],
        ),
        compiler_params=pltpu.CompilerParams(dimension_semantics=("arbitrary",)),
    )(x2, *weights)

    # unpack lane-dense y: rows [0, M/2) were in lanes [0, C), rows [M/2, M) in [C, 2C)
    y = jnp.concatenate([y_packed[:, :C], y_packed[:, C:]], axis=0).reshape(B, N, C)
    # (B, N, 2*H*D) packed [k '(h d)' | v '(h d)']  ==  torch.stack([k, v], dim=2), bf16
    kv_to_cache = kv_packed.reshape(B, N, 2, N_HEADS, HEAD_DIM)
    return y, kv_to_cache


# --------------------- deterministic parameter construction ------------------
def init_torch_params(key):
    """Parameters in PyTorch layout (Linear/Conv weight conventions)."""
    C, H, D, K = D_MODEL, N_HEADS, HEAD_DIM, KERNEL_SIZE
    HD, FF = H * D, FF_MULT * C
    ks = iter(jax.random.split(key, 40))

    def u(shape, s=0.05):
        return jax.random.uniform(next(ks), shape, jnp.float32, -s, s)

    p = {}
    p['ln1_g'] = 1.0 + u((C,)); p['ln1_b'] = u((C,))
    p['ff1_w1'] = u((FF, C));   p['ff1_b1'] = u((FF,))
    p['ff1_w2'] = u((C, FF));   p['ff1_b2'] = u((C,))
    p['lna_g'] = 1.0 + u((C,)); p['lna_b'] = u((C,))
    p['wqkv'] = u((3 * HD, C))          # nn.Linear(d, 3*h*d, bias=False); out packed '(h d qkv)'
    p['wout'] = u((C, HD))              # nn.Linear(h*d, d, bias=False)
    p['lnc_g'] = 1.0 + u((C,)); p['lnc_b'] = u((C,))
    p['wp1'] = u((2 * C, C, 1)); p['bp1'] = u((2 * C,))
    p['wdw'] = u((C, 1, K));     p['bdw'] = u((C,))
    p['bn_g'] = 1.0 + u((C,));   p['bn_b'] = u((C,))
    p['bn_m'] = jnp.zeros((C,), jnp.float32)
    p['bn_v'] = jnp.ones((C,), jnp.float32)
    p['wp2'] = u((C, C, 1));     p['bp2'] = u((C,))
    p['ln2_g'] = 1.0 + u((C,)); p['ln2_b'] = u((C,))
    p['ff2_w1'] = u((FF, C));   p['ff2_b1'] = u((FF,))
    p['ff2_w2'] = u((C, FF));   p['ff2_b2'] = u((C,))
    p['lno_g'] = 1.0 + u((C,)); p['lno_b'] = u((C,))
    return p


def to_kernel_params(p):
    """Torch layout -> kernel layout (channels-last bf16 matmul weights, LN/BN folded)."""
    C, H, D = D_MODEL, N_HEADS, HEAD_DIM
    HD = H * D
    f32, bf16 = jnp.float32, jnp.bfloat16
    row = lambda v: v.reshape(1, -1).astype(f32)

    def fold_ln(g, beta, w_k, bias=None):
        # LN(x) @ w_k + bias  ==  ln_core(x) @ (g[:,None]*w_k)  +  (beta @ w_k + bias)
        w_f = g[:, None] * w_k
        b_f = beta @ w_k
        if bias is not None:
            b_f = b_f + bias
        return w_f.astype(bf16), b_f.reshape(1, -1).astype(f32)

    # ff1
    w1, b1 = fold_ln(p['ln1_g'], p['ln1_b'], p['ff1_w1'].T, p['ff1_b1'])
    w2 = p['ff1_w2'].T.astype(bf16); b2 = row(p['ff1_b2'])

    # attention: qkv_proj output columns packed '(h d qkv)'; re-pack to [q | k | v] each '(h d)'
    wqkv_t = p['wqkv'].T                                                      # (C, 3HD)
    wqkv_k = wqkv_t.reshape(C, H, D, 3).transpose(0, 3, 1, 2).reshape(C, 3 * HD)
    wq, bq = fold_ln(p['lna_g'], p['lna_b'], wqkv_k[:, :HD])
    wkv, bkv = fold_ln(p['lna_g'], p['lna_b'], wqkv_k[:, HD:])
    wout = p['wout'].T.astype(bf16)                                           # (HD, C)

    # conv module: split PW1 into GLU value/gate halves, fold LN into both
    wp1_k = p['wp1'][:, :, 0].T                                               # (C, 2C)
    wp1a, bp1a = fold_ln(p['lnc_g'], p['lnc_b'], wp1_k[:, :C], p['bp1'][:C])
    wp1b, bp1b = fold_ln(p['lnc_g'], p['lnc_b'], wp1_k[:, C:], p['bp1'][C:])
    # fold batch_renorm (eval: running stats) into the depthwise conv
    s = p['bn_g'] / jnp.sqrt(p['bn_v'] + BN_EPS)                              # (C,)
    wdw = (p['wdw'][:, 0, :].T * s[None, :]).astype(f32)                      # (K, C)
    bdw = ((p['bdw'] - p['bn_m']) * s + p['bn_b']).reshape(1, -1).astype(f32)
    wp2 = p['wp2'][:, :, 0].T.astype(bf16); bp2 = row(p['bp2'])

    # ff2
    w3, b3 = fold_ln(p['ln2_g'], p['ln2_b'], p['ff2_w1'].T, p['ff2_b1'])
    w4 = p['ff2_w2'].T.astype(bf16); b4 = row(p['ff2_b2'])

    lno_g = row(p['lno_g']); lno_b = row(p['lno_b'])

    return [w1, b1, w2, b2,
            wq, bq, wkv, bkv, wout,
            wp1a, bp1a, wp1b, bp1b, wdw, bdw, wp2, bp2,
            w3, b3, w4, b4,
            lno_g, lno_b]


# ---------------------------- pure-JAX reference -----------------------------
def reference_forward(x, p):
    B, N, C = x.shape
    H, D, K = N_HEADS, HEAD_DIM, KERNEL_SIZE
    HD = H * D
    pad = (K - 1) // 2

    def ln(z, g, b):
        mu = z.mean(-1, keepdims=True)
        var = ((z - mu) ** 2).mean(-1, keepdims=True)
        return (z - mu) / jnp.sqrt(var + LN_EPS) * g + b

    def gelu(z):
        return 0.5 * z * (1.0 + jnp.tanh(math.sqrt(2.0 / math.pi) * (z + 0.044715 * z ** 3)))

    def mlp(z, w1, b1, w2, b2):
        return gelu(z @ w1.T + b1) @ w2.T + b2

    # ff1
    x = 0.5 * mlp(ln(x, p['ln1_g'], p['ln1_b']),
                  p['ff1_w1'], p['ff1_b1'], p['ff1_w2'], p['ff1_b2']) + x
    # attention
    a = ln(x, p['lna_g'], p['lna_b'])
    qkv = (a @ p['wqkv'].T).reshape(B, N, H, D, 3)        # '(h d qkv)' packing
    q, k, v = qkv[..., 0], qkv[..., 1], qkv[..., 2]       # (B, N, H, D)
    kv_cache = jnp.stack([k, v], axis=2)                  # (B, N, 2, H, D)
    s = jnp.einsum('bnhd,bmhd->bhnm', q, k) / math.sqrt(D)
    w = jax.nn.softmax(s, axis=-1)
    o = jnp.einsum('bhnm,bmhd->bnhd', w, v).reshape(B, N, HD)
    x = o @ p['wout'].T + x
    # conv module
    c = ln(x, p['lnc_g'], p['lnc_b'])
    h = c @ p['wp1'][:, :, 0].T + p['bp1']
    h = h[..., :C] * jax.nn.sigmoid(h[..., C:])
    hp = jnp.pad(h, ((0, 0), (pad, pad), (0, 0)))
    dw = p['wdw'][:, 0, :]                                # (C, K)
    acc = jnp.zeros_like(h)
    for kk in range(K):
        acc = acc + hp[:, kk:kk + N, :] * dw[:, kk]
    acc = acc + p['bdw']
    acc = (acc - p['bn_m']) / jnp.sqrt(p['bn_v'] + BN_EPS) * p['bn_g'] + p['bn_b']
    acc = acc * jax.nn.sigmoid(acc)
    x = acc @ p['wp2'][:, :, 0].T + p['bp2'] + x
    # ff2
    x = 0.5 * mlp(ln(x, p['ln2_g'], p['ln2_b']),
                  p['ff2_w1'], p['ff2_b1'], p['ff2_w2'], p['ff2_b2']) + x
    # norm_out
    x = ln(x, p['lno_g'], p['lno_b'])
    return x, kv_cache


# ----------------------------------- main ------------------------------------
if __name__ == "__main__":
    key = jax.random.PRNGKey(0)
    kx, kp_key = jax.random.split(key)
    B, N = 2, 16
    x = jax.random.normal(kx, (B, N, D_MODEL), jnp.float32)

    torch_params = init_torch_params(kp_key)
    kernel_weights = to_kernel_params(torch_params)

    y, kv = conformer_layer(x, kernel_weights)
    jax.block_until_ready((y, kv))

    y_ref, kv_ref = reference_forward(x, torch_params)

    assert y.shape == (B, N, D_MODEL)
    assert kv.shape == (B, N, 2, N_HEADS, HEAD_DIM)
    assert bool(jnp.all(jnp.isfinite(y))) and bool(jnp.all(jnp.isfinite(kv)))
    assert jnp.allclose(y, y_ref, atol=5e-2, rtol=5e-2)
    assert jnp.allclose(kv.astype(jnp.float32), kv_ref, atol=5e-2, rtol=5e-2)

    print("KERNEL_OK")
</pallas_src>

<mosaic_0001>
module attributes {stable_mosaic.version = 11 : i64} {
  func.func @conformer_layer_kernel(%arg0: i32, %arg1: memref<32x64xf32, #tpu.memory_space<vmem>>, %arg2: memref<64x256xbf16, #tpu.memory_space<vmem>>, %arg3: memref<1x256xf32, #tpu.memory_space<vmem>>, %arg4: memref<256x64xbf16, #tpu.memory_space<vmem>>, %arg5: memref<1x64xf32, #tpu.memory_space<vmem>>, %arg6: memref<64x64xbf16, #tpu.memory_space<vmem>>, %arg7: memref<1x64xf32, #tpu.memory_space<vmem>>, %arg8: memref<64x128xbf16, #tpu.memory_space<vmem>>, %arg9: memref<1x128xf32, #tpu.memory_space<vmem>>, %arg10: memref<64x64xbf16, #tpu.memory_space<vmem>>, %arg11: memref<64x64xbf16, #tpu.memory_space<vmem>>, %arg12: memref<1x64xf32, #tpu.memory_space<vmem>>, %arg13: memref<64x64xbf16, #tpu.memory_space<vmem>>, %arg14: memref<1x64xf32, #tpu.memory_space<vmem>>, %arg15: memref<9x64xf32, #tpu.memory_space<vmem>>, %arg16: memref<1x64xf32, #tpu.memory_space<vmem>>, %arg17: memref<64x64xbf16, #tpu.memory_space<vmem>>, %arg18: memref<1x64xf32, #tpu.memory_space<vmem>>, %arg19: memref<64x256xbf16, #tpu.memory_space<vmem>>, %arg20: memref<1x256xf32, #tpu.memory_space<vmem>>, %arg21: memref<256x64xbf16, #tpu.memory_space<vmem>>, %arg22: memref<1x64xf32, #tpu.memory_space<vmem>>, %arg23: memref<1x64xf32, #tpu.memory_space<vmem>>, %arg24: memref<1x64xf32, #tpu.memory_space<vmem>>, %arg25: memref<16x128xf32, #tpu.memory_space<vmem>>, %arg26: memref<32x128xbf16, #tpu.memory_space<vmem>>, %arg27: memref<2x24x64xf32, #tpu.memory_space<vmem>>) attributes {dimension_semantics = [#tpu.dimension_semantics<arbitrary>], iteration_bounds = array<i64: 1>, scalar_prefetch = 0 : i64, scratch_operands = 1 : i64, tpu.core_type = #tpu.core_type<tc>, window_params = [{pipeline_mode = #tpu.pipeline_mode<synchronous>, transform_indices = @transform_0, window_bounds = array<i64: 32, 64>}, {pipeline_mode = #tpu.pipeline_mode<synchronous>, transform_indices = @transform_1, window_bounds = array<i64: 64, 256>}, {pipeline_mode = #tpu.pipeline_mode<synchronous>, transform_indices = @transform_2, window_bounds = array<i64: 1, 256>}, {pipeline_mode = #tpu.pipeline_mode<synchronous>, transform_indices = @transform_3, window_bounds = array<i64: 256, 64>}, {pipeline_mode = #tpu.pipeline_mode<synchronous>, transform_indices = @transform_4, window_bounds = array<i64: 1, 64>}, {pipeline_mode = #tpu.pipeline_mode<synchronous>, transform_indices = @transform_5, window_bounds = array<i64: 64, 64>}, {pipeline_mode = #tpu.pipeline_mode<synchronous>, transform_indices = @transform_6, window_bounds = array<i64: 1, 64>}, {pipeline_mode = #tpu.pipeline_mode<synchronous>, transform_indices = @transform_7, window_bounds = array<i64: 64, 128>}, {pipeline_mode = #tpu.pipeline_mode<synchronous>, transform_indices = @transform_8, window_bounds = array<i64: 1, 128>}, {pipeline_mode = #tpu.pipeline_mode<synchronous>, transform_indices = @transform_9, window_bounds = array<i64: 64, 64>}, {pipeline_mode = #tpu.pipeline_mode<synchronous>, transform_indices = @transform_10, window_bounds = array<i64: 64, 64>}, {pipeline_mode = #tpu.pipeline_mode<synchronous>, transform_indices = @transform_11, window_bounds = array<i64: 1, 64>}, {pipeline_mode = #tpu.pipeline_mode<synchronous>, transform_indices = @transform_12, window_bounds = array<i64: 64, 64>}, {pipeline_mode = #tpu.pipeline_mode<synchronous>, transform_indices = @transform_13, window_bounds = array<i64: 1, 64>}, {pipeline_mode = #tpu.pipeline_mode<synchronous>, transform_indices = @transform_14, window_bounds = array<i64: 9, 64>}, {pipeline_mode = #tpu.pipeline_mode<synchronous>, transform_indices = @transform_15, window_bounds = array<i64: 1, 64>}, {pipeline_mode = #tpu.pipeline_mode<synchronous>, transform_indices = @transform_16, window_bounds = array<i64: 64, 64>}, {pipeline_mode = #tpu.pipeline_mode<synchronous>, transform_indices = @transform_17, window_bounds = array<i64: 1, 64>}, {pipeline_mode = #tpu.pipeline_mode<synchronous>, transform_indices = @transform_18, window_bounds = array<i64: 64, 256>}, {pipeline_mode = #tpu.pipeline_mode<synchronous>, transform_indices = @transform_19, window_bounds = array<i64: 1, 256>}, {pipeline_mode = #tpu.pipeline_mode<synchronous>, transform_indices = @transform_20, window_bounds = array<i64: 256, 64>}, {pipeline_mode = #tpu.pipeline_mode<synchronous>, transform_indices = @transform_21, window_bounds = array<i64: 1, 64>}, {pipeline_mode = #tpu.pipeline_mode<synchronous>, transform_indices = @transform_22, window_bounds = array<i64: 1, 64>}, {pipeline_mode = #tpu.pipeline_mode<synchronous>, transform_indices = @transform_23, window_bounds = array<i64: 1, 64>}, {pipeline_mode = #tpu.pipeline_mode<synchronous>, transform_indices = @transform_24, window_bounds = array<i64: 16, 128>}, {pipeline_mode = #tpu.pipeline_mode<synchronous>, transform_indices = @transform_25, window_bounds = array<i64: 32, 128>}]} {
    %c0 = arith.constant 0 : index
    %c0_0 = arith.constant 0 : index
    %0 = vector.load %arg1[%c0, %c0_0] : memref<32x64xf32, #tpu.memory_space<vmem>>, vector<32x64xf32>
    %cst = arith.constant dense<0.000000e+00> : vector<32xf32>
    %1 = vector.multi_reduction <add>, %0, %cst [1] : vector<32x64xf32> to vector<32xf32>
    %2 = vector.shape_cast %1 : vector<32xf32> to vector<32x1xf32>
    %cst_1 = arith.constant 6.400000e+01 : f32
    %3 = vector.broadcast %cst_1 : f32 to vector<32x1xf32>
    %4 = arith.divf %2, %3 : vector<32x1xf32>
    %5 = vector.broadcast %4 : vector<32x1xf32> to vector<32x64xf32>
    %6 = arith.subf %0, %5 : vector<32x64xf32>
    %7 = arith.mulf %6, %6 : vector<32x64xf32>
    %cst_2 = arith.constant dense<0.000000e+00> : vector<32xf32>
    %8 = vector.multi_reduction <add>, %7, %cst_2 [1] : vector<32x64xf32> to vector<32xf32>
    %9 = vector.shape_cast %8 : vector<32xf32> to vector<32x1xf32>
    %cst_3 = arith.constant 6.400000e+01 : f32
    %10 = vector.broadcast %cst_3 : f32 to vector<32x1xf32>
    %11 = arith.divf %9, %10 : vector<32x1xf32>
    %cst_4 = arith.constant 9.99999974E-6 : f32
    %12 = vector.broadcast %cst_4 : f32 to vector<32x1xf32>
    %13 = arith.addf %11, %12 : vector<32x1xf32>
    %14 = math.rsqrt %13 : vector<32x1xf32>
    %15 = vector.broadcast %14 : vector<32x1xf32> to vector<32x64xf32>
    %16 = arith.mulf %6, %15 : vector<32x64xf32>
    %17 = arith.truncf %16 : vector<32x64xf32> to vector<32x64xbf16>
    %c0_5 = arith.constant 0 : index
    %c0_6 = arith.constant 0 : index
    %18 = vector.load %arg2[%c0_5, %c0_6] : memref<64x256xbf16, #tpu.memory_space<vmem>>, vector<64x256xbf16>
    %cst_7 = arith.constant dense<0.000000e+00> : vector<32x256xf32>
    %19 = tpu.matmul %17, %18, %cst_7 {dimension_numbers = #tpu.dot_dimension_numbers<[1], [0], [0], [1], [0, 0, 1, 1], [], []>} : vector<32x64xbf16>, vector<64x256xbf16>, vector<32x256xf32> -> vector<32x256xf32>
    %c0_8 = arith.constant 0 : index
    %c0_9 = arith.constant 0 : index
    %20 = vector.load %arg3[%c0_8, %c0_9] : memref<1x256xf32, #tpu.memory_space<vmem>>, vector<1x256xf32>
    %21 = vector.broadcast %20 : vector<1x256xf32> to vector<32x256xf32>
    %22 = arith.addf %19, %21 : vector<32x256xf32>
    %cst_10 = arith.constant 5.000000e-01 : f32
    %23 = vector.broadcast %cst_10 : f32 to vector<32x256xf32>
    %24 = arith.mulf %23, %22 : vector<32x256xf32>
    %cst_11 = arith.constant 4.471500e-02 : f32
    %25 = vector.broadcast %cst_11 : f32 to vector<32x256xf32>
    %26 = arith.mulf %25, %22 : vector<32x256xf32>
    %27 = arith.mulf %26, %22 : vector<32x256xf32>
    %28 = arith.mulf %27, %22 : vector<32x256xf32>
    %29 = arith.addf %22, %28 : vector<32x256xf32>
    %cst_12 = arith.constant 0.797884583 : f32
    %30 = vector.broadcast %cst_12 : f32 to vector<32x256xf32>
    %31 = arith.mulf %30, %29 : vector<32x256xf32>
    %32 = math.tanh %31 : vector<32x256xf32>
    %cst_13 = arith.constant 1.000000e+00 : f32
    %33 = vector.broadcast %cst_13 : f32 to vector<32x256xf32>
    %34 = arith.addf %33, %32 : vector<32x256xf32>
    %35 = arith.mulf %24, %34 : vector<32x256xf32>
    %36 = arith.truncf %35 : vector<32x256xf32> to vector<32x256xbf16>
    %c0_14 = arith.constant 0 : index
    %c0_15 = arith.constant 0 : index
    %37 = vector.load %arg4[%c0_14, %c0_15] : memref<256x64xbf16, #tpu.memory_space<vmem>>, vector<256x64xbf16>
    %cst_16 = arith.constant dense<0.000000e+00> : vector<32x64xf32>
    %38 = tpu.matmul %36, %37, %cst_16 {dimension_numbers = #tpu.dot_dimension_numbers<[1], [0], [0], [1], [0, 0, 1, 1], [], []>} : vector<32x256xbf16>, vector<256x64xbf16>, vector<32x64xf32> -> vector<32x64xf32>
    %c0_17 = arith.constant 0 : index
    %c0_18 = arith.constant 0 : index
    %39 = vector.load %arg5[%c0_17, %c0_18] : memref<1x64xf32, #tpu.memory_space<vmem>>, vector<1x64xf32>
    %40 = vector.broadcast %39 : vector<1x64xf32> to vector<32x64xf32>
    %41 = arith.addf %38, %40 : vector<32x64xf32>
    %cst_19 = arith.constant 5.000000e-01 : f32
    %42 = vector.broadcast %cst_19 : f32 to vector<32x64xf32>
    %43 = arith.mulf %42, %41 : vector<32x64xf32>
    %44 = arith.addf %43, %0 : vector<32x64xf32>
    %cst_20 = arith.constant dense<0.000000e+00> : vector<32xf32>
    %45 = vector.multi_reduction <add>, %44, %cst_20 [1] : vector<32x64xf32> to vector<32xf32>
    %46 = vector.shape_cast %45 : vector<32xf32> to vector<32x1xf32>
    %cst_21 = arith.constant 6.400000e+01 : f32
    %47 = vector.broadcast %cst_21 : f32 to vector<32x1xf32>
    %48 = arith.divf %46, %47 : vector<32x1xf32>
    %49 = vector.broadcast %48 : vector<32x1xf32> to vector<32x64xf32>
    %50 = arith.subf %44, %49 : vector<32x64xf32>
    %51 = arith.mulf %50, %50 : vector<32x64xf32>
    %cst_22 = arith.constant dense<0.000000e+00> : vector<32xf32>
    %52 = vector.multi_reduction <add>, %51, %cst_22 [1] : vector<32x64xf32> to vector<32xf32>
    %53 = vector.shape_cast %52 : vector<32xf32> to vector<32x1xf32>
    %cst_23 = arith.constant 6.400000e+01 : f32
    %54 = vector.broadcast %cst_23 : f32 to vector<32x1xf32>
    %55 = arith.divf %53, %54 : vector<32x1xf32>
    %cst_24 = arith.constant 9.99999974E-6 : f32
    %56 = vector.broadcast %cst_24 : f32 to vector<32x1xf32>
    %57 = arith.addf %55, %56 : vector<32x1xf32>
    %58 = math.rsqrt %57 : vector<32x1xf32>
    %59 = vector.broadcast %58 : vector<32x1xf32> to vector<32x64xf32>
    %60 = arith.mulf %50, %59 : vector<32x64xf32>
    %61 = arith.truncf %60 : vector<32x64xf32> to vector<32x64xbf16>
    %c0_25 = arith.constant 0 : index
    %c0_26 = arith.constant 0 : index
    %62 = vector.load %arg6[%c0_25, %c0_26] : memref<64x64xbf16, #tpu.memory_space<vmem>>, vector<64x64xbf16>
    %cst_27 = arith.constant dense<0.000000e+00> : vector<32x64xf32>
    %63 = tpu.matmul %61, %62, %cst_27 {dimension_numbers = #tpu.dot_dimension_numbers<[1], [0], [0], [1], [0, 0, 1, 1], [], []>} : vector<32x64xbf16>, vector<64x64xbf16>, vector<32x64xf32> -> vector<32x64xf32>
    %c0_28 = arith.constant 0 : index
    %c0_29 = arith.constant 0 : index
    %64 = vector.load %arg7[%c0_28, %c0_29] : memref<1x64xf32, #tpu.memory_space<vmem>>, vector<1x64xf32>
    %65 = vector.broadcast %64 : vector<1x64xf32> to vector<32x64xf32>
    %66 = arith.addf %63, %65 : vector<32x64xf32>
    %c0_30 = arith.constant 0 : index
    %c0_31 = arith.constant 0 : index
    %67 = vector.load %arg8[%c0_30, %c0_31] : memref<64x128xbf16, #tpu.memory_space<vmem>>, vector<64x128xbf16>
    %cst_32 = arith.constant dense<0.000000e+00> : vector<32x128xf32>
    %68 = tpu.matmul %61, %67, %cst_32 {dimension_numbers = #tpu.dot_dimension_numbers<[1], [0], [0], [1], [0, 0, 1, 1], [], []>} : vector<32x64xbf16>, vector<64x128xbf16>, vector<32x128xf32> -> vector<32x128xf32>
    %c0_33 = arith.constant 0 : index
    %c0_34 = arith.constant 0 : index
    %69 = vector.load %arg9[%c0_33, %c0_34] : memref<1x128xf32, #tpu.memory_space<vmem>>, vector<1x128xf32>
    %70 = vector.broadcast %69 : vector<1x128xf32> to vector<32x128xf32>
    %71 = arith.addf %68, %70 : vector<32x128xf32>
    %72 = arith.truncf %71 : vector<32x128xf32> to vector<32x128xbf16>
    %c0_35 = arith.constant 0 : index
    %c0_36 = arith.constant 0 : index
    %73 = vector.load %arg26[%c0_35, %c0_36] : memref<32x128xbf16, #tpu.memory_space<vmem>>, vector<32x128xbf16>
    tpu.vector_store %arg26[%c0_35, %c0_36], %72 {strides = array<i32>} : memref<32x128xbf16, #tpu.memory_space<vmem>>, vector<32x128xbf16>,
    %74 = arith.truncf %66 : vector<32x64xf32> to vector<32x64xbf16>
    %75 = vector.extract_strided_slice %74 {offsets = [0, 0], sizes = [16, 16], strides = [1, 1]} : vector<32x64xbf16> to vector<16x16xbf16>
    %76 = vector.extract_strided_slice %72 {offsets = [0, 0], sizes = [16, 16], strides = [1, 1]} : vector<32x128xbf16> to vector<16x16xbf16>
    %77 = vector.extract_strided_slice %72 {offsets = [0, 64], sizes = [16, 16], strides = [1, 1]} : vector<32x128xbf16> to vector<16x16xbf16>
    %cst_37 = arith.constant dense<0.000000e+00> : vector<16x16xf32>
    %78 = tpu.matmul %75, %76, %cst_37 {dimension_numbers = #tpu.dot_dimension_numbers<[1], [1], [0], [0], [0, 0, 1, 0], [], []>} : vector<16x16xbf16>, vector<16x16xbf16>, vector<16x16xf32> -> vector<16x16xf32>
    %cst_38 = arith.constant 2.500000e-01 : f32
    %79 = vector.broadcast %cst_38 : f32 to vector<16x16xf32>
    %80 = arith.mulf %78, %79 : vector<16x16xf32>
    %cst_39 = arith.constant dense<0xFF800000> : vector<16xf32>
    %81 = vector.multi_reduction <maximumf>, %80, %cst_39 [1] : vector<16x16xf32> to vector<16xf32>
    %82 = vector.shape_cast %81 : vector<16xf32> to vector<16x1xf32>
    %83 = vector.broadcast %82 : vector<16x1xf32> to vector<16x16xf32>
    %84 = arith.subf %80, %83 : vector<16x16xf32>
    %85 = math.exp %84 : vector<16x16xf32>
    %cst_40 = arith.constant dense<0.000000e+00> : vector<16xf32>
    %86 = vector.multi_reduction <add>, %85, %cst_40 [1] : vector<16x16xf32> to vector<16xf32>
    %87 = vector.shape_cast %86 : vector<16xf32> to vector<16x1xf32>
    %88 = tpu.reciprocal %87 {approx = true} : vector<16x1xf32> -> vector<16x1xf32>
    %89 = vector.broadcast %88 : vector<16x1xf32> to vector<16x16xf32>
    %90 = arith.mulf %85, %89 : vector<16x16xf32>
    %91 = arith.truncf %90 : vector<16x16xf32> to vector<16x16xbf16>
    %cst_41 = arith.constant dense<0.000000e+00> : vector<16x16xf32>
    %92 = tpu.matmul %91, %77, %cst_41 {dimension_numbers = #tpu.dot_dimension_numbers<[1], [0], [0], [1], [0, 0, 1, 1], [], []>} : vector<16x16xbf16>, vector<16x16xbf16>, vector<16x16xf32> -> vector<16x16xf32>
    %93 = vector.extract_strided_slice %74 {offsets = [0, 16], sizes = [16, 16], strides = [1, 1]} : vector<32x64xbf16> to vector<16x16xbf16>
    %94 = vector.extract_strided_slice %72 {offsets = [0, 16], sizes = [16, 16], strides = [1, 1]} : vector<32x128xbf16> to vector<16x16xbf16>
    %95 = vector.extract_strided_slice %72 {offsets = [0, 80], sizes = [16, 16], strides = [1, 1]} : vector<32x128xbf16> to vector<16x16xbf16>
    %cst_42 = arith.constant dense<0.000000e+00> : vector<16x16xf32>
    %96 = tpu.matmul %93, %94, %cst_42 {dimension_numbers = #tpu.dot_dimension_numbers<[1], [1], [0], [0], [0, 0, 1, 0], [], []>} : vector<16x16xbf16>, vector<16x16xbf16>, vector<16x16xf32> -> vector<16x16xf32>
    %cst_43 = arith.constant 2.500000e-01 : f32
    %97 = vector.broadcast %cst_43 : f32 to vector<16x16xf32>
    %98 = arith.mulf %96, %97 : vector<16x16xf32>
    %cst_44 = arith.constant dense<0xFF800000> : vector<16xf32>
    %99 = vector.multi_reduction <maximumf>, %98, %cst_44 [1] : vector<16x16xf32> to vector<16xf32>
    %100 = vector.shape_cast %99 : vector<16xf32> to vector<16x1xf32>
    %101 = vector.broadcast %100 : vector<16x1xf32> to vector<16x16xf32>
    %102 = arith.subf %98, %101 : vector<16x16xf32>
    %103 = math.exp %102 : vector<16x16xf32>
    %cst_45 = arith.constant dense<0.000000e+00> : vector<16xf32>
    %104 = vector.multi_reduction <add>, %103, %cst_45 [1] : vector<16x16xf32> to vector<16xf32>
    %105 = vector.shape_cast %104 : vector<16xf32> to vector<16x1xf32>
    %106 = tpu.reciprocal %105 {approx = true} : vector<16x1xf32> -> vector<16x1xf32>
    %107 = vector.broadcast %106 : vector<16x1xf32> to vector<16x16xf32>
    %108 = arith.mulf %103, %107 : vector<16x16xf32>
    %109 = arith.truncf %108 : vector<16x16xf32> to vector<16x16xbf16>
    %cst_46 = arith.constant dense<0.000000e+00> : vector<16x16xf32>
    %110 = tpu.matmul %109, %95, %cst_46 {dimension_numbers = #tpu.dot_dimension_numbers<[1], [0], [0], [1], [0, 0, 1, 1], [], []>} : vector<16x16xbf16>, vector<16x16xbf16>, vector<16x16xf32> -> vector<16x16xf32>
    %111 = vector.extract_strided_slice %74 {offsets = [0, 32], sizes = [16, 16], strides = [1, 1]} : vector<32x64xbf16> to vector<16x16xbf16>
    %112 = vector.extract_strided_slice %72 {offsets = [0, 32], sizes = [16, 16], strides = [1, 1]} : vector<32x128xbf16> to vector<16x16xbf16>
    %113 = vector.extract_strided_slice %72 {offsets = [0, 96], sizes = [16, 16], strides = [1, 1]} : vector<32x128xbf16> to vector<16x16xbf16>
    %cst_47 = arith.constant dense<0.000000e+00> : vector<16x16xf32>
    %114 = tpu.matmul %111, %112, %cst_47 {dimension_numbers = #tpu.dot_dimension_numbers<[1], [1], [0], [0], [0, 0, 1, 0], [], []>} : vector<16x16xbf16>, vector<16x16xbf16>, vector<16x16xf32> -> vector<16x16xf32>
    %cst_48 = arith.constant 2.500000e-01 : f32
    %115 = vector.broadcast %cst_48 : f32 to vector<16x16xf32>
    %116 = arith.mulf %114, %115 : vector<16x16xf32>
    %cst_49 = arith.constant dense<0xFF800000> : vector<16xf32>
    %117 = vector.multi_reduction <maximumf>, %116, %cst_49 [1] : vector<16x16xf32> to vector<16xf32>
    %118 = vector.shape_cast %117 : vector<16xf32> to vector<16x1xf32>
    %119 = vector.broadcast %118 : vector<16x1xf32> to vector<16x16xf32>
    %120 = arith.subf %116, %119 : vector<16x16xf32>
    %121 = math.exp %120 : vector<16x16xf32>
    %cst_50 = arith.constant dense<0.000000e+00> : vector<16xf32>
    %122 = vector.multi_reduction <add>, %121, %cst_50 [1] : vector<16x16xf32> to vector<16xf32>
    %123 = vector.shape_cast %122 : vector<16xf32> to vector<16x1xf32>
    %124 = tpu.reciprocal %123 {approx = true} : vector<16x1xf32> -> vector<16x1xf32>
    %125 = vector.broadcast %124 : vector<16x1xf32> to vector<16x16xf32>
    %126 = arith.mulf %121, %125 : vector<16x16xf32>
    %127 = arith.truncf %126 : vector<16x16xf32> to vector<16x16xbf16>
    %cst_51 = arith.constant dense<0.000000e+00> : vector<16x16xf32>
    %128 = tpu.matmul %127, %113, %cst_51 {dimension_numbers = #tpu.dot_dimension_numbers<[1], [0], [0], [1], [0, 0, 1, 1], [], []>} : vector<16x16xbf16>, vector<16x16xbf16>, vector<16x16xf32> -> vector<16x16xf32>
    %129 = vector.extract_strided_slice %74 {offsets = [0, 48], sizes = [16, 16], strides = [1, 1]} : vector<32x64xbf16> to vector<16x16xbf16>
    %130 = vector.extract_strided_slice %72 {offsets = [0, 48], sizes = [16, 16], strides = [1, 1]} : vector<32x128xbf16> to vector<16x16xbf16>
    %131 = vector.extract_strided_slice %72 {offsets = [0, 112], sizes = [16, 16], strides = [1, 1]} : vector<32x128xbf16> to vector<16x16xbf16>
    %cst_52 = arith.constant dense<0.000000e+00> : vector<16x16xf32>
    %132 = tpu.matmul %129, %130, %cst_52 {dimension_numbers = #tpu.dot_dimension_numbers<[1], [1], [0], [0], [0, 0, 1, 0], [], []>} : vector<16x16xbf16>, vector<16x16xbf16>, vector<16x16xf32> -> vector<16x16xf32>
    %cst_53 = arith.constant 2.500000e-01 : f32
    %133 = vector.broadcast %cst_53 : f32 to vector<16x16xf32>
    %134 = arith.mulf %132, %133 : vector<16x16xf32>
    %cst_54 = arith.constant dense<0xFF800000> : vector<16xf32>
    %135 = vector.multi_reduction <maximumf>, %134, %cst_54 [1] : vector<16x16xf32> to vector<16xf32>
    %136 = vector.shape_cast %135 : vector<16xf32> to vector<16x1xf32>
    %137 = vector.broadcast %136 : vector<16x1xf32> to vector<16x16xf32>
    %138 = arith.subf %134, %137 : vector<16x16xf32>
    %139 = math.exp %138 : vector<16x16xf32>
    %cst_55 = arith.constant dense<0.000000e+00> : vector<16xf32>
    %140 = vector.multi_reduction <add>, %139, %cst_55 [1] : vector<16x16xf32> to vector<16xf32>
    %141 = vector.shape_cast %140 : vector<16xf32> to vector<16x1xf32>
    %142 = tpu.reciprocal %141 {approx = true} : vector<16x1xf32> -> vector<16x1xf32>
    %143 = vector.broadcast %142 : vector<16x1xf32> to vector<16x16xf32>
    %144 = arith.mulf %139, %143 : vector<16x16xf32>
    %145 = arith.truncf %144 : vector<16x16xf32> to vector<16x16xbf16>
    %cst_56 = arith.constant dense<0.000000e+00> : vector<16x16xf32>
    %146 = tpu.matmul %145, %131, %cst_56 {dimension_numbers = #tpu.dot_dimension_numbers<[1], [0], [0], [1], [0, 0, 1, 1], [], []>} : vector<16x16xbf16>, vector<16x16xbf16>, vector<16x16xf32> -> vector<16x16xf32>
    %147 = tpu.concatenate %92, %110, %128, %146 in 1 : vector<16x16xf32>, vector<16x16xf32>, vector<16x16xf32>, vector<16x16xf32> -> vector<16x64xf32>
    %148 = vector.extract_strided_slice %74 {offsets = [16, 0], sizes = [16, 16], strides = [1, 1]} : vector<32x64xbf16> to vector<16x16xbf16>
    %149 = vector.extract_strided_slice %72 {offsets = [16, 0], sizes = [16, 16], strides = [1, 1]} : vector<32x128xbf16> to vector<16x16xbf16>
    %150 = vector.extract_strided_slice %72 {offsets = [16, 64], sizes = [16, 16], strides = [1, 1]} : vector<32x128xbf16> to vector<16x16xbf16>
    %cst_57 = arith.constant dense<0.000000e+00> : vector<16x16xf32>
    %151 = tpu.matmul %148, %149, %cst_57 {dimension_numbers = #tpu.dot_dimension_numbers<[1], [1], [0], [0], [0, 0, 1, 0], [], []>} : vector<16x16xbf16>, vector<16x16xbf16>, vector<16x16xf32> -> vector<16x16xf32>
    %cst_58 = arith.constant 2.500000e-01 : f32
    %152 = vector.broadcast %cst_58 : f32 to vector<16x16xf32>
    %153 = arith.mulf %151, %152 : vector<16x16xf32>
    %cst_59 = arith.constant dense<0xFF800000> : vector<16xf32>
    %154 = vector.multi_reduction <maximumf>, %153, %cst_59 [1] : vector<16x16xf32> to vector<16xf32>
    %155 = vector.shape_cast %154 : vector<16xf32> to vector<16x1xf32>
    %156 = vector.broadcast %155 : vector<16x1xf32> to vector<16x16xf32>
    %157 = arith.subf %153, %156 : vector<16x16xf32>
    %158 = math.exp %157 : vector<16x16xf32>
    %cst_60 = arith.constant dense<0.000000e+00> : vector<16xf32>
    %159 = vector.multi_reduction <add>, %158, %cst_60 [1] : vector<16x16xf32> to vector<16xf32>
    %160 = vector.shape_cast %159 : vector<16xf32> to vector<16x1xf32>
    %161 = tpu.reciprocal %160 {approx = true} : vector<16x1xf32> -> vector<16x1xf32>
    %162 = vector.broadcast %161 : vector<16x1xf32> to vector<16x16xf32>
    %163 = arith.mulf %158, %162 : vector<16x16xf32>
    %164 = arith.truncf %163 : vector<16x16xf32> to vector<16x16xbf16>
    %cst_61 = arith.constant dense<0.000000e+00> : vector<16x16xf32>
    %165 = tpu.matmul %164, %150, %cst_61 {dimension_numbers = #tpu.dot_dimension_numbers<[1], [0], [0], [1], [0, 0, 1, 1], [], []>} : vector<16x16xbf16>, vector<16x16xbf16>, vector<16x16xf32> -> vector<16x16xf32>
    %166 = vector.extract_strided_slice %74 {offsets = [16, 16], sizes = [16, 16], strides = [1, 1]} : vector<32x64xbf16> to vector<16x16xbf16>
    %167 = vector.extract_strided_slice %72 {offsets = [16, 16], sizes = [16, 16], strides = [1, 1]} : vector<32x128xbf16> to vector<16x16xbf16>
    %168 = vector.extract_strided_slice %72 {offsets = [16, 80], sizes = [16, 16], strides = [1, 1]} : vector<32x128xbf16> to vector<16x16xbf16>
    %cst_62 = arith.constant dense<0.000000e+00> : vector<16x16xf32>
    %169 = tpu.matmul %166, %167, %cst_62 {dimension_numbers = #tpu.dot_dimension_numbers<[1], [1], [0], [0], [0, 0, 1, 0], [], []>} : vector<16x16xbf16>, vector<16x16xbf16>, vector<16x16xf32> -> vector<16x16xf32>
    %cst_63 = arith.constant 2.500000e-01 : f32
    %170 = vector.broadcast %cst_63 : f32 to vector<16x16xf32>
    %171 = arith.mulf %169, %170 : vector<16x16xf32>
    %cst_64 = arith.constant dense<0xFF800000> : vector<16xf32>
    %172 = vector.multi_reduction <maximumf>, %171, %cst_64 [1] : vector<16x16xf32> to vector<16xf32>
    %173 = vector.shape_cast %172 : vector<16xf32> to vector<16x1xf32>
    %174 = vector.broadcast %173 : vector<16x1xf32> to vector<16x16xf32>
    %175 = arith.subf %171, %174 : vector<16x16xf32>
    %176 = math.exp %175 : vector<16x16xf32>
    %cst_65 = arith.constant dense<0.000000e+00> : vector<16xf32>
    %177 = vector.multi_reduction <add>, %176, %cst_65 [1] : vector<16x16xf32> to vector<16xf32>
    %178 = vector.shape_cast %177 : vector<16xf32> to vector<16x1xf32>
    %179 = tpu.reciprocal %178 {approx = true} : vector<16x1xf32> -> vector<16x1xf32>
    %180 = vector.broadcast %179 : vector<16x1xf32> to vector<16x16xf32>
    %181 = arith.mulf %176, %180 : vector<16x16xf32>
    %182 = arith.truncf %181 : vector<16x16xf32> to vector<16x16xbf16>
    %cst_66 = arith.constant dense<0.000000e+00> : vector<16x16xf32>
    %183 = tpu.matmul %182, %168, %cst_66 {dimension_numbers = #tpu.dot_dimension_numbers<[1], [0], [0], [1], [0, 0, 1, 1], [], []>} : vector<16x16xbf16>, vector<16x16xbf16>, vector<16x16xf32> -> vector<16x16xf32>
    %184 = vector.extract_strided_slice %74 {offsets = [16, 32], sizes = [16, 16], strides = [1, 1]} : vector<32x64xbf16> to vector<16x16xbf16>
    %185 = vector.extract_strided_slice %72 {offsets = [16, 32], sizes = [16, 16], strides = [1, 1]} : vector<32x128xbf16> to vector<16x16xbf16>
    %186 = vector.extract_strided_slice %72 {offsets = [16, 96], sizes = [16, 16], strides = [1, 1]} : vector<32x128xbf16> to vector<16x16xbf16>
    %cst_67 = arith.constant dense<0.000000e+00> : vector<16x16xf32>
    %187 = tpu.matmul %184, %185, %cst_67 {dimension_numbers = #tpu.dot_dimension_numbers<[1], [1], [0], [0], [0, 0, 1, 0], [], []>} : vector<16x16xbf16>, vector<16x16xbf16>, vector<16x16xf32> -> vector<16x16xf32>
    %cst_68 = arith.constant 2.500000e-01 : f32
    %188 = vector.broadcast %cst_68 : f32 to vector<16x16xf32>
    %189 = arith.mulf %187, %188 : vector<16x16xf32>
    %cst_69 = arith.constant dense<0xFF800000> : vector<16xf32>
    %190 = vector.multi_reduction <maximumf>, %189, %cst_69 [1] : vector<16x16xf32> to vector<16xf32>
    %191 = vector.shape_cast %190 : vector<16xf32> to vector<16x1xf32>
    %192 = vector.broadcast %191 : vector<16x1xf32> to vector<16x16xf32>
    %193 = arith.subf %189, %192 : vector<16x16xf32>
    %194 = math.exp %193 : vector<16x16xf32>
    %cst_70 = arith.constant dense<0.000000e+00> : vector<16xf32>
    %195 = vector.multi_reduction <add>, %194, %cst_70 [1] : vector<16x16xf32> to vector<16xf32>
    %196 = vector.shape_cast %195 : vector<16xf32> to vector<16x1xf32>
    %197 = tpu.reciprocal %196 {approx = true} : vector<16x1xf32> -> vector<16x1xf32>
    %198 = vector.broadcast %197 : vector<16x1xf32> to vector<16x16xf32>
    %199 = arith.mulf %194, %198 : vector<16x16xf32>
    %200 = arith.truncf %199 : vector<16x16xf32> to vector<16x16xbf16>
    %cst_71 = arith.constant dense<0.000000e+00> : vector<16x16xf32>
    %201 = tpu.matmul %200, %186, %cst_71 {dimension_numbers = #tpu.dot_dimension_numbers<[1], [0], [0], [1], [0, 0, 1, 1], [], []>} : vector<16x16xbf16>, vector<16x16xbf16>, vector<16x16xf32> -> vector<16x16xf32>
    %202 = vector.extract_strided_slice %74 {offsets = [16, 48], sizes = [16, 16], strides = [1, 1]} : vector<32x64xbf16> to vector<16x16xbf16>
    %203 = vector.extract_strided_slice %72 {offsets = [16, 48], sizes = [16, 16], strides = [1, 1]} : vector<32x128xbf16> to vector<16x16xbf16>
    %204 = vector.extract_strided_slice %72 {offsets = [16, 112], sizes = [16, 16], strides = [1, 1]} : vector<32x128xbf16> to vector<16x16xbf16>
    %cst_72 = arith.constant dense<0.000000e+00> : vector<16x16xf32>
    %205 = tpu.matmul %202, %203, %cst_72 {dimension_numbers = #tpu.dot_dimension_numbers<[1], [1], [0], [0], [0, 0, 1, 0], [], []>} : vector<16x16xbf16>, vector<16x16xbf16>, vector<16x16xf32> -> vector<16x16xf32>
    %cst_73 = arith.constant 2.500000e-01 : f32
    %206 = vector.broadcast %cst_73 : f32 to vector<16x16xf32>
    %207 = arith.mulf %205, %206 : vector<16x16xf32>
    %cst_74 = arith.constant dense<0xFF800000> : vector<16xf32>
    %208 = vector.multi_reduction <maximumf>, %207, %cst_74 [1] : vector<16x16xf32> to vector<16xf32>
    %209 = vector.shape_cast %208 : vector<16xf32> to vector<16x1xf32>
    %210 = vector.broadcast %209 : vector<16x1xf32> to vector<16x16xf32>
    %211 = arith.subf %207, %210 : vector<16x16xf32>
    %212 = math.exp %211 : vector<16x16xf32>
    %cst_75 = arith.constant dense<0.000000e+00> : vector<16xf32>
    %213 = vector.multi_reduction <add>, %212, %cst_75 [1] : vector<16x16xf32> to vector<16xf32>
    %214 = vector.shape_cast %213 : vector<16xf32> to vector<16x1xf32>
    %215 = tpu.reciprocal %214 {approx = true} : vector<16x1xf32> -> vector<16x1xf32>
    %216 = vector.broadcast %215 : vector<16x1xf32> to vector<16x16xf32>
    %217 = arith.mulf %212, %216 : vector<16x16xf32>
    %218 = arith.truncf %217 : vector<16x16xf32> to vector<16x16xbf16>
    %cst_76 = arith.constant dense<0.000000e+00> : vector<16x16xf32>
    %219 = tpu.matmul %218, %204, %cst_76 {dimension_numbers = #tpu.dot_dimension_numbers<[1], [0], [0], [1], [0, 0, 1, 1], [], []>} : vector<16x16xbf16>, vector<16x16xbf16>, vector<16x16xf32> -> vector<16x16xf32>
    %220 = tpu.concatenate %165, %183, %201, %219 in 1 : vector<16x16xf32>, vector<16x16xf32>, vector<16x16xf32>, vector<16x16xf32> -> vector<16x64xf32>
    %221 = tpu.concatenate %147, %220 in 0 : vector<16x64xf32>, vector<16x64xf32> -> vector<32x64xf32>
    %222 = arith.truncf %221 : vector<32x64xf32> to vector<32x64xbf16>
    %c0_77 = arith.constant 0 : index
    %c0_78 = arith.constant 0 : index
    %223 = vector.load %arg10[%c0_77, %c0_78] : memref<64x64xbf16, #tpu.memory_space<vmem>>, vector<64x64xbf16>
    %cst_79 = arith.constant dense<0.000000e+00> : vector<32x64xf32>
    %224 = tpu.matmul %222, %223, %cst_79 {dimension_numbers = #tpu.dot_dimension_numbers<[1], [0], [0], [1], [0, 0, 1, 1], [], []>} : vector<32x64xbf16>, vector<64x64xbf16>, vector<32x64xf32> -> vector<32x64xf32>
    %225 = arith.addf %224, %44 : vector<32x64xf32>
    %cst_80 = arith.constant dense<0.000000e+00> : vector<32xf32>
    %226 = vector.multi_reduction <add>, %225, %cst_80 [1] : vector<32x64xf32> to vector<32xf32>
    %227 = vector.shape_cast %226 : vector<32xf32> to vector<32x1xf32>
    %cst_81 = arith.constant 6.400000e+01 : f32
    %228 = vector.broadcast %cst_81 : f32 to vector<32x1xf32>
    %229 = arith.divf %227, %228 : vector<32x1xf32>
    %230 = vector.broadcast %229 : vector<32x1xf32> to vector<32x64xf32>
    %231 = arith.subf %225, %230 : vector<32x64xf32>
    %232 = arith.mulf %231, %231 : vector<32x64xf32>
    %cst_82 = arith.constant dense<0.000000e+00> : vector<32xf32>
    %233 = vector.multi_reduction <add>, %232, %cst_82 [1] : vector<32x64xf32> to vector<32xf32>
    %234 = vector.shape_cast %233 : vector<32xf32> to vector<32x1xf32>
    %cst_83 = arith.constant 6.400000e+01 : f32
    %235 = vector.broadcast %cst_83 : f32 to vector<32x1xf32>
    %236 = arith.divf %234, %235 : vector<32x1xf32>
    %cst_84 = arith.constant 9.99999974E-6 : f32
    %237 = vector.broadcast %cst_84 : f32 to vector<32x1xf32>
    %238 = arith.addf %236, %237 : vector<32x1xf32>
    %239 = math.rsqrt %238 : vector<32x1xf32>
    %240 = vector.broadcast %239 : vector<32x1xf32> to vector<32x64xf32>
    %241 = arith.mulf %231, %240 : vector<32x64xf32>
    %242 = arith.truncf %241 : vector<32x64xf32> to vector<32x64xbf16>
    %c0_85 = arith.constant 0 : index
    %c0_86 = arith.constant 0 : index
    %243 = vector.load %arg11[%c0_85, %c0_86] : memref<64x64xbf16, #tpu.memory_space<vmem>>, vector<64x64xbf16>
    %cst_87 = arith.constant dense<0.000000e+00> : vector<32x64xf32>
    %244 = tpu.matmul %242, %243, %cst_87 {dimension_numbers = #tpu.dot_dimension_numbers<[1], [0], [0], [1], [0, 0, 1, 1], [], []>} : vector<32x64xbf16>, vector<64x64xbf16>, vector<32x64xf32> -> vector<32x64xf32>
    %c0_88 = arith.constant 0 : index
    %c0_89 = arith.constant 0 : index
    %245 = vector.load %arg12[%c0_88, %c0_89] : memref<1x64xf32, #tpu.memory_space<vmem>>, vector<1x64xf32>
    %246 = vector.broadcast %245 : vector<1x64xf32> to vector<32x64xf32>
    %247 = arith.addf %244, %246 : vector<32x64xf32>
    %c0_90 = arith.constant 0 : index
    %c0_91 = arith.constant 0 : index
    %248 = vector.load %arg13[%c0_90, %c0_91] : memref<64x64xbf16, #tpu.memory_space<vmem>>, vector<64x64xbf16>
    %cst_92 = arith.constant dense<0.000000e+00> : vector<32x64xf32>
    %249 = tpu.matmul %242, %248, %cst_92 {dimension_numbers = #tpu.dot_dimension_numbers<[1], [0], [0], [1], [0, 0, 1, 1], [], []>} : vector<32x64xbf16>, vector<64x64xbf16>, vector<32x64xf32> -> vector<32x64xf32>
    %c0_93 = arith.constant 0 : index
    %c0_94 = arith.constant 0 : index
    %250 = vector.load %arg14[%c0_93, %c0_94] : memref<1x64xf32, #tpu.memory_space<vmem>>, vector<1x64xf32>
    %251 = vector.broadcast %250 : vector<1x64xf32> to vector<32x64xf32>
    %252 = arith.addf %249, %251 : vector<32x64xf32>
    %253 = arith.negf %252 : vector<32x64xf32>
    %254 = math.exp %253 : vector<32x64xf32>
    %cst_95 = arith.constant 1.000000e+00 : f32
    %255 = vector.broadcast %cst_95 : f32 to vector<32x64xf32>
    %256 = arith.addf %255, %254 : vector<32x64xf32>
    %257 = arith.divf %255, %256 : vector<32x64xf32>
    %258 = arith.mulf %247, %257 : vector<32x64xf32>
    %cst_96 = arith.constant 0.000000e+00 : f32
    %259 = vector.broadcast %cst_96 : f32 to vector<4x64xf32>
    %c0_97 = arith.constant 0 : index
    %c0_98 = arith.constant 0 : index
    %c0_99 = arith.constant 0 : index
    %260 = vector.load %arg27[%c0_97, %c0_98, %c0_99] : memref<2x24x64xf32, #tpu.memory_space<vmem>>, vector<1x4x64xf32>
    %261 = vector.shape_cast %260 : vector<1x4x64xf32> to vector<4x64xf32>
    %262 = vector.shape_cast %259 : vector<4x64xf32> to vector<1x4x64xf32>
    tpu.vector_store %arg27[%c0_97, %c0_98, %c0_99], %262 {strides = array<i32>} : memref<2x24x64xf32, #tpu.memory_space<vmem>>, vector<1x4x64xf32>,
    %c0_100 = arith.constant 0 : index
    %c20 = arith.constant 20 : index
    %c0_101 = arith.constant 0 : index
    %263 = vector.load %arg27[%c0_100, %c20, %c0_101] : memref<2x24x64xf32, #tpu.memory_space<vmem>>, vector<1x4x64xf32>
    %264 = vector.shape_cast %263 : vector<1x4x64xf32> to vector<4x64xf32>
    %265 = vector.shape_cast %259 : vector<4x64xf32> to vector<1x4x64xf32>
    tpu.vector_store %arg27[%c0_100, %c20, %c0_101], %265 {strides = array<i32>} : memref<2x24x64xf32, #tpu.memory_space<vmem>>, vector<1x4x64xf32>,
    %266 = vector.extract_strided_slice %258 {offsets = [0, 0], sizes = [16, 64], strides = [1, 1]} : vector<32x64xf32> to vector<16x64xf32>
    %c0_102 = arith.constant 0 : index
    %c4 = arith.constant 4 : index
    %c0_103 = arith.constant 0 : index
    %267 = vector.load %arg27[%c0_102, %c4, %c0_103] : memref<2x24x64xf32, #tpu.memory_space<vmem>>, vector<1x16x64xf32>
    %268 = vector.shape_cast %267 : vector<1x16x64xf32> to vector<16x64xf32>
    %269 = vector.shape_cast %266 : vector<16x64xf32> to vector<1x16x64xf32>
    tpu.vector_store %arg27[%c0_102, %c4, %c0_103], %269 {strides = array<i32>} : memref<2x24x64xf32, #tpu.memory_space<vmem>>, vector<1x16x64xf32>,
    %c1 = arith.constant 1 : index
    %c0_104 = arith.constant 0 : index
    %c0_105 = arith.constant 0 : index
    %270 = vector.load %arg27[%c1, %c0_104, %c0_105] : memref<2x24x64xf32, #tpu.memory_space<vmem>>, vector<1x4x64xf32>
    %271 = vector.shape_cast %270 : vector<1x4x64xf32> to vector<4x64xf32>
    %272 = vector.shape_cast %259 : vector<4x64xf32> to vector<1x4x64xf32>
    tpu.vector_store %arg27[%c1, %c0_104, %c0_105], %272 {strides = array<i32>} : memref<2x24x64xf32, #tpu.memory_space<vmem>>, vector<1x4x64xf32>,
    %c1_106 = arith.constant 1 : index
    %c20_107 = arith.constant 20 : index
    %c0_108 = arith.constant 0 : index
    %273 = vector.load %arg27[%c1_106, %c20_107, %c0_108] : memref<2x24x64xf32, #tpu.memory_space<vmem>>, vector<1x4x64xf32>
    %274 = vector.shape_cast %273 : vector<1x4x64xf32> to vector<4x64xf32>
    %275 = vector.shape_cast %259 : vector<4x64xf32> to vector<1x4x64xf32>
    tpu.vector_store %arg27[%c1_106, %c20_107, %c0_108], %275 {strides = array<i32>} : memref<2x24x64xf32, #tpu.memory_space<vmem>>, vector<1x4x64xf32>,
    %276 = vector.extract_strided_slice %258 {offsets = [16, 0], sizes = [16, 64], strides = [1, 1]} : vector<32x64xf32> to vector<16x64xf32>
    %c1_109 = arith.constant 1 : index
    %c4_110 = arith.constant 4 : index
    %c0_111 = arith.constant 0 : index
    %277 = vector.load %arg27[%c1_109, %c4_110, %c0_111] : memref<2x24x64xf32, #tpu.memory_space<vmem>>, vector<1x16x64xf32>
    %278 = vector.shape_cast %277 : vector<1x16x64xf32> to vector<16x64xf32>
    %279 = vector.shape_cast %276 : vector<16x64xf32> to vector<1x16x64xf32>
    tpu.vector_store %arg27[%c1_109, %c4_110, %c0_111], %279 {strides = array<i32>} : memref<2x24x64xf32, #tpu.memory_space<vmem>>, vector<1x16x64xf32>,
    %cst_112 = arith.constant 0.000000e+00 : f32
    %280 = vector.broadcast %cst_112 : f32 to vector<16x64xf32>
    %cst_113 = arith.constant 0.000000e+00 : f32
    %281 = vector.broadcast %cst_113 : f32 to vector<16x64xf32>
    %c0_114 = arith.constant 0 : index
    %c0_115 = arith.constant 0 : index
    %282 = vector.load %arg15[%c0_114, %c0_115] : memref<9x64xf32, #tpu.memory_space<vmem>>, vector<1x64xf32>
    %c0_116 = arith.constant 0 : index
    %c0_117 = arith.constant 0 : index
    %c0_118 = arith.constant 0 : index
    %283 = vector.load %arg27[%c0_116, %c0_117, %c0_118] : memref<2x24x64xf32, #tpu.memory_space<vmem>>, vector<1x16x64xf32>
    %284 = vector.shape_cast %283 : vector<1x16x64xf32> to vector<16x64xf32>
    %285 = vector.broadcast %282 : vector<1x64xf32> to vector<16x64xf32>
    %286 = arith.mulf %284, %285 : vector<16x64xf32>
    %287 = arith.addf %280, %286 : vector<16x64xf32>
    %c1_119 = arith.constant 1 : index
    %c0_120 = arith.constant 0 : index
    %c0_121 = arith.constant 0 : index
    %288 = vector.load %arg27[%c1_119, %c0_120, %c0_121] : memref<2x24x64xf32, #tpu.memory_space<vmem>>, vector<1x16x64xf32>
    %289 = vector.shape_cast %288 : vector<1x16x64xf32> to vector<16x64xf32>
    %290 = vector.broadcast %282 : vector<1x64xf32> to vector<16x64xf32>
    %291 = arith.mulf %289, %290 : vector<16x64xf32>
    %292 = arith.addf %281, %291 : vector<16x64xf32>
    %c1_122 = arith.constant 1 : index
    %c0_123 = arith.constant 0 : index
    %293 = vector.load %arg15[%c1_122, %c0_123] : memref<9x64xf32, #tpu.memory_space<vmem>>, vector<1x64xf32>
    %c0_124 = arith.constant 0 : index
    %c1_125 = arith.constant 1 : index
    %c0_126 = arith.constant 0 : index
    %294 = vector.load %arg27[%c0_124, %c1_125, %c0_126] : memref<2x24x64xf32, #tpu.memory_space<vmem>>, vector<1x16x64xf32>
    %295 = vector.shape_cast %294 : vector<1x16x64xf32> to vector<16x64xf32>
    %296 = vector.broadcast %293 : vector<1x64xf32> to vector<16x64xf32>
    %297 = arith.mulf %295, %296 : vector<16x64xf32>
    %298 = arith.addf %287, %297 : vector<16x64xf32>
    %c1_127 = arith.constant 1 : index
    %c1_128 = arith.constant 1 : index
    %c0_129 = arith.constant 0 : index
    %299 = vector.load %arg27[%c1_127, %c1_128, %c0_129] : memref<2x24x64xf32, #tpu.memory_space<vmem>>, vector<1x16x64xf32>
    %300 = vector.shape_cast %299 : vector<1x16x64xf32> to vector<16x64xf32>
    %301 = vector.broadcast %293 : vector<1x64xf32> to vector<16x64xf32>
    %302 = arith.mulf %300, %301 : vector<16x64xf32>
    %303 = arith.addf %292, %302 : vector<16x64xf32>
    %c2 = arith.constant 2 : index
    %c0_130 = arith.constant 0 : index
    %304 = vector.load %arg15[%c2, %c0_130] : memref<9x64xf32, #tpu.memory_space<vmem>>, vector<1x64xf32>
    %c0_131 = arith.constant 0 : index
    %c2_132 = arith.constant 2 : index
    %c0_133 = arith.constant 0 : index
    %305 = vector.load %arg27[%c0_131, %c2_132, %c0_133] : memref<2x24x64xf32, #tpu.memory_space<vmem>>, vector<1x16x64xf32>
    %306 = vector.shape_cast %305 : vector<1x16x64xf32> to vector<16x64xf32>
    %307 = vector.broadcast %304 : vector<1x64xf32> to vector<16x64xf32>
    %308 = arith.mulf %306, %307 : vector<16x64xf32>
    %309 = arith.addf %298, %308 : vector<16x64xf32>
    %c1_134 = arith.constant 1 : index
    %c2_135 = arith.constant 2 : index
    %c0_136 = arith.constant 0 : index
    %310 = vector.load %arg27[%c1_134, %c2_135, %c0_136] : memref<2x24x64xf32, #tpu.memory_space<vmem>>, vector<1x16x64xf32>
    %311 = vector.shape_cast %310 : vector<1x16x64xf32> to vector<16x64xf32>
    %312 = vector.broadcast %304 : vector<1x64xf32> to vector<16x64xf32>
    %313 = arith.mulf %311, %312 : vector<16x64xf32>
    %314 = arith.addf %303, %313 : vector<16x64xf32>
    %c3 = arith.constant 3 : index
    %c0_137 = arith.constant 0 : index
    %315 = vector.load %arg15[%c3, %c0_137] : memref<9x64xf32, #tpu.memory_space<vmem>>, vector<1x64xf32>
    %c0_138 = arith.constant 0 : index
    %c3_139 = arith.constant 3 : index
    %c0_140 = arith.constant 0 : index
    %316 = vector.load %arg27[%c0_138, %c3_139, %c0_140] : memref<2x24x64xf32, #tpu.memory_space<vmem>>, vector<1x16x64xf32>
    %317 = vector.shape_cast %316 : vector<1x16x64xf32> to vector<16x64xf32>
    %318 = vector.broadcast %315 : vector<1x64xf32> to vector<16x64xf32>
    %319 = arith.mulf %317, %318 : vector<16x64xf32>
    %320 = arith.addf %309, %319 : vector<16x64xf32>
    %c1_141 = arith.constant 1 : index
    %c3_142 = arith.constant 3 : index
    %c0_143 = arith.constant 0 : index
    %321 = vector.load %arg27[%c1_141, %c3_142, %c0_143] : memref<2x24x64xf32, #tpu.memory_space<vmem>>, vector<1x16x64xf32>
    %322 = vector.shape_cast %321 : vector<1x16x64xf32> to vector<16x64xf32>
    %323 = vector.broadcast %315 : vector<1x64xf32> to vector<16x64xf32>
    %324 = arith.mulf %322, %323 : vector<16x64xf32>
    %325 = arith.addf %314, %324 : vector<16x64xf32>
    %c4_144 = arith.constant 4 : index
    %c0_145 = arith.constant 0 : index
    %326 = vector.load %arg15[%c4_144, %c0_145] : memref<9x64xf32, #tpu.memory_space<vmem>>, vector<1x64xf32>
    %c0_146 = arith.constant 0 : index
    %c4_147 = arith.constant 4 : index
    %c0_148 = arith.constant 0 : index
    %327 = vector.load %arg27[%c0_146, %c4_147, %c0_148] : memref<2x24x64xf32, #tpu.memory_space<vmem>>, vector<1x16x64xf32>
    %328 = vector.shape_cast %327 : vector<1x16x64xf32> to vector<16x64xf32>
    %329 = vector.broadcast %326 : vector<1x64xf32> to vector<16x64xf32>
    %330 = arith.mulf %328, %329 : vector<16x64xf32>
    %331 = arith.addf %320, %330 : vector<16x64xf32>
    %c1_149 = arith.constant 1 : index
    %c4_150 = arith.constant 4 : index
    %c0_151 = arith.constant 0 : index
    %332 = vector.load %arg27[%c1_149, %c4_150, %c0_151] : memref<2x24x64xf32, #tpu.memory_space<vmem>>, vector<1x16x64xf32>
    %333 = vector.shape_cast %332 : vector<1x16x64xf32> to vector<16x64xf32>
    %334 = vector.broadcast %326 : vector<1x64xf32> to vector<16x64xf32>
    %335 = arith.mulf %333, %334 : vector<16x64xf32>
    %336 = arith.addf %325, %335 : vector<16x64xf32>
    %c5 = arith.constant 5 : index
    %c0_152 = arith.constant 0 : index
    %337 = vector.load %arg15[%c5, %c0_152] : memref<9x64xf32, #tpu.memory_space<vmem>>, vector<1x64xf32>
    %c0_153 = arith.constant 0 : index
    %c5_154 = arith.constant 5 : index
    %c0_155 = arith.constant 0 : index
    %338 = vector.load %arg27[%c0_153, %c5_154, %c0_155] : memref<2x24x64xf32, #tpu.memory_space<vmem>>, vector<1x16x64xf32>
    %339 = vector.shape_cast %338 : vector<1x16x64xf32> to vector<16x64xf32>
    %340 = vector.broadcast %337 : vector<1x64xf32> to vector<16x64xf32>
    %341 = arith.mulf %339, %340 : vector<16x64xf32>
    %342 = arith.addf %331, %341 : vector<16x64xf32>
    %c1_156 = arith.constant 1 : index
    %c5_157 = arith.constant 5 : index
    %c0_158 = arith.constant 0 : index
    %343 = vector.load %arg27[%c1_156, %c5_157, %c0_158] : memref<2x24x64xf32, #tpu.memory_space<vmem>>, vector<1x16x64xf32>
    %344 = vector.shape_cast %343 : vector<1x16x64xf32> to vector<16x64xf32>
    %345 = vector.broadcast %337 : vector<1x64xf32> to vector<16x64xf32>
    %346 = arith.mulf %344, %345 : vector<16x64xf32>
    %347 = arith.addf %336, %346 : vector<16x64xf32>
    %c6 = arith.constant 6 : index
    %c0_159 = arith.constant 0 : index
    %348 = vector.load %arg15[%c6, %c0_159] : memref<9x64xf32, #tpu.memory_space<vmem>>, vector<1x64xf32>
    %c0_160 = arith.constant 0 : index
    %c6_161 = arith.constant 6 : index
    %c0_162 = arith.constant 0 : index
    %349 = vector.load %arg27[%c0_160, %c6_161, %c0_162] : memref<2x24x64xf32, #tpu.memory_space<vmem>>, vector<1x16x64xf32>
    %350 = vector.shape_cast %349 : vector<1x16x64xf32> to vector<16x64xf32>
    %351 = vector.broadcast %348 : vector<1x64xf32> to vector<16x64xf32>
    %352 = arith.mulf %350, %351 : vector<16x64xf32>
    %353 = arith.addf %342, %352 : vector<16x64xf32>
    %c1_163 = arith.constant 1 : index
    %c6_164 = arith.constant 6 : index
    %c0_165 = arith.constant 0 : index
    %354 = vector.load %arg27[%c1_163, %c6_164, %c0_165] : memref<2x24x64xf32, #tpu.memory_space<vmem>>, vector<1x16x64xf32>
    %355 = vector.shape_cast %354 : vector<1x16x64xf32> to vector<16x64xf32>
    %356 = vector.broadcast %348 : vector<1x64xf32> to vector<16x64xf32>
    %357 = arith.mulf %355, %356 : vector<16x64xf32>
    %358 = arith.addf %347, %357 : vector<16x64xf32>
    %c7 = arith.constant 7 : index
    %c0_166 = arith.constant 0 : index
    %359 = vector.load %arg15[%c7, %c0_166] : memref<9x64xf32, #tpu.memory_space<vmem>>, vector<1x64xf32>
    %c0_167 = arith.constant 0 : index
    %c7_168 = arith.constant 7 : index
    %c0_169 = arith.constant 0 : index
    %360 = vector.load %arg27[%c0_167, %c7_168, %c0_169] : memref<2x24x64xf32, #tpu.memory_space<vmem>>, vector<1x16x64xf32>
    %361 = vector.shape_cast %360 : vector<1x16x64xf32> to vector<16x64xf32>
    %362 = vector.broadcast %359 : vector<1x64xf32> to vector<16x64xf32>
    %363 = arith.mulf %361, %362 : vector<16x64xf32>
    %364 = arith.addf %353, %363 : vector<16x64xf32>
    %c1_170 = arith.constant 1 : index
    %c7_171 = arith.constant 7 : index
    %c0_172 = arith.constant 0 : index
    %365 = vector.load %arg27[%c1_170, %c7_171, %c0_172] : memref<2x24x64xf32, #tpu.memory_space<vmem>>, vector<1x16x64xf32>
    %366 = vector.shape_cast %365 : vector<1x16x64xf32> to vector<16x64xf32>
    %367 = vector.broadcast %359 : vector<1x64xf32> to vector<16x64xf32>
    %368 = arith.mulf %366, %367 : vector<16x64xf32>
    %369 = arith.addf %358, %368 : vector<16x64xf32>
    %c8 = arith.constant 8 : index
    %c0_173 = arith.constant 0 : index
    %370 = vector.load %arg15[%c8, %c0_173] : memref<9x64xf32, #tpu.memory_space<vmem>>, vector<1x64xf32>
    %c0_174 = arith.constant 0 : index
    %c8_175 = arith.constant 8 : index
    %c0_176 = arith.constant 0 : index
    %371 = vector.load %arg27[%c0_174, %c8_175, %c0_176] : memref<2x24x64xf32, #tpu.memory_space<vmem>>, vector<1x16x64xf32>
    %372 = vector.shape_cast %371 : vector<1x16x64xf32> to vector<16x64xf32>
    %373 = vector.broadcast %370 : vector<1x64xf32> to vector<16x64xf32>
    %374 = arith.mulf %372, %373 : vector<16x64xf32>
    %375 = arith.addf %364, %374 : vector<16x64xf32>
    %c1_177 = arith.constant 1 : index
    %c8_178 = arith.constant 8 : index
    %c0_179 = arith.constant 0 : index
    %376 = vector.load %arg27[%c1_177, %c8_178, %c0_179] : memref<2x24x64xf32, #tpu.memory_space<vmem>>, vector<1x16x64xf32>
    %377 = vector.shape_cast %376 : vector<1x16x64xf32> to vector<16x64xf32>
    %378 = vector.broadcast %370 : vector<1x64xf32> to vector<16x64xf32>
    %379 = arith.mulf %377, %378 : vector<16x64xf32>
    %380 = arith.addf %369, %379 : vector<16x64xf32>
    %381 = tpu.concatenate %375, %380 in 0 : vector<16x64xf32>, vector<16x64xf32> -> vector<32x64xf32>
    %c0_180 = arith.constant 0 : index
    %c0_181 = arith.constant 0 : index
    %382 = vector.load %arg16[%c0_180, %c0_181] : memref<1x64xf32, #tpu.memory_space<vmem>>, vector<1x64xf32>
    %383 = vector.broadcast %382 : vector<1x64xf32> to vector<32x64xf32>
    %384 = arith.addf %381, %383 : vector<32x64xf32>
    %385 = arith.negf %384 : vector<32x64xf32>
    %386 = math.exp %385 : vector<32x64xf32>
    %cst_182 = arith.constant 1.000000e+00 : f32
    %387 = vector.broadcast %cst_182 : f32 to vector<32x64xf32>
    %388 = arith.addf %387, %386 : vector<32x64xf32>
    %389 = arith.divf %387, %388 : vector<32x64xf32>
    %390 = arith.mulf %384, %389 : vector<32x64xf32>
    %391 = arith.truncf %390 : vector<32x64xf32> to vector<32x64xbf16>
    %c0_183 = arith.constant 0 : index
    %c0_184 = arith.constant 0 : index
    %392 = vector.load %arg17[%c0_183, %c0_184] : memref<64x64xbf16, #tpu.memory_space<vmem>>, vector<64x64xbf16>
    %cst_185 = arith.constant dense<0.000000e+00> : vector<32x64xf32>
    %393 = tpu.matmul %391, %392, %cst_185 {dimension_numbers = #tpu.dot_dimension_numbers<[1], [0], [0], [1], [0, 0, 1, 1], [], []>} : vector<32x64xbf16>, vector<64x64xbf16>, vector<32x64xf32> -> vector<32x64xf32>
    %c0_186 = arith.constant 0 : index
    %c0_187 = arith.constant 0 : index
    %394 = vector.load %arg18[%c0_186, %c0_187] : memref<1x64xf32, #tpu.memory_space<vmem>>, vector<1x64xf32>
    %395 = vector.broadcast %394 : vector<1x64xf32> to vector<32x64xf32>
    %396 = arith.addf %393, %395 : vector<32x64xf32>
    %397 = arith.addf %396, %225 : vector<32x64xf32>
    %cst_188 = arith.constant dense<0.000000e+00> : vector<32xf32>
    %398 = vector.multi_reduction <add>, %397, %cst_188 [1] : vector<32x64xf32> to vector<32xf32>
    %399 = vector.shape_cast %398 : vector<32xf32> to vector<32x1xf32>
    %cst_189 = arith.constant 6.400000e+01 : f32
    %400 = vector.broadcast %cst_189 : f32 to vector<32x1xf32>
    %401 = arith.divf %399, %400 : vector<32x1xf32>
    %402 = vector.broadcast %401 : vector<32x1xf32> to vector<32x64xf32>
    %403 = arith.subf %397, %402 : vector<32x64xf32>
    %404 = arith.mulf %403, %403 : vector<32x64xf32>
    %cst_190 = arith.constant dense<0.000000e+00> : vector<32xf32>
    %405 = vector.multi_reduction <add>, %404, %cst_190 [1] : vector<32x64xf32> to vector<32xf32>
    %406 = vector.shape_cast %405 : vector<32xf32> to vector<32x1xf32>
    %cst_191 = arith.constant 6.400000e+01 : f32
    %407 = vector.broadcast %cst_191 : f32 to vector<32x1xf32>
    %408 = arith.divf %406, %407 : vector<32x1xf32>
    %cst_192 = arith.constant 9.99999974E-6 : f32
    %409 = vector.broadcast %cst_192 : f32 to vector<32x1xf32>
    %410 = arith.addf %408, %409 : vector<32x1xf32>
    %411 = math.rsqrt %410 : vector<32x1xf32>
    %412 = vector.broadcast %411 : vector<32x1xf32> to vector<32x64xf32>
    %413 = arith.mulf %403, %412 : vector<32x64xf32>
    %414 = arith.truncf %413 : vector<32x64xf32> to vector<32x64xbf16>
    %c0_193 = arith.constant 0 : index
    %c0_194 = arith.constant 0 : index
    %415 = vector.load %arg19[%c0_193, %c0_194] : memref<64x256xbf16, #tpu.memory_space<vmem>>, vector<64x256xbf16>
    %cst_195 = arith.constant dense<0.000000e+00> : vector<32x256xf32>
    %416 = tpu.matmul %414, %415, %cst_195 {dimension_numbers = #tpu.dot_dimension_numbers<[1], [0], [0], [1], [0, 0, 1, 1], [], []>} : vector<32x64xbf16>, vector<64x256xbf16>, vector<32x256xf32> -> vector<32x256xf32>
    %c0_196 = arith.constant 0 : index
    %c0_197 = arith.constant 0 : index
    %417 = vector.load %arg20[%c0_196, %c0_197] : memref<1x256xf32, #tpu.memory_space<vmem>>, vector<1x256xf32>
    %418 = vector.broadcast %417 : vector<1x256xf32> to vector<32x256xf32>
    %419 = arith.addf %416, %418 : vector<32x256xf32>
    %cst_198 = arith.constant 5.000000e-01 : f32
    %420 = vector.broadcast %cst_198 : f32 to vector<32x256xf32>
    %421 = arith.mulf %420, %419 : vector<32x256xf32>
    %cst_199 = arith.constant 4.471500e-02 : f32
    %422 = vector.broadcast %cst_199 : f32 to vector<32x256xf32>
    %423 = arith.mulf %422, %419 : vector<32x256xf32>
    %424 = arith.mulf %423, %419 : vector<32x256xf32>
    %425 = arith.mulf %424, %419 : vector<32x256xf32>
    %426 = arith.addf %419, %425 : vector<32x256xf32>
    %cst_200 = arith.constant 0.797884583 : f32
    %427 = vector.broadcast %cst_200 : f32 to vector<32x256xf32>
    %428 = arith.mulf %427, %426 : vector<32x256xf32>
    %429 = math.tanh %428 : vector<32x256xf32>
    %cst_201 = arith.constant 1.000000e+00 : f32
    %430 = vector.broadcast %cst_201 : f32 to vector<32x256xf32>
    %431 = arith.addf %430, %429 : vector<32x256xf32>
    %432 = arith.mulf %421, %431 : vector<32x256xf32>
    %433 = arith.truncf %432 : vector<32x256xf32> to vector<32x256xbf16>
    %c0_202 = arith.constant 0 : index
    %c0_203 = arith.constant 0 : index
    %434 = vector.load %arg21[%c0_202, %c0_203] : memref<256x64xbf16, #tpu.memory_space<vmem>>, vector<256x64xbf16>
    %cst_204 = arith.constant dense<0.000000e+00> : vector<32x64xf32>
    %435 = tpu.matmul %433, %434, %cst_204 {dimension_numbers = #tpu.dot_dimension_numbers<[1], [0], [0], [1], [0, 0, 1, 1], [], []>} : vector<32x256xbf16>, vector<256x64xbf16>, vector<32x64xf32> -> vector<32x64xf32>
    %c0_205 = arith.constant 0 : index
    %c0_206 = arith.constant 0 : index
    %436 = vector.load %arg22[%c0_205, %c0_206] : memref<1x64xf32, #tpu.memory_space<vmem>>, vector<1x64xf32>
    %437 = vector.broadcast %436 : vector<1x64xf32> to vector<32x64xf32>
    %438 = arith.addf %435, %437 : vector<32x64xf32>
    %cst_207 = arith.constant 5.000000e-01 : f32
    %439 = vector.broadcast %cst_207 : f32 to vector<32x64xf32>
    %440 = arith.mulf %439, %438 : vector<32x64xf32>
    %441 = arith.addf %440, %397 : vector<32x64xf32>
    %cst_208 = arith.constant dense<0.000000e+00> : vector<32xf32>
    %442 = vector.multi_reduction <add>, %441, %cst_208 [1] : vector<32x64xf32> to vector<32xf32>
    %443 = vector.shape_cast %442 : vector<32xf32> to vector<32x1xf32>
    %cst_209 = arith.constant 6.400000e+01 : f32
    %444 = vector.broadcast %cst_209 : f32 to vector<32x1xf32>
    %445 = arith.divf %443, %444 : vector<32x1xf32>
    %446 = vector.broadcast %445 : vector<32x1xf32> to vector<32x64xf32>
    %447 = arith.subf %441, %446 : vector<32x64xf32>
    %448 = arith.mulf %447, %447 : vector<32x64xf32>
    %cst_210 = arith.constant dense<0.000000e+00> : vector<32xf32>
    %449 = vector.multi_reduction <add>, %448, %cst_210 [1] : vector<32x64xf32> to vector<32xf32>
    %450 = vector.shape_cast %449 : vector<32xf32> to vector<32x1xf32>
    %cst_211 = arith.constant 6.400000e+01 : f32
    %451 = vector.broadcast %cst_211 : f32 to vector<32x1xf32>
    %452 = arith.divf %450, %451 : vector<32x1xf32>
    %cst_212 = arith.constant 9.99999974E-6 : f32
    %453 = vector.broadcast %cst_212 : f32 to vector<32x1xf32>
    %454 = arith.addf %452, %453 : vector<32x1xf32>
    %455 = math.rsqrt %454 : vector<32x1xf32>
    %456 = vector.broadcast %455 : vector<32x1xf32> to vector<32x64xf32>
    %457 = arith.mulf %447, %456 : vector<32x64xf32>
    %c0_213 = arith.constant 0 : index
    %c0_214 = arith.constant 0 : index
    %458 = vector.load %arg23[%c0_213, %c0_214] : memref<1x64xf32, #tpu.memory_space<vmem>>, vector<1x64xf32>
    %459 = vector.broadcast %458 : vector<1x64xf32> to vector<32x64xf32>
    %460 = arith.mulf %457, %459 : vector<32x64xf32>
    %c0_215 = arith.constant 0 : index
    %c0_216 = arith.constant 0 : index
    %461 = vector.load %arg24[%c0_215, %c0_216] : memref<1x64xf32, #tpu.memory_space<vmem>>, vector<1x64xf32>
    %462 = vector.broadcast %461 : vector<1x64xf32> to vector<32x64xf32>
    %463 = arith.addf %460, %462 : vector<32x64xf32>
    %464 = vector.extract_strided_slice %463 {offsets = [0, 0], sizes = [16, 64], strides = [1, 1]} : vector<32x64xf32> to vector<16x64xf32>
    %465 = vector.extract_strided_slice %463 {offsets = [16, 0], sizes = [16, 64], strides = [1, 1]} : vector<32x64xf32> to vector<16x64xf32>
    %466 = tpu.concatenate %464, %465 in 1 : vector<16x64xf32>, vector<16x64xf32> -> vector<16x128xf32>
    %c0_217 = arith.constant 0 : index
    %c0_218 = arith.constant 0 : index
    %467 = vector.load %arg25[%c0_217, %c0_218] : memref<16x128xf32, #tpu.memory_space<vmem>>, vector<16x128xf32>
    tpu.vector_store %arg25[%c0_217, %c0_218], %466 {strides = array<i32>} : memref<16x128xf32, #tpu.memory_space<vmem>>, vector<16x128xf32>,
    return
  }
  func.func @transform_0(%arg0: i32) -> (i32, i32) {
    %c0_i32 = arith.constant 0 : i32
    %c0_i32_0 = arith.constant 0 : i32
    %c0_i32_1 = arith.constant 0 : i32
    return %c0_i32, %c0_i32_0 : i32, i32
  }
  func.func @transform_1(%arg0: i32) -> (i32, i32) {
    %c0_i32 = arith.constant 0 : i32
    %c0_i32_0 = arith.constant 0 : i32
    %c0_i32_1 = arith.constant 0 : i32
    return %c0_i32, %c0_i32_0 : i32, i32
  }
  func.func @transform_2(%arg0: i32) -> (i32, i32) {
    %c0_i32 = arith.constant 0 : i32
    %c0_i32_0 = arith.constant 0 : i32
    %c0_i32_1 = arith.constant 0 : i32
    return %c0_i32, %c0_i32_0 : i32, i32
  }
  func.func @transform_3(%arg0: i32) -> (i32, i32) {
    %c0_i32 = arith.constant 0 : i32
    %c0_i32_0 = arith.constant 0 : i32
    %c0_i32_1 = arith.constant 0 : i32
    return %c0_i32, %c0_i32_0 : i32, i32
  }
  func.func @transform_4(%arg0: i32) -> (i32, i32) {
    %c0_i32 = arith.constant 0 : i32
    %c0_i32_0 = arith.constant 0 : i32
    %c0_i32_1 = arith.constant 0 : i32
    return %c0_i32, %c0_i32_0 : i32, i32
  }
  func.func @transform_5(%arg0: i32) -> (i32, i32) {
    %c0_i32 = arith.constant 0 : i32
    %c0_i32_0 = arith.constant 0 : i32
    %c0_i32_1 = arith.constant 0 : i32
    return %c0_i32, %c0_i32_0 : i32, i32
  }
  func.func @transform_6(%arg0: i32) -> (i32, i32) {
    %c0_i32 = arith.constant 0 : i32
    %c0_i32_0 = arith.constant 0 : i32
    %c0_i32_1 = arith.constant 0 : i32
    return %c0_i32, %c0_i32_0 : i32, i32
  }
  func.func @transform_7(%arg0: i32) -> (i32, i32) {
    %c0_i32 = arith.constant 0 : i32
    %c0_i32_0 = arith.constant 0 : i32
    %c0_i32_1 = arith.constant 0 : i32
    return %c0_i32, %c0_i32_0 : i32, i32
  }
  func.func @transform_8(%arg0: i32) -> (i32, i32) {
    %c0_i32 = arith.constant 0 : i32
    %c0_i32_0 = arith.constant 0 : i32
    %c0_i32_1 = arith.constant 0 : i32
    return %c0_i32, %c0_i32_0 : i32, i32
  }
  func.func @transform_9(%arg0: i32) -> (i32, i32) {
    %c0_i32 = arith.constant 0 : i32
    %c0_i32_0 = arith.constant 0 : i32
    %c0_i32_1 = arith.constant 0 : i32
    return %c0_i32, %c0_i32_0 : i32, i32
  }
  func.func @transform_10(%arg0: i32) -> (i32, i32) {
    %c0_i32 = arith.constant 0 : i32
    %c0_i32_0 = arith.constant 0 : i32
    %c0_i32_1 = arith.constant 0 : i32
    return %c0_i32, %c0_i32_0 : i32, i32
  }
  func.func @transform_11(%arg0: i32) -> (i32, i32) {
    %c0_i32 = arith.constant 0 : i32
    %c0_i32_0 = arith.constant 0 : i32
    %c0_i32_1 = arith.constant 0 : i32
    return %c0_i32, %c0_i32_0 : i32, i32
  }
  func.func @transform_12(%arg0: i32) -> (i32, i32) {
    %c0_i32 = arith.constant 0 : i32
    %c0_i32_0 = arith.constant 0 : i32
    %c0_i32_1 = arith.constant 0 : i32
    return %c0_i32, %c0_i32_0 : i32, i32
  }
  func.func @transform_13(%arg0: i32) -> (i32, i32) {
    %c0_i32 = arith.constant 0 : i32
    %c0_i32_0 = arith.constant 0 : i32
    %c0_i32_1 = arith.constant 0 : i32
    return %c0_i32, %c0_i32_0 : i32, i32
  }
  func.func @transform_14(%arg0: i32) -> (i32, i32) {
    %c0_i32 = arith.constant 0 : i32
    %c0_i32_0 = arith.constant 0 : i32
    %c0_i32_1 = arith.constant 0 : i32
    return %c0_i32, %c0_i32_0 : i32, i32
  }
  func.func @transform_15(%arg0: i32) -> (i32, i32) {
    %c0_i32 = arith.constant 0 : i32
    %c0_i32_0 = arith.constant 0 : i32
    %c0_i32_1 = arith.constant 0 : i32
    return %c0_i32, %c0_i32_0 : i32, i32
  }
  func.func @transform_16(%arg0: i32) -> (i32, i32) {
    %c0_i32 = arith.constant 0 : i32
    %c0_i32_0 = arith.constant 0 : i32
    %c0_i32_1 = arith.constant 0 : i32
    return %c0_i32, %c0_i32_0 : i32, i32
  }
  func.func @transform_17(%arg0: i32) -> (i32, i32) {
    %c0_i32 = arith.constant 0 : i32
    %c0_i32_0 = arith.constant 0 : i32
    %c0_i32_1 = arith.constant 0 : i32
    return %c0_i32, %c0_i32_0 : i32, i32
  }
  func.func @transform_18(%arg0: i32) -> (i32, i32) {
    %c0_i32 = arith.constant 0 : i32
    %c0_i32_0 = arith.constant 0 : i32
    %c0_i32_1 = arith.constant 0 : i32
    return %c0_i32, %c0_i32_0 : i32, i32
  }
  func.func @transform_19(%arg0: i32) -> (i32, i32) {
    %c0_i32 = arith.constant 0 : i32
    %c0_i32_0 = arith.constant 0 : i32
    %c0_i32_1 = arith.constant 0 : i32
    return %c0_i32, %c0_i32_0 : i32, i32
  }
  func.func @transform_20(%arg0: i32) -> (i32, i32) {
    %c0_i32 = arith.constant 0 : i32
    %c0_i32_0 = arith.constant 0 : i32
    %c0_i32_1 = arith.constant 0 : i32
    return %c0_i32, %c0_i32_0 : i32, i32
  }
  func.func @transform_21(%arg0: i32) -> (i32, i32) {
    %c0_i32 = arith.constant 0 : i32
    %c0_i32_0 = arith.constant 0 : i32
    %c0_i32_1 = arith.constant 0 : i32
    return %c0_i32, %c0_i32_0 : i32, i32
  }
  func.func @transform_22(%arg0: i32) -> (i32, i32) {
    %c0_i32 = arith.constant 0 : i32
    %c0_i32_0 = arith.constant 0 : i32
    %c0_i32_1 = arith.constant 0 : i32
    return %c0_i32, %c0_i32_0 : i32, i32
  }
  func.func @transform_23(%arg0: i32) -> (i32, i32) {
    %c0_i32 = arith.constant 0 : i32
    %c0_i32_0 = arith.constant 0 : i32
    %c0_i32_1 = arith.constant 0 : i32
    return %c0_i32, %c0_i32_0 : i32, i32
  }
  func.func @transform_24(%arg0: i32) -> (i32, i32) {
    %c0_i32 = arith.constant 0 : i32
    %c0_i32_0 = arith.constant 0 : i32
    %c0_i32_1 = arith.constant 0 : i32
    return %c0_i32, %c0_i32_0 : i32, i32
  }
  func.func @transform_25(%arg0: i32) -> (i32, i32) {
    %c0_i32 = arith.constant 0 : i32
    %c0_i32_0 = arith.constant 0 : i32
    %c0_i32_1 = arith.constant 0 : i32
    return %c0_i32, %c0_i32_0 : i32, i32
  }
}

</mosaic_0001>

<bundles_post_ra>
// kernel: tpu_custom_call.1
= control target key start
LH: loop header
LB: loop body
LE: loop exit
PB: predicated region body
PF: predicated region fallthrough
CT: control target
= control target key end

     0   :  { %s4999_s0 = inlined_call_operand.vmem [shape: f32[32,64], index: 0, kind: input, shape index: {}]   ;;  %s5000_s1 = inlined_call_operand.vmem [shape: bf16[64,256], index: 1, kind: input, shape index: {}]   ;;  %s5001_s2 = inlined_call_operand.hbm [shape: f32[1,256], index: 2, kind: input, shape index: {}]   ;;  %s5002_s3 = inlined_call_operand.vmem [shape: bf16[256,64], index: 3, kind: input, shape index: {}]   ;;  %s5003_s4 = inlined_call_operand.hbm [shape: f32[1,64], index: 4, kind: input, shape index: {}]   ;;  %s5004_s5 = inlined_call_operand.vmem [shape: bf16[64,64], index: 5, kind: input, shape index: {}]   ;;  %s5005_s6 = inlined_call_operand.hbm [shape: f32[1,64], index: 6, kind: input, shape index: {}]   ;;  %s5006_s7 = inlined_call_operand.vmem [shape: bf16[64,128], index: 7, kind: input, shape index: {}]   ;;  %s5007_s8 = inlined_call_operand.hbm [shape: f32[1,128], index: 8, kind: input, shape index: {}]   ;;  %s5008_s9 = inlined_call_operand.vmem [shape: bf16[64,64], index: 9, kind: input, shape index: {}]   ;;  %s5009_s10 = inlined_call_operand.vmem [shape: bf16[64,64], index: 10, kind: input, shape index: {}]   ;;  %s5010_s11 = inlined_call_operand.hbm [shape: f32[1,64], index: 11, kind: input, shape index: {}]   ;;  %s5011_s12 = inlined_call_operand.vmem [shape: bf16[64,64], index: 12, kind: input, shape index: {}]   ;;  %s5012_s13 = inlined_call_operand.vmem [shape: f32[1,64], index: 13, kind: input, shape index: {}]   ;;  %s5013_s14 = inlined_call_operand.vmem [shape: f32[9,64], index: 14, kind: input, shape index: {}]   ;;  %s5014_s15 = inlined_call_operand.vmem [shape: f32[1,64], index: 15, kind: input, shape index: {}]   ;;  %s5015_s16 = inlined_call_operand.hbm [shape: bf16[64,64], index: 16, kind: input, shape index: {}]   ;;  %s5016_s17 = inlined_call_operand.vmem [shape: f32[1,64], index: 17, kind: input, shape index: {}]   ;;  %s5017_s18 = inlined_call_operand.vmem [shape: bf16[64,256], index: 18, kind: input, shape index: {}]   ;;  %s5018_s19 = inlined_call_operand.vmem [shape: f32[1,256], index: 19, kind: input, shape index: {}]   ;;  %s5019_s20 = inlined_call_operand.vmem [shape: bf16[256,64], index: 20, kind: input, shape index: {}]   ;;  %s5020_s21 = inlined_call_operand.vmem [shape: f32[1,64], index: 21, kind: input, shape index: {}]   ;;  %s5021_s22 = inlined_call_operand.vmem [shape: f32[1,64], index: 22, kind: input, shape index: {}]   ;;  %s5022_s23 = inlined_call_operand.vmem [shape: f32[1,64], index: 23, kind: input, shape index: {}]   ;;  %s5023_s24 = inlined_call_operand.hbm [shape: f32[16,128], index: 24, kind: output, shape index: {0}]   ;;  %s5024_s25 = inlined_call_operand.hbm [shape: bf16[32,128], index: 25, kind: output, shape index: {1}]  }
   0x1   :  { %5031 = sst [smem:[#allocation23_spill]] %s4999_s0 }
   0x2   :  { %5032 = sst [smem:[#allocation24_spill]] %s5000_s1 }
   0x3   :  { %5033 = sst [smem:[#allocation25_spill]] %s5001_s2 }
   0x4   :  { %5034 = sst [smem:[#allocation26_spill]] %s5002_s3 }
   0x5   :  { %5035 = sst [smem:[#allocation27_spill]] %s5003_s4 }
   0x6   :  { %5036 = sst [smem:[#allocation28_spill]] %s5004_s5 }
   0x7   :  { %5037 = sst [smem:[#allocation29_spill]] %s5005_s6 }
   0x8   :  { %5038 = sst [smem:[#allocation30_spill]] %s5006_s7 }
   0x9   :  { %5039 = sst [smem:[#allocation31_spill]] %s5007_s8 }
   0xa   :  { %5040 = sst [smem:[#allocation32_spill]] %s5008_s9 }
   0xb   :  { %31 = vsyncpa [#allocation4], 0 }
   0xc   :  { %32 = vsyncpa [#allocation7], 0 }
   0xd   :  { %33 = vsyncpa [#allocation10], 0 }
   0xe   :  { %34 = vsyncpa [#allocation13], 0 }
   0xf   :  { %35 = vsyncpa [#allocation5], 0 }
  0x10   :  { %36 = vsyncpa [#allocation16], 0  ;;  %s4029_s29 = smov [#allocation6]   ;;  %s4030_s6 = smov [#allocation9]  }
  0x11   :  { %s59_s2 = sshll.u32 %s4029_s29, 4  ;;  %s83_s30 = sshll.u32 %s4030_s6, 4  ;;  %s60_s2 = int_to_ptr.vmem [resolvable:$true] %s59_s2  ;;  %s84_s30 = int_to_ptr.vmem [resolvable:$true] %s83_s30 }
  0x12   :  { %s3865_s7 = scalar_lea.vmem %s60_s2, 16  ;;  %s3869_s3 = scalar_lea.vmem %s60_s2, 32 }
  0x13   :  { %p3866_p0 = scmp.ne.s32.totalorder %s60_s2, %s3865_s7  ;;  %p3870_p1 = scmp.lt.s32.totalorder %s60_s2, %s60_s2 }
  0x14   :  { %p3871_p2 = scmp.lt.s32.totalorder %s3869_s3, %s3865_s7 }
  0x16   :  { %p3872_p3 = por %p3871_p2, %p3870_p1 }
  0x18   :  { %p3873_p4 = pnand %p3872_p3, %p3866_p0 }
  0x1a   :  { %3876 = shalt.err (!%p3873_p4)
}
  0x1b   :  { %s5041_s8 = sld [smem:[#allocation27_spill]]  ;;  %s3885_s27 = scalar_lea.vmem %s84_s30, 16 }
  0x1c   :  { %p3886_p5 = scmp.ne.s32.totalorder %s84_s30, %s3885_s27  ;;  %s3889_s4 = scalar_lea.vmem %s84_s30, 32 }
  0x1d   :  { %p3890_p6 = scmp.lt.s32.totalorder %s84_s30, %s84_s30  ;;  %p3891_p7 = scmp.lt.s32.totalorder %s3889_s4, %s3885_s27 }
  0x1f   :  { %p3892_p8 = por %p3891_p7, %p3890_p6 }
  0x21   :  { %62 = dma.hbm_to_vmem [thread:$0]  %s5041_s8, 16, %s60_s2, [#allocation7]  }
  0x22   :  { %p3893_p9 = pnand %p3892_p8, %p3886_p5 }
  0x24   :  { %3896 = shalt.err (!%p3893_p9)
}
  0x25   :  { %s5042_s5 = sld [smem:[#allocation31_spill]]  ;;  %s4031_s0 = smov [#allocation3]  }
  0x26   :  { %s47_s29 = sshll.u32 %s4031_s0, 4  ;;  %s4032_s6 = smov [#allocation8]   ;;  %s48_s29 = int_to_ptr.vmem [resolvable:$true] %s47_s29 }
  0x27   :  { %s71_s7 = sshll.u32 %s4032_s6, 4  ;;  %s3905_s3 = scalar_lea.vmem %s48_s29, 32  ;;  %s72_s7 = int_to_ptr.vmem [resolvable:$true] %s71_s7 }
  0x28   :  { %p3906_p10 = scmp.ne.s32.totalorder %s48_s29, %s3905_s3  ;;  %p3910_p11 = scmp.lt.s32.totalorder %s48_s29, %s48_s29 }
  0x29   :  { %p3911_p12 = scmp.lt.s32.totalorder %s3905_s3, %s3905_s3 }
  0x2b   :  { %86 = dma.hbm_to_vmem [thread:$0]  %s5042_s5, 16, %s84_s30, [#allocation10]  }
  0x2c   :  { %p3912_p13 = por %p3911_p12, %p3910_p11 }
  0x2e   :  { %p3913_p0 = pnand %p3912_p13, %p3906_p10 }
  0x30   :  { %3916 = shalt.err (!%p3913_p0)
}
  0x31   :  { %s5043_s1 = sld [smem:[#allocation25_spill]]  ;;  %s3925_s8 = scalar_lea.vmem %s72_s7, 16 }
  0x32   :  { %p3926_p1 = scmp.ne.s32.totalorder %s72_s7, %s3925_s8  ;;  %s3929_s30 = scalar_lea.vmem %s72_s7, 32 }
  0x33   :  { %p3930_p2 = scmp.lt.s32.totalorder %s72_s7, %s72_s7  ;;  %p3931_p3 = scmp.lt.s32.totalorder %s3929_s30, %s3925_s8 }
  0x35   :  { %p3932_p4 = por %p3931_p3, %p3930_p2 }
  0x37   :  { %50 = dma.hbm_to_vmem [thread:$0]  %s5043_s1, 32, %s48_s29, [#allocation4]  }
  0x38   :  { %p3933_p5 = pnand %p3932_p4, %p3926_p1 }
  0x3a   :  { %3936 = shalt.err (!%p3933_p5)
}
  0x3b   :  { %s5044_s28 = sld [smem:[#allocation29_spill]]  ;;  %s4033_s9 = smov [#allocation11]  }
  0x3c   :  { %s97_s5 = sshll.u32 %s4033_s9, 4  ;;  %s4034_s0 = smov [#allocation12]   ;;  %s98_s5 = int_to_ptr.vmem [resolvable:$true] %s97_s5 }
  0x3d   :  { %s114_s6 = sshll.u32 %s4034_s0, 4  ;;  %s3945_s3 = scalar_lea.vmem %s98_s5, 16  ;;  %s115_s6 = int_to_ptr.vmem [resolvable:$true] %s114_s6 }
  0x3e   :  { %p3946_p6 = scmp.ne.s32.totalorder %s98_s5, %s3945_s3  ;;  %s3949_s29 = scalar_lea.vmem %s98_s5, 32 }
  0x3f   :  { %p3950_p7 = scmp.lt.s32.totalorder %s98_s5, %s98_s5  ;;  %p3951_p8 = scmp.lt.s32.totalorder %s3949_s29, %s3945_s3 }
  0x41   :  { %74 = dma.hbm_to_vmem [thread:$0]  %s5044_s28, 16, %s72_s7, [#allocation7]  }
  0x42   :  { %p3952_p9 = por %p3951_p8, %p3950_p7 }
  0x44   :  { %p3953_p10 = pnand %p3952_p9, %p3946_p6 }
  0x46   :  { %3956 = shalt.err (!%p3953_p10)
}
  0x47   :  { %100 = dma.hbm_to_vmem [thread:$0]  %s5010_s11, 16, %s98_s5, [#allocation10]  }
  0x48   :  { %s3965_s1 = scalar_lea.vmem %s115_s6, 512  ;;  %p3970_p12 = scmp.lt.s32.totalorder %s115_s6, %s115_s6 }
  0x49   :  { %p3966_p11 = scmp.ne.s32.totalorder %s115_s6, %s3965_s1  ;;  %p3971_p13 = scmp.lt.s32.totalorder %s3965_s1, %s3965_s1 }
  0x4b   :  { %p3972_p0 = por %p3971_p13, %p3970_p12 }
  0x4d   :  { %p3973_p1 = pnand %p3972_p0, %p3966_p11 }
  0x4f   :  { %3976 = shalt.err (!%p3973_p1)
}
  0x50   :  { %s4035_s7 = smov 64   ;;  %s4036_s8 = smov 4  }
  0x51   :  { %120 = dma.hbm_to_vmem [thread:$0]  %s5015_s16, 512, %s115_s6, [#allocation13], %s4035_s7, %s4035_s7, %s4036_s8  }
  0x52   :  { %4017 = dma.done.wait [#allocation4], 32  }
  0x53   :  { %4018 = vsyncadd [#allocation4], 4294967264 }
  0x54   :  { %4019 = dma.done.wait [#allocation7], 32  }
  0x55   :  { %4020 = vsyncadd [#allocation7], 4294967264 }
  0x56   :  { %4021 = dma.done.wait [#allocation10], 32  }
  0x57   :  { %4022 = vsyncadd [#allocation10], 4294967264 }
  0x58   :  { %4023 = dma.done.wait [#allocation13], 512  }
  0x59   :  { %4024 = vsyncadd [#allocation13], 4294966784  ;;  %vm158_vm0 = vcmask 523264   ;;  %s5045_s28 = sld [smem:[#allocation23_spill]]  ;;  %v4037_v33 = vmov 0   ;;  %vm4039_vm1 = vmmov 0  }
  0x5a   :  { %s5046_s26 = sld [smem:[#allocation24_spill]]  ;;  %312 = vmatprep.mubr.bf16.mxu0 %v4037_v33  ;;  %vm859_vm2 = vcmask 130048   ;;  %s4041_s5 = smov 80   ;;  %vm1375_vm3 = vcmask 261120   ;;  %vm1378_vm4 = vcmask 392192   ;;  %vm2253_vm5 = vcmask 519168  }
  0x5b   :  { %s5047_s30 = sld [smem:[#allocation26_spill]]  ;;  %s4043_s0 = smov 48  }
  0x5c   :  { %s5049_s16 = sld [smem:[#allocation30_spill]]  ;;  %s4044_s6 = smov 16  }
  0x5d   :  { %s4045_s3 = smov 32   ;;  %s4046_s27 = smov [#allocation15]  }
  0x5e   :  { %s3097_s11 = sshll.u32 %s4046_s27, 4  ;;  %s3098_s11 = int_to_ptr.vmem [resolvable:$true] %s3097_s11 }
  0x5f   :  { %v4204_v0 = vld [vmem:[%s5045_s28] sm:$0xff]  ;;  %v4209_v1 = vld [vmem:[%s5045_s28 + $0x10] sm:$0xff]  ;;  %v4214_v2 = vld [vmem:[%s5045_s28 + $0x8] sm:$0xff]  ;;  %p3982_p3 = scmp.lt.s32.totalorder %s3098_s11, %s3098_s11 }
  0x60   :  { %v159_v3 = vsel %vm158_vm0, %v4204_v0, 0.0  ;;  %v165_v4 = vsel %vm158_vm0, %v4209_v1, 0.0  ;;  %v4223_v5 = vld [vmem:[%s5045_s28 + $0x18] sm:$0xff]  ;;  %v162_v6 = vsel %vm158_vm0, %v4214_v2, 0.0  ;;  %v3612_v30 = vld [vmem:[%s5046_s26 + $0x24] ss:$8 sps:$4 sm:$0xff]  }
  0x61   :  { %160 = vadd.xlane.f32.xlu0 %v159_v3  ;;  %166 = vadd.xlane.f32.xlu1 %v165_v4  ;;  %v168_v7 = vsel %vm158_vm0, %v4223_v5, 0.0  ;;  %v3609_v28 = vld [vmem:[%s5046_s26 + $0x34] ss:$8 sps:$4 sm:$0xff]   ;;  %v3611_v29 = vld [vmem:[%s5046_s26 + $0x30] ss:$8 sps:$4 sm:$0xff]   ;;  %v3625_v63 = vld [vmem:[%s5047_s30 + $0x68] sm:$0xff]  }
  0x62   :  { %288 = vmatprep.subr.bf16.mxu0 %v3609_v28  ;;  %v3614_v31 = vld [vmem:[%s5046_s26 + $0x20] ss:$8 sps:$4 sm:$0xff]   ;;  %v3615_v32 = vld [vmem:[%s5046_s26 + $0x14] ss:$8 sps:$4 sm:$0xff]   ;;  %v3617_v34 = vld [vmem:[%s5046_s26 + $0x10] ss:$8 sps:$4 sm:$0xff]  }
  0x63   :  { %289 = vmatpush1.bf16.msra.mxu0 %v3611_v29  ;;  %v3618_v35 = vld [vmem:[%s5046_s26 + $0x4] ss:$8 sps:$4 sm:$0xff]   ;;  %v3620_v36 = vld [vmem:[%s5046_s26] ss:$8 sps:$4 sm:$0xff]   ;;  %v3621_v59 = vld [vmem:[%s5047_s30 + $0x78] sm:$0xff]   ;;  %s5048_s28 = sld [smem:[#allocation28_spill]] }
  0x64   :  { %290 = vmatprep.subr.bf16.mxu0 %v3612_v30  ;;  %v3622_v60 = vld [vmem:[%s5047_s30 + $0x38] sm:$0xff]   ;;  %3266 = vmatprep.subr.bf16.mxu1 %v3621_v59  ;;  %v3623_v61 = vld [vmem:[%s5047_s30 + $0x70] sm:$0xff]   ;;  %v3626_v3 = vld [vmem:[%s5047_s30 + $0x28] sm:$0xff]   ;;  %s5050_s26 = sld [smem:[#allocation32_spill]] }
  0x65   :  { %163 = vadd.xlane.f32.xlu0 %v162_v6  ;;  %169 = vadd.xlane.f32.xlu1 %v168_v7  ;;  %v3624_v62 = vld [vmem:[%s5047_s30 + $0x30] sm:$0xff]   ;;  %v3627_v4 = vld [vmem:[%s5047_s30 + $0x60] sm:$0xff]   ;;  %v3629_v7 = vld [vmem:[%s5047_s30 + $0x58] sm:$0xff]  }
  0x66   :  { %3267 = vmatpush3.bf16.msra.mxu1 %v3622_v60  ;;  %v3628_v6 = vld [vmem:[%s5047_s30 + $0x20] sm:$0xff]  }
  0x67   :  { %291 = vmatpush1.bf16.msra.mxu0 %v3614_v31  ;;  %3268 = vmatprep.subr.bf16.mxu1 %v3623_v61 }
  0x68   :  { %292 = vmatprep.subr.bf16.mxu0 %v3615_v32 }
  0x6a   :  { %3269 = vmatpush3.bf16.msra.mxu1 %v3624_v62 }
  0x6b   :  { %293 = vmatpush1.bf16.msra.mxu0 %v3617_v34  ;;  %3270 = vmatprep.subr.bf16.mxu1 %v3625_v63 }
  0x6c   :  { %294 = vmatprep.subr.bf16.mxu0 %v3618_v35 }
  0x6e   :  { %3271 = vmatpush3.bf16.msra.mxu1 %v3626_v3 }
  0x6f   :  { %295 = vmatpush1.bf16.msra.mxu0 %v3620_v36  ;;  %3272 = vmatprep.subr.bf16.mxu1 %v3627_v4 }
  0x72   :  { %3273 = vmatpush3.bf16.msra.mxu1 %v3628_v6 }
  0x73   :  { %3274 = vmatprep.subr.bf16.mxu1 %v3629_v7 }
  0xea   :  { %v161_v8 = vpop.xlane.xlu0 %160  ;;  %v167_v9 = vpop.xlane.xlu1 %166 }
  0xeb   :  { %v172_v10 = vmul.f32 0.015625, %v161_v8  ;;  %v174_v11 = vmul.f32 0.015625, %v167_v9  ;;  %v3630_v8 = vld [vmem:[%s5047_s30 + $0x18] sm:$0xff]   ;;  %v3631_v9 = vld [vmem:[%s5047_s30 + $0x50] sm:$0xff]  }
  0xec   :  { %3275 = vmatpush3.bf16.msra.mxu1 %v3630_v8 }
  0xed   :  { %v176_v12 = vsub.f32 %v4204_v0, %v172_v10  ;;  %v4231_v13 = vsub.f32 %v4209_v1, %v174_v11  ;;  %v3632_v10 = vld [vmem:[%s5047_s30 + $0x10] sm:$0xff]   ;;  %3276 = vmatprep.subr.bf16.mxu1 %v3631_v9  ;;  %v3633_v11 = vld [vmem:[%s5047_s30 + $0x48] sm:$0xff]  }
  0xee   :  { %v164_v14 = vpop.xlane.xlu0 %163  ;;  %v170_v15 = vpop.xlane.xlu1 %169 }
  0xef   :  { %v173_v16 = vmul.f32 0.015625, %v164_v14  ;;  %v175_v17 = vmul.f32 0.015625, %v170_v15  ;;  %v180_v18 = vmul.f32 %v176_v12, %v176_v12  ;;  %v182_v19 = vmul.f32 %v4231_v13, %v4231_v13  ;;  %v3636_v14 = vld [vmem:[%s5047_s30] sm:$0xff]  }
  0xf0   :  { %3277 = vmatpush3.bf16.msra.mxu1 %v3632_v10  ;;  %v224_v15 = vlaneseq }
  0xf1   :  { %v177_v20 = vsub.f32 %v4214_v2, %v173_v16  ;;  %v179_v21 = vsub.f32 %v4223_v5, %v175_v17  ;;  %v184_v22 = vsel %vm158_vm0, %v180_v18, 0.0  ;;  %v190_v23 = vsel %vm158_vm0, %v182_v19, 0.0  ;;  %3278 = vmatprep.subr.bf16.mxu1 %v3633_v11  ;;  %v222_v18 = vld [vmem:[#allocation3] sm:$0x3] }
  0xf2   :  { %185 = vadd.xlane.f32.xlu0 %v184_v22  ;;  %v4318_v16 = vshrl.u32 %v224_v15, 7 }
  0xf3   :  { %v181_v24 = vmul.f32 %v177_v20, %v177_v20  ;;  %v183_v25 = vmul.f32 %v179_v21, %v179_v21 }
  0xf4   :  { %v226_v17 = vsub.s32 0, %v4318_v16  ;;  %v230_v19 = vsub.s32 1, %v4318_v16 }
  0xf5   :  { %v187_v26 = vsel %vm158_vm0, %v181_v24, 0.0  ;;  %v193_v27 = vsel %vm158_vm0, %v183_v25, 0.0 }
  0xf6   :  { %191 = vadd.xlane.f32.xlu0 %v190_v23  ;;  %188 = vadd.xlane.f32.xlu1 %v187_v26 }
  0xfa   :  { %194 = vadd.xlane.f32.xlu1 %v193_v27 }
 0x17b   :  { %v186_v37 = vpop.xlane.xlu0 %185 }
 0x17c   :  { %v196_v38 = vmul.f32 0.015625, %v186_v37 }
 0x17e   :  { %v200_v39 = vadd.f32 1e-05, %v196_v38 }
 0x17f   :  { %v189_v40 = vpop.xlane.xlu1 %188  ;;  %v192_v41 = vpop.xlane.xlu0 %191 }
 0x180   :  { %v197_v42 = vmul.f32 0.015625, %v189_v40  ;;  %3689 = vrsqrt.f32 %v200_v39  ;;  %v198_v44 = vmul.f32 0.015625, %v192_v41 }
 0x182   :  { %v201_v43 = vadd.f32 1e-05, %v197_v42  ;;  %v202_v47 = vadd.f32 1e-05, %v198_v44 }
 0x183   :  { %v195_v45 = vpop.xlane.xlu1 %194 }
 0x184   :  { %3691 = vrsqrt.f32 %v201_v43  ;;  %v199_v46 = vmul.f32 0.015625, %v195_v45 }
 0x186   :  { %v203_v48 = vadd.f32 1e-05, %v199_v46 }
 0x188   :  { %3693 = vrsqrt.f32 %v203_v48 }
 0x189   :  { %3695 = vrsqrt.f32 %v202_v47 }
 0x18d   :  { %v3690_v49 = vpop.eup %3689 }
 0x18e   :  { %v208_v51 = vmul.f32 %v3690_v49, %v176_v12  ;;  %v3634_v12 = vld [vmem:[%s5047_s30 + $0x8] sm:$0xff]  }
 0x18f   :  { %3279 = vmatpush3.bf16.msra.mxu1 %v3634_v12 }
 0x191   :  { %v3692_v50 = vpop.eup %3691 }
 0x192   :  { %v209_v52 = vmul.f32 %v3692_v50, %v177_v20  ;;  %v227_v20 = vrot.slane %v222_v18, %v226_v17 }
 0x194   :  { %v212_v53 = vpack.c.bf16 %v209_v52, %v208_v51 }
 0x195   :  { %v3694_v54 = vpop.eup %3693 }
 0x196   :  { %3124 = vmatmul.mubr.msk.bf16.vlgmr.msra.gmra.mxu0 %vm158_vm0, %v212_v53  ;;  %v3696_v55 = vpop.eup %3695  ;;  %v211_v56 = vmul.f32 %v3694_v54, %v179_v21  ;;  %v231_v21 = vrot.slane %v222_v18, %v230_v19 }
 0x197   :  { %322 = vmatprep.mubr.bf16.mxu0 %v4037_v33  ;;  %v210_v57 = vmul.f32 %v3696_v55, %v4231_v13  ;;  %v3635_v13 = vld [vmem:[%s5047_s30 + $0x40] sm:$0xff]   ;;  %s3977_s30 = scalar_lea.vmem %s3098_s11, 256 }
 0x198   :  { %3280 = vmatprep.subr.bf16.mxu1 %v3635_v13  ;;  %p3978_p2 = scmp.ne.s32.totalorder %s3098_s11, %s3977_s30  ;;  %p3983_p4 = scmp.lt.s32.totalorder %s3977_s30, %s3977_s30 }
 0x199   :  { %v213_v58 = vpack.c.bf16 %v211_v56, %v210_v57  ;;  %3281 = vmatpush3.bf16.msra.mxu1 %v3636_v14 }
 0x19a   :  { %p3984_p5 = por %p3983_p4, %p3982_p3 }
 0x19c   :  { %p3985_p6 = pnand %p3984_p5, %p3978_p2 }
 0x19e   :  { %3125 = vmatmul.mubr.msk.bf16.gmra.mxu0 %vm158_vm0, %v213_v58 }
 0x256   :  { %v314_v22 = vpop.f32.mrf.mxu0 }
 0x257   :  { %v4326_v23 = vadd.f32 %v314_v22, %v227_v20 }
 0x258   :  { %v316_v24 = vpop.f32.mrf.mxu0 }
 0x259   :  { %v341_v25 = vmul.f32 0.044715, %v4326_v23  ;;  %v4329_v26 = vadd.f32 %v316_v24, %v231_v21 }
 0x25a   :  { %v318_v27 = vpop.f32.mrf.mxu0 }
 0x25b   :  { %v349_v28 = vmul.f32 %v341_v25, %v4326_v23  ;;  %v342_v29 = vmul.f32 0.044715, %v4329_v26  ;;  %v319_v30 = vadd.f32 %v318_v27, %v227_v20 }
 0x25c   :  { %v320_v31 = vpop.f32.mrf.mxu0 }
 0x25d   :  { %v357_v32 = vmul.f32 %v349_v28, %v4326_v23  ;;  %v343_v34 = vmul.f32 0.044715, %v319_v30  ;;  %v321_v35 = vadd.f32 %v320_v31, %v231_v21  ;;  %v350_v36 = vmul.f32 %v342_v29, %v4329_v26 }
 0x25e   :  { %v324_v37 = vpop.f32.mrf.mxu0  ;;  %v335_v31 = vmul.f32 0.5, %v319_v30 }
 0x25f   :  { %v351_v38 = vmul.f32 %v343_v34, %v319_v30  ;;  %v344_v39 = vmul.f32 0.044715, %v321_v35  ;;  %v4335_v40 = vadd.f32 %v324_v37, %v227_v20  ;;  %v358_v42 = vmul.f32 %v350_v36, %v4329_v26 }
 0x260   :  { %v326_v41 = vpop.f32.mrf.mxu0  ;;  %v365_v43 = vadd.f32 %v357_v32, %v4326_v23  ;;  %v334_v34 = vmul.f32 0.5, %v4329_v26  ;;  %v336_v36 = vmul.f32 0.5, %v321_v35 }
 0x261   :  { %v359_v44 = vmul.f32 %v351_v38, %v319_v30  ;;  %v345_v45 = vmul.f32 0.044715, %v4335_v40  ;;  %v4340_v46 = vadd.f32 %v326_v41, %v231_v21  ;;  %v352_v47 = vmul.f32 %v344_v39, %v321_v35 }
 0x262   :  { %v328_v48 = vpop.f32.mrf.mxu0  ;;  %v366_v49 = vadd.f32 %v358_v42, %v4329_v26  ;;  %v373_v50 = vmul.f32 0.7978846, %v365_v43  ;;  %v333_v38 = vmul.f32 0.5, %v4326_v23 }
 0x263   :  { %v353_v51 = vmul.f32 %v345_v45, %v4335_v40  ;;  %v346_v52 = vmul.f32 0.044715, %v4340_v46  ;;  %v329_v53 = vadd.f32 %v328_v48, %v227_v20  ;;  %v360_v54 = vmul.f32 %v352_v47, %v321_v35 }
 0x264   :  { %v330_v55 = vpop.f32.mrf.mxu0  ;;  %v374_v56 = vmul.f32 0.7978846, %v366_v49  ;;  %v367_v57 = vadd.f32 %v359_v44, %v319_v30  ;;  %v338_v30 = vmul.f32 0.5, %v4340_v46 }
 0x265   :  { %v361_v58 = vmul.f32 %v353_v51, %v4335_v40  ;;  %v354_v59 = vmul.f32 %v346_v52, %v4340_v46  ;;  %v347_v60 = vmul.f32 0.044715, %v329_v53  ;;  %v331_v61 = vadd.f32 %v330_v55, %v231_v21 }
 0x266   :  { %v368_v62 = vadd.f32 %v360_v54, %v321_v35  ;;  %3697 = vtanh.f32 %v374_v56  ;;  %v375_v63 = vmul.f32 0.7978846, %v367_v57  ;;  %v339_v54 = vmul.f32 0.5, %v329_v53 }
 0x267   :  { %v362_v3 = vmul.f32 %v354_v59, %v4340_v46  ;;  %v355_v4 = vmul.f32 %v347_v60, %v329_v53  ;;  %v348_v6 = vmul.f32 0.044715, %v331_v61  ;;  %3699 = vtanh.f32 %v373_v50 }
 0x268   :  { %v376_v7 = vmul.f32 0.7978846, %v368_v62  ;;  %3701 = vtanh.f32 %v375_v63  ;;  %v369_v8 = vadd.f32 %v361_v58, %v4335_v40  ;;  %v340_v26 = vmul.f32 0.5, %v331_v61 }
 0x269   :  { %v363_v9 = vmul.f32 %v355_v4, %v329_v53  ;;  %v356_v10 = vmul.f32 %v348_v6, %v331_v61  ;;  %v370_v11 = vadd.f32 %v362_v3, %v4340_v46  ;;  %v337_v57 = vmul.f32 0.5, %v4335_v40  ;;  %v3126_v3 = vld [vmem:[#allocation6] ss:$0 sm:$0xff] }
 0x26a   :  { %3703 = vtanh.f32 %v376_v7  ;;  %v377_v12 = vmul.f32 0.7978846, %v369_v8 }
 0x26b   :  { %v364_v13 = vmul.f32 %v356_v10, %v331_v61  ;;  %v378_v14 = vmul.f32 0.7978846, %v370_v11  ;;  %v371_v15 = vadd.f32 %v363_v9, %v329_v53 }
 0x26d   :  { %v372_v18 = vadd.f32 %v364_v13, %v331_v61  ;;  %3705 = vtanh.f32 %v378_v14  ;;  %v379_v20 = vmul.f32 0.7978846, %v371_v15 }
 0x26e   :  { %3707 = vtanh.f32 %v377_v12 }
 0x26f   :  { %v380_v21 = vmul.f32 0.7978846, %v372_v18  ;;  %3709 = vtanh.f32 %v379_v20 }
 0x271   :  { %3711 = vtanh.f32 %v380_v21 }
 0x273   :  { %v3698_v22 = vpop.eup %3697 }
 0x274   :  { %v3700_v24 = vpop.eup %3699  ;;  %v390_v27 = vadd.f32 1.0, %v3698_v22 }
 0x275   :  { %v3702_v25 = vpop.eup %3701  ;;  %v389_v32 = vadd.f32 1.0, %v3700_v24 }
 0x276   :  { %v391_v28 = vadd.f32 1.0, %v3702_v25  ;;  %v398_v42 = vmul.f32 %v390_v27, %v334_v34 }
 0x277   :  { %v3704_v29 = vpop.eup %3703  ;;  %v397_v45 = vmul.f32 %v389_v32, %v333_v38 }
 0x278   :  { %v392_v37 = vadd.f32 1.0, %v3704_v29  ;;  %v399_v39 = vmul.f32 %v391_v28, %v335_v31 }
 0x27a   :  { %v3706_v41 = vpop.eup %3705  ;;  %v400_v43 = vmul.f32 %v392_v37, %v336_v36  ;;  %v405_v49 = vpack.c.bf16 %v399_v39, %v397_v45 }
 0x27b   :  { %v3708_v44 = vpop.eup %3707  ;;  %v394_v50 = vadd.f32 1.0, %v3706_v41 }
 0x27c   :  { %v3710_v47 = vpop.eup %3709  ;;  %v406_v48 = vpack.c.bf16 %v400_v43, %v398_v42  ;;  %v393_v23 = vadd.f32 1.0, %v3708_v44 }
 0x27d   :  { %v395_v51 = vadd.f32 1.0, %v3710_v47  ;;  %v402_v55 = vmul.f32 %v394_v50, %v338_v30 }
 0x27e   :  { %v3712_v52 = vpop.eup %3711  ;;  %576 = vmatprep.mubr.bf16.mxu1 %v406_v48  ;;  %v401_v60 = vmul.f32 %v393_v23, %v337_v57  ;;  %v3640_v23 = vld [vmem:[%s5049_s16 + $0x10] sm:$0xff]   ;;  %v3643_v57 = vld [vmem:[%s5048_s28] sm:$0xff]  }
 0x27f   :  { %577 = vmatmul.mubr.bf16.vlgmr.msra.gmra.mxu1 %v405_v49  ;;  %v396_v35 = vadd.f32 1.0, %v3712_v52  ;;  %v403_v58 = vmul.f32 %v395_v51, %v339_v54  ;;  %v3639_v54 = vld [vmem:[%s5048_s28 + $0x10] sm:$0xff]  }
 0x281   :  { %v404_v56 = vmul.f32 %v396_v35, %v340_v26  ;;  %v407_v62 = vpack.c.bf16 %v403_v58, %v401_v60  ;;  %v3637_v26 = vld [vmem:[%s5048_s28 + $0x18] sm:$0xff]   ;;  %v3644_v58 = vld [vmem:[%s5049_s16] sm:$0xff]  }
 0x282   :  { %v3638_v35 = vld [vmem:[%s5049_s16 + $0x18] sm:$0xff]   ;;  %3390 = vmatprep.subr.bf16.mxu1 %v3637_v26 }
 0x283   :  { %v408_v59 = vpack.c.bf16 %v404_v56, %v402_v55  ;;  %3402 = vmatprep.subr.bf16.mxu0 %v3638_v35  ;;  %3391 = vmatpush3.bf16.msra.mxu1 %v3637_v26  ;;  %v3641_v55 = vld [vmem:[%s5048_s28 + $0x8] sm:$0xff]   ;;  %s4040_s28 = smov 112  }
 0x284   :  { %3403 = vmatpush3.bf16.msra.mxu0 %v3638_v35  ;;  %3392 = vmatprep.subr.bf16.mxu1 %v3639_v54  ;;  %v3642_v56 = vld [vmem:[%s5049_s16 + $0x8] sm:$0xff]   ;;  %s4042_s16 = smov 96  }
 0x285   :  { %584 = vmatprep.mubr.bf16.mxu1 %v408_v59  ;;  %3404 = vmatprep.subr.bf16.mxu0 %v3640_v23 }
 0x287   :  { %585 = vmatmul.mubr.bf16.gmra.mxu1 %v407_v62 }
 0x288   :  { %3393 = vmatpush3.bf16.msra.mxu1 %v3639_v54  ;;  %3405 = vmatpush3.bf16.msra.mxu0 %v3640_v23 }
 0x289   :  { %3394 = vmatprep.subr.bf16.mxu1 %v3641_v55  ;;  %3406 = vmatprep.subr.bf16.mxu0 %v3642_v56 }
 0x28c   :  { %3395 = vmatpush3.bf16.msra.mxu1 %v3641_v55  ;;  %3407 = vmatpush3.bf16.msra.mxu0 %v3642_v56 }
 0x28d   :  { %3396 = vmatprep.subr.bf16.mxu1 %v3643_v57  ;;  %3408 = vmatprep.subr.bf16.mxu0 %v3644_v58 }
 0x290   :  { %3397 = vmatpush3.bf16.msra.mxu1 %v3643_v57  ;;  %3409 = vmatpush3.bf16.msra.mxu0 %v3644_v58 }
 0x33f   :  { %v3282_v63 = vpop.f32.mrf.mxu1 }
 0x341   :  { %v3283_v4 = vpop.f32.mrf.mxu1 }
 0x342   :  { %v3284_v6 = vadd.f32 %v3283_v4, %v3282_v63 }
 0x343   :  { %v3285_v46 = vpop.f32.mrf.mxu1 }
 0x344   :  { %v579_v7 = vadd.f32 %v3284_v6, %v3126_v3 }
 0x345   :  { %v3286_v61 = vpop.f32.mrf.mxu1 }
 0x346   :  { %v593_v8 = vmul.f32 0.5, %v579_v7  ;;  %v3287_v53 = vadd.f32 %v3286_v61, %v3285_v46 }
 0x347   :  { %v3288_v9 = vpop.f32.mrf.mxu1 }
 0x348   :  { %v582_v10 = vadd.f32 %v3287_v53, %v3126_v3  ;;  %v4355_v11 = vadd.f32 %v593_v8, %v4204_v0 }
 0x349   :  { %v3289_v40 = vpop.f32.mrf.mxu1 }
 0x34a   :  { %v594_v12 = vmul.f32 0.5, %v582_v10  ;;  %v3290_v13 = vadd.f32 %v3289_v40, %v3288_v9  ;;  %v601_v14 = vsel %vm158_vm0, %v4355_v11, 0.0 }
 0x34b   :  { %602 = vadd.xlane.f32.xlu0 %v601_v14  ;;  %v3291_v15 = vpop.f32.mrf.mxu1 }
 0x34c   :  { %v587_v18 = vadd.f32 %v3290_v13, %v3126_v3  ;;  %v4360_v20 = vadd.f32 %v594_v12, %v4214_v2 }
 0x34d   :  { %v3292_v21 = vpop.f32.mrf.mxu1 }
 0x34e   :  { %v595_v22 = vmul.f32 0.5, %v587_v18  ;;  %v3293_v24 = vadd.f32 %v3292_v21, %v3291_v15  ;;  %v604_v25 = vsel %vm158_vm0, %v4360_v20, 0.0 }
 0x34f   :  { %605 = vadd.xlane.f32.xlu1 %v604_v25 }
 0x350   :  { %v590_v0 = vadd.f32 %v3293_v24, %v3126_v3  ;;  %v4365_v27 = vadd.f32 %v595_v22, %v4209_v1  ;;  %v4038_v24 = vmov 0.0  }
 0x351   :  { %3414 = vmatprep.subr.bf16.mxu1 %v4038_v24  ;;  %3420 = vmatprep.subr.bf16.mxu0 %v4038_v24  ;;  %2254 = vst.msk [vmem:[#allocation2] sm:$0xf] %vm2253_vm5, %v4038_v24  ;;  %2255 = vst.msk [vmem:[#allocation2 + $0x14] sm:$0xf] %vm2253_vm5, %v4038_v24 }
 0x352   :  { %v596_v28 = vmul.f32 0.5, %v590_v0  ;;  %v607_v29 = vsel %vm158_vm0, %v4365_v27, 0.0  ;;  %2259 = vst.msk [vmem:[#allocation2 + $0x18] sm:$0xf] %vm2253_vm5, %v4038_v24  ;;  %2260 = vst.msk [vmem:[#allocation2 + $0x2c] sm:$0xf] %vm2253_vm5, %v4038_v24 }
 0x353   :  { %608 = vadd.xlane.f32.xlu0 %v607_v29 }
 0x354   :  { %v4370_v31 = vadd.f32 %v596_v28, %v4223_v5  ;;  %v3150_v28 = vld [vmem:[#allocation9] ss:$0 sm:$0xff] }
 0x356   :  { %v610_v2 = vsel %vm158_vm0, %v4370_v31, 0.0 }
 0x357   :  { %611 = vadd.xlane.f32.xlu1 %v610_v2 }
 0x3d4   :  { %v603_v32 = vpop.xlane.xlu0 %602 }
 0x3d5   :  { %v613_v34 = vmul.f32 0.015625, %v603_v32 }
 0x3d7   :  { %v4375_v36 = vsub.f32 %v4355_v11, %v613_v34 }
 0x3d8   :  { %v606_v37 = vpop.xlane.xlu1 %605 }
 0x3d9   :  { %v614_v1 = vmul.f32 0.015625, %v606_v37  ;;  %v621_v38 = vmul.f32 %v4375_v36, %v4375_v36 }
 0x3db   :  { %v618_v39 = vsub.f32 %v4360_v20, %v614_v1  ;;  %v625_v41 = vsel %vm158_vm0, %v621_v38, 0.0 }
 0x3dc   :  { %626 = vadd.xlane.f32.xlu0 %v625_v41  ;;  %v609_v5 = vpop.xlane.xlu0 %608 }
 0x3dd   :  { %v615_v42 = vmul.f32 0.015625, %v609_v5  ;;  %v622_v43 = vmul.f32 %v618_v39, %v618_v39 }
 0x3df   :  { %v619_v44 = vsub.f32 %v4365_v27, %v615_v42  ;;  %v628_v45 = vsel %vm158_vm0, %v622_v43, 0.0 }
 0x3e0   :  { %629 = vadd.xlane.f32.xlu1 %v628_v45  ;;  %v612_v47 = vpop.xlane.xlu1 %611 }
 0x3e1   :  { %v616_v48 = vmul.f32 0.015625, %v612_v47  ;;  %v623_v49 = vmul.f32 %v619_v44, %v619_v44 }
 0x3e3   :  { %v620_v50 = vsub.f32 %v4370_v31, %v616_v48  ;;  %v631_v51 = vsel %vm158_vm0, %v623_v49, 0.0 }
 0x3e4   :  { %632 = vadd.xlane.f32.xlu0 %v631_v51 }
 0x3e5   :  { %v624_v52 = vmul.f32 %v620_v50, %v620_v50 }
 0x3e7   :  { %v634_v30 = vsel %vm158_vm0, %v624_v52, 0.0 }
 0x3e8   :  { %635 = vadd.xlane.f32.xlu1 %v634_v30 }
 0x465   :  { %v627_v59 = vpop.xlane.xlu0 %626 }
 0x466   :  { %v637_v60 = vmul.f32 0.015625, %v627_v59 }
 0x468   :  { %v641_v62 = vadd.f32 1e-05, %v637_v60 }
 0x469   :  { %v630_v63 = vpop.xlane.xlu1 %629 }
 0x46a   :  { %v638_v3 = vmul.f32 0.015625, %v630_v63  ;;  %3713 = vrsqrt.f32 %v641_v62 }
 0x46c   :  { %v642_v4 = vadd.f32 1e-05, %v638_v3 }
 0x46d   :  { %v633_v6 = vpop.xlane.xlu0 %632 }
 0x46e   :  { %3715 = vrsqrt.f32 %v642_v4  ;;  %v639_v46 = vmul.f32 0.015625, %v633_v6 }
 0x470   :  { %v643_v7 = vadd.f32 1e-05, %v639_v46 }
 0x471   :  { %v636_v61 = vpop.xlane.xlu1 %635 }
 0x472   :  { %v640_v8 = vmul.f32 0.015625, %v636_v61  ;;  %3717 = vrsqrt.f32 %v643_v7 }
 0x474   :  { %v644_v53 = vadd.f32 1e-05, %v640_v8 }
 0x476   :  { %3719 = vrsqrt.f32 %v644_v53 }
 0x477   :  { %v3714_v9 = vpop.eup %3713 }
 0x478   :  { %v649_v40 = vmul.f32 %v3714_v9, %v4375_v36  ;;  %v3143_v36 = vld [vmem:[#allocation8] ss:$0 sm:$0xff] }
 0x47b   :  { %v3716_v10 = vpop.eup %3715 }
 0x47c   :  { %v650_v12 = vmul.f32 %v3716_v10, %v618_v39 }
 0x47e   :  { %v653_v13 = vpack.c.bf16 %v650_v12, %v649_v40 }
 0x47f   :  { %v3718_v14 = vpop.eup %3717 }
 0x480   :  { %3398 = vmatprep.mubr.msk.bf16.mxu1 %vm158_vm0, %v653_v13  ;;  %3410 = vmatprep.mubr.msk.bf16.mxu0 %vm158_vm0, %v653_v13  ;;  %v651_v18 = vmul.f32 %v3718_v14, %v619_v44 }
 0x483   :  { %v3720_v15 = vpop.eup %3719 }
 0x484   :  { %v652_v21 = vmul.f32 %v3720_v15, %v620_v50 }
 0x486   :  { %v654_v22 = vpack.c.bf16 %v652_v21, %v651_v18 }
 0x488   :  { %3399 = vmatmul.mubr.msk.bf16.vlgmr.msra.gmra.mxu1 %vm158_vm0, %v654_v22  ;;  %3411 = vmatmul.mubr.msk.bf16.vlgmr.msra.gmra.mxu0 %vm158_vm0, %v654_v22 }
 0x489   :  { %3416 = vmatprep.mubr.msk.bf16.mxu1 %vm4039_vm1, %v4038_v24  ;;  %3422 = vmatprep.mubr.msk.bf16.mxu0 %vm4039_vm1, %v4038_v24 }
 0x548   :  { %v3400_v25 = vpop.f32.mrf.mxu1  ;;  %v3412_v0 = vpop.f32.mrf.mxu0 }
 0x549   :  { %v831_v37 = vadd.f32 %v3412_v0, %v3150_v28  ;;  %v743_v50 = vadd.f32 %v3400_v25, %v3143_v36 }
 0x54a   :  { %v734_v29 = vpop.f32.mrf.mxu1  ;;  %v822_v2 = vpop.f32.mrf.mxu0 }
 0x54b   :  { %v735_v38 = vadd.f32 %v3143_v36, %v734_v29  ;;  %v823_v5 = vadd.f32 %v3150_v28, %v822_v2 }
 0x54c   :  { %v3401_v32 = vpop.f32.mrf.mxu1  ;;  %v3413_v34 = vpop.f32.mrf.mxu0 }
 0x54d   :  { %v834_v1 = vadd.f32 %v3413_v34, %v3150_v28  ;;  %v746_v49 = vadd.f32 %v3401_v32, %v3143_v36 }
 0x54e   :  { %v737_v39 = vpop.f32.mrf.mxu1  ;;  %v825_v41 = vpop.f32.mrf.mxu0 }
 0x54f   :  { %v4421_v42 = vpack.c.bf16 %v834_v1, %v831_v37  ;;  %v738_v43 = vadd.f32 %v3143_v36, %v737_v39  ;;  %v826_v44 = vadd.f32 %v3150_v28, %v825_v41  ;;  %v858_v51 = vpack.c.bf16 %v746_v49, %v743_v50 }
 0x551   :  { %3265 = vst [vmem:[#allocation15 + $0x8] sm:$0xff] %v4421_v42   ;;  %v857_v45 = vpack.c.bf16 %v738_v43, %v735_v38  ;;  %v4424_v47 = vpack.c.bf16 %v826_v44, %v823_v5  ;;  %v1385_v63 = vsel %vm859_vm2, %v4421_v42, 0 }
 0x553   :  { %3259 = vst [vmem:[#allocation15] sm:$0xff] %v4424_v47   ;;  %982 = vrot.lane.b32.xlu0 %v4424_v47, %s4040_s28  ;;  %980 = vrot.lane.b32.xlu1 %v857_v45, %s4040_s28  ;;  %v864_v48 = vsel %vm859_vm2, %v4424_v47, 0 }
 0x554   :  { %3415 = vmatpush3.bf16.xpose.msra.mxu1 %v864_v48 }
 0x555   :  { %3426 = vmatprep.subr.bf16.mxu1 %v4038_v24 }
 0x557   :  { %1228 = vrot.lane.b32.xlu0 %v4424_v47, %s4041_s5  ;;  %1105 = vrot.lane.b32.xlu1 %v4424_v47, %s4042_s16 }
 0x55b   :  { %1503 = vrot.lane.b32.xlu0 %v4421_v42, %s4040_s28  ;;  %1103 = vrot.lane.b32.xlu1 %v857_v45, %s4042_s16 }
 0x55c   :  { %3417 = vmatmul.mubr.msk.bf16.vlgmr.msra.gmra.mxu1 %vm859_vm2, %v857_v45 }
 0x55d   :  { %3428 = vmatprep.mubr.msk.bf16.mxu1 %vm4039_vm1, %v4038_v24 }
 0x55f   :  { %1626 = vrot.lane.b32.xlu0 %v4421_v42, %s4042_s16  ;;  %1226 = vrot.lane.b32.xlu1 %v857_v45, %s4041_s5 }
 0x563   :  { %1749 = vrot.lane.b32.xlu0 %v4421_v42, %s4041_s5  ;;  %1501 = vrot.lane.b32.xlu1 %v858_v51, %s4040_s28 }
 0x567   :  { %932 = vrot.lane.b32.xlu0 %v4424_v47, %s4035_s7  ;;  %1624 = vrot.lane.b32.xlu1 %v858_v51, %s4042_s16 }
 0x56b   :  { %1747 = vrot.lane.b32.xlu1 %v858_v51, %s4041_s5 }
 0x5c5   :  { %v983_v52 = vpop.permute.xlu0 %982  ;;  %v981_v30 = vpop.permute.xlu1 %980 }
 0x5c6   :  { %v988_v26 = vsel %vm859_vm2, %v983_v52, 0 }
 0x5c7   :  { %3427 = vmatpush3.bf16.xpose.msra.mxu1 %v988_v26 }
 0x5c8   :  { %3438 = vmatprep.subr.bf16.mxu1 %v4038_v24 }
 0x5c9   :  { %v1229_v35 = vpop.permute.xlu0 %1228  ;;  %v1106_v54 = vpop.permute.xlu1 %1105 }
 0x5ca   :  { %v1111_v55 = vsel %vm859_vm2, %v1106_v54, 0  ;;  %v1234_v59 = vsel %vm859_vm2, %v1229_v35, 0 }
 0x5cd   :  { %v1504_v23 = vpop.permute.xlu0 %1503  ;;  %v1104_v57 = vpop.permute.xlu1 %1103 }
 0x5ce   :  { %3429 = vmatmul.mubr.msk.bf16.vlgmr.msra.gmra.mxu1 %vm859_vm2, %v981_v30  ;;  %v1509_v3 = vsel %vm859_vm2, %v1504_v23, 0 }
 0x5cf   :  { %3439 = vmatpush3.bf16.xpose.msra.mxu1 %v1111_v55  ;;  %3440 = vmatprep.mubr.msk.bf16.mxu1 %vm4039_vm1, %v4038_v24 }
 0x5d0   :  { %3450 = vmatprep.subr.bf16.mxu1 %v4038_v24 }
 0x5d1   :  { %v1627_v56 = vpop.permute.xlu0 %1626  ;;  %v1227_v62 = vpop.permute.xlu1 %1226 }
 0x5d2   :  { %v1632_v6 = vsel %vm859_vm2, %v1627_v56, 0 }
 0x5d5   :  { %v1750_v58 = vpop.permute.xlu0 %1749  ;;  %v1502_v4 = vpop.permute.xlu1 %1501 }
 0x5d6   :  { %3441 = vmatmul.mubr.msk.bf16.vlgmr.msra.gmra.mxu1 %vm859_vm2, %v1104_v57  ;;  %v1755_v7 = vsel %vm859_vm2, %v1750_v58, 0 }
 0x5d7   :  { %3451 = vmatpush3.bf16.xpose.msra.mxu1 %v1234_v59  ;;  %3452 = vmatprep.mubr.msk.bf16.mxu1 %vm4039_vm1, %v4038_v24 }
 0x5d8   :  { %3462 = vmatprep.subr.bf16.mxu1 %v4038_v24 }
 0x5d9   :  { %v933_v60 = vpop.permute.xlu0 %932  ;;  %v1625_v46 = vpop.permute.xlu1 %1624 }
 0x5da   :  { %3421 = vmatpush3.bf16.msra.mxu0 %v933_v60 }
 0x5db   :  { %3432 = vmatprep.subr.bf16.mxu0 %v4038_v24 }
 0x5dd   :  { %v1748_v61 = vpop.permute.xlu1 %1747 }
 0x5de   :  { %3453 = vmatmul.mubr.msk.bf16.vlgmr.msra.gmra.mxu1 %vm859_vm2, %v1227_v62 }
 0x5df   :  { %3463 = vmatpush3.bf16.xpose.msra.mxu1 %v1385_v63  ;;  %3464 = vmatprep.mubr.msk.bf16.mxu1 %vm4039_vm1, %v4038_v24 }
 0x5e0   :  { %3474 = vmatprep.subr.bf16.mxu1 %v4038_v24 }
 0x5e6   :  { %3465 = vmatmul.mubr.msk.bf16.vlgmr.msra.gmra.mxu1 %vm859_vm2, %v858_v51 }
 0x5e7   :  { %3475 = vmatpush3.bf16.xpose.msra.mxu1 %v1509_v3  ;;  %3476 = vmatprep.mubr.msk.bf16.mxu1 %vm4039_vm1, %v4038_v24 }
 0x5e8   :  { %3486 = vmatprep.subr.bf16.mxu1 %v4038_v24 }
 0x5ee   :  { %3477 = vmatmul.mubr.msk.bf16.vlgmr.msra.gmra.mxu1 %vm859_vm2, %v1502_v4 }
 0x5ef   :  { %3487 = vmatpush3.bf16.xpose.msra.mxu1 %v1632_v6  ;;  %3488 = vmatprep.mubr.msk.bf16.mxu1 %vm4039_vm1, %v4038_v24 }
 0x5f0   :  { %3498 = vmatprep.subr.bf16.mxu1 %v4038_v24 }
 0x5f6   :  { %3489 = vmatmul.mubr.msk.bf16.vlgmr.msra.gmra.mxu1 %vm859_vm2, %v1625_v46 }
 0x5f7   :  { %3499 = vmatpush3.bf16.xpose.msra.mxu1 %v1755_v7  ;;  %3500 = vmatprep.mubr.msk.bf16.mxu1 %vm4039_vm1, %v4038_v24 }
 0x5fe   :  { %3501 = vmatmul.mubr.msk.bf16.vlgmr.msra.gmra.mxu1 %vm859_vm2, %v1748_v61 }
 0x61c   :  { %v900_v8 = vpop.f32.mrf.mxu1 }
 0x61d   :  { %v907_v53 = vmul.f32 0.25, %v900_v8 }
 0x61e   :  { %v3418_v9 = vpop.f32.mrf.mxu1 }
 0x61f   :  { %v909_v10 = vsel %vm859_vm2, %v907_v53, -inf }
 0x620   :  { %910 = vmax.xlane.f32.xlu0 %v909_v10  ;;  %v903_v40 = vpop.f32.mrf.mxu1 }
 0x621   :  { %v908_v12 = vmul.f32 0.25, %v903_v40 }
 0x622   :  { %v3419_v13 = vpop.f32.mrf.mxu1 }
 0x623   :  { %v912_v14 = vsel %vm859_vm2, %v908_v12, -inf }
 0x624   :  { %913 = vmax.xlane.f32.xlu1 %v912_v14 }
 0x635   :  { %1056 = vrot.lane.b32.xlu1 %v4424_v47, %s4043_s0 }
 0x68e   :  { %v1024_v15 = vpop.f32.mrf.mxu1 }
 0x68f   :  { %v4479_v18 = vmul.f32 0.25, %v1024_v15 }
 0x690   :  { %v3430_v21 = vpop.f32.mrf.mxu1 }
 0x691   :  { %v1033_v22 = vsel %vm859_vm2, %v4479_v18, -inf }
 0x692   :  { %1034 = vmax.xlane.f32.xlu0 %v1033_v22  ;;  %v1027_v25 = vpop.f32.mrf.mxu1 }
 0x693   :  { %v4483_v0 = vmul.f32 0.25, %v1027_v25 }
 0x694   :  { %v3431_v28 = vpop.f32.mrf.mxu1 }
 0x695   :  { %v1036_v29 = vsel %vm859_vm2, %v4483_v0, -inf }
 0x696   :  { %1037 = vmax.xlane.f32.xlu0 %v1036_v29  ;;  %v1147_v2 = vpop.f32.mrf.mxu1 }
 0x697   :  { %v4487_v32 = vmul.f32 0.25, %v1147_v2 }
 0x698   :  { %v3442_v34 = vpop.f32.mrf.mxu1 }
 0x699   :  { %v1156_v36 = vsel %vm859_vm2, %v4487_v32, -inf }
 0x69a   :  { %1157 = vmax.xlane.f32.xlu0 %v1156_v36  ;;  %v1150_v37 = vpop.f32.mrf.mxu1 }
 0x69b   :  { %v4491_v1 = vmul.f32 0.25, %v1150_v37 }
 0x69c   :  { %v3443_v38 = vpop.f32.mrf.mxu1 }
 0x69d   :  { %v1159_v39 = vsel %vm859_vm2, %v4491_v1, -inf }
 0x69e   :  { %1160 = vmax.xlane.f32.xlu1 %v1159_v39  ;;  %v1270_v41 = vpop.f32.mrf.mxu1 }
 0x69f   :  { %v4495_v5 = vmul.f32 0.25, %v1270_v41 }
 0x6a0   :  { %v3454_v43 = vpop.f32.mrf.mxu1 }
 0x6a1   :  { %v1279_v44 = vsel %vm859_vm2, %v4495_v5, -inf }
 0x6a2   :  { %1280 = vmax.xlane.f32.xlu0 %v1279_v44  ;;  %v1273_v45 = vpop.f32.mrf.mxu1 }
 0x6a3   :  { %v4499_v48 = vmul.f32 0.25, %v1273_v45 }
 0x6a4   :  { %v3455_v49 = vpop.f32.mrf.mxu1 }
 0x6a5   :  { %v1282_v50 = vsel %vm859_vm2, %v4499_v48, -inf }
 0x6a6   :  { %1283 = vmax.xlane.f32.xlu1 %v1282_v50  ;;  %v1421_v51 = vpop.f32.mrf.mxu1 }
 0x6a7   :  { %v4503_v52 = vmul.f32 0.25, %v1421_v51 }
 0x6a8   :  { %v3466_v30 = vpop.f32.mrf.mxu1 }
 0x6a9   :  { %v911_v26 = vpop.xlane.xlu0 %910  ;;  %v1430_v35 = vsel %vm859_vm2, %v4503_v52, -inf }
 0x6aa   :  { %v915_v54 = vsub.f32 %v907_v53, %v911_v26  ;;  %1431 = vmax.xlane.f32.xlu0 %v1430_v35  ;;  %v1424_v23 = vpop.f32.mrf.mxu1 }
 0x6ab   :  { %v4507_v55 = vmul.f32 0.25, %v1424_v23 }
 0x6ac   :  { %v917_v56 = vmul.f32 1.442695, %v915_v54  ;;  %v3467_v57 = vpop.f32.mrf.mxu1 }
 0x6ad   :  { %v914_v58 = vpop.xlane.xlu1 %913  ;;  %v1433_v59 = vsel %vm859_vm2, %v4507_v55, -inf }
 0x6ae   :  { %3721 = vpow2.f32 %v917_v56  ;;  %v916_v60 = vsub.f32 %v908_v12, %v914_v58  ;;  %1434 = vmax.xlane.f32.xlu1 %v1433_v59  ;;  %v1545_v62 = vpop.f32.mrf.mxu1 }
 0x6af   :  { %v4511_v63 = vmul.f32 0.25, %v1545_v62 }
 0x6b0   :  { %v919_v3 = vmul.f32 1.442695, %v916_v60  ;;  %v3478_v4 = vpop.f32.mrf.mxu1 }
 0x6b1   :  { %v1554_v6 = vsel %vm859_vm2, %v4511_v63, -inf  ;;  %v4549_v30 = vpop.permute.xlu1 %1056 }
 0x6b2   :  { %3723 = vpow2.f32 %v919_v3  ;;  %1555 = vmax.xlane.f32.xlu0 %v1554_v6  ;;  %v1548_v46 = vpop.f32.mrf.mxu1 }
 0x6b3   :  { %v4515_v7 = vmul.f32 0.25, %v1548_v46 }
 0x6b4   :  { %v3479_v61 = vpop.f32.mrf.mxu1 }
 0x6b5   :  { %v1557_v8 = vsel %vm859_vm2, %v4515_v7, -inf }
 0x6b6   :  { %1558 = vmax.xlane.f32.xlu1 %v1557_v8  ;;  %v1668_v53 = vpop.f32.mrf.mxu1 }
 0x6b7   :  { %v4519_v9 = vmul.f32 0.25, %v1668_v53 }
 0x6b8   :  { %v3490_v10 = vpop.f32.mrf.mxu1 }
 0x6b9   :  { %v1677_v40 = vsel %vm859_vm2, %v4519_v9, -inf }
 0x6ba   :  { %1678 = vmax.xlane.f32.xlu0 %v1677_v40  ;;  %v1671_v12 = vpop.f32.mrf.mxu1 }
 0x6bb   :  { %v4523_v13 = vpop.eup %3721  ;;  %v4525_v14 = vmul.f32 0.25, %v1671_v12 }
 0x6bc   :  { %v3491_v15 = vpop.f32.mrf.mxu1  ;;  %v921_v21 = vsel %vm859_vm2, %v4523_v13, 0.0 }
 0x6bd   :  { %v1680_v22 = vsel %vm859_vm2, %v4525_v14, -inf }
 0x6be   :  { %922 = vadd.xlane.f32.xlu0 %v921_v21  ;;  %1681 = vmax.xlane.f32.xlu1 %v1680_v22  ;;  %v1791_v25 = vpop.f32.mrf.mxu1 }
 0x6bf   :  { %v4531_v28 = vpop.eup %3723  ;;  %v4533_v29 = vmul.f32 0.25, %v1791_v25 }
 0x6c0   :  { %v3502_v2 = vpop.f32.mrf.mxu1  ;;  %v924_v34 = vsel %vm859_vm2, %v4531_v28, 0.0 }
 0x6c1   :  { %v1800_v36 = vsel %vm859_vm2, %v4533_v29, -inf }
 0x6c2   :  { %925 = vadd.xlane.f32.xlu1 %v924_v34  ;;  %1801 = vmax.xlane.f32.xlu0 %v1800_v36  ;;  %v1794_v37 = vpop.f32.mrf.mxu1 }
 0x6c3   :  { %v4539_v38 = vmul.f32 0.25, %v1794_v37 }
 0x6c4   :  { %v3503_v39 = vpop.f32.mrf.mxu1 }
 0x6c5   :  { %v1803_v41 = vsel %vm859_vm2, %v4539_v38, -inf }
 0x6c6   :  { %1804 = vmax.xlane.f32.xlu1 %v1803_v41 }
 0x6d7   :  { %1302 = vrot.lane.b32.xlu1 %v4424_v47, %s4044_s6 }
 0x6d8   :  { %1179 = vrot.lane.b32.xlu0 %v4424_v47, %s4045_s3 }
 0x71b   :  { %v1035_v43 = vpop.xlane.xlu0 %1034 }
 0x71c   :  { %v1039_v44 = vsub.f32 %v4479_v18, %v1035_v43 }
 0x71e   :  { %v1041_v45 = vmul.f32 1.442695, %v1039_v44 }
 0x71f   :  { %v1038_v49 = vpop.xlane.xlu0 %1037 }
 0x720   :  { %3725 = vpow2.f32 %v1041_v45  ;;  %v1040_v50 = vsub.f32 %v4483_v0, %v1038_v49 }
 0x722   :  { %v1043_v51 = vmul.f32 1.442695, %v1040_v50 }
 0x723   :  { %v1158_v26 = vpop.xlane.xlu0 %1157 }
 0x724   :  { %3727 = vpow2.f32 %v1043_v51  ;;  %v1162_v35 = vsub.f32 %v4487_v32, %v1158_v26 }
 0x726   :  { %v1164_v54 = vmul.f32 1.442695, %v1162_v35 }
 0x727   :  { %v1161_v23 = vpop.xlane.xlu1 %1160 }
 0x728   :  { %3729 = vpow2.f32 %v1164_v54  ;;  %v1163_v47 = vsub.f32 %v4491_v1, %v1161_v23 }
 0x72a   :  { %v1166_v56 = vmul.f32 1.442695, %v1163_v47 }
 0x72b   :  { %v1281_v57 = vpop.xlane.xlu0 %1280 }
 0x72c   :  { %3731 = vpow2.f32 %v1166_v56  ;;  %v1285_v18 = vsub.f32 %v4495_v5, %v1281_v57 }
 0x72d   :  { %v4554_v58 = vpop.eup %3725 }
 0x72e   :  { %v1287_v0 = vmul.f32 1.442695, %v1285_v18  ;;  %v1045_v59 = vsel %vm859_vm2, %v4554_v58, 0.0 }
 0x72f   :  { %v1284_v60 = vpop.xlane.xlu1 %1283  ;;  %1046 = vadd.xlane.f32.xlu0 %v1045_v59 }
 0x730   :  { %3733 = vpow2.f32 %v1287_v0  ;;  %v1286_v32 = vsub.f32 %v4499_v48, %v1284_v60 }
 0x731   :  { %v4559_v62 = vpop.eup %3727 }
 0x732   :  { %v1289_v3 = vmul.f32 1.442695, %v1286_v32  ;;  %v1048_v1 = vsel %vm859_vm2, %v4559_v62, 0.0 }
 0x733   :  { %v1432_v4 = vpop.xlane.xlu0 %1431  ;;  %1049 = vadd.xlane.f32.xlu1 %v1048_v1 }
 0x734   :  { %3735 = vpow2.f32 %v1289_v3  ;;  %v1436_v5 = vsub.f32 %v4503_v52, %v1432_v4 }
 0x735   :  { %v4564_v6 = vpop.eup %3729 }
 0x736   :  { %v1438_v46 = vmul.f32 1.442695, %v1436_v5  ;;  %v1168_v61 = vsel %vm859_vm2, %v4564_v6, 0.0 }
 0x737   :  { %v1435_v8 = vpop.xlane.xlu1 %1434  ;;  %1169 = vadd.xlane.f32.xlu0 %v1168_v61 }
 0x738   :  { %3737 = vpow2.f32 %v1438_v46  ;;  %v1437_v48 = vsub.f32 %v4507_v55, %v1435_v8 }
 0x739   :  { %v4569_v53 = vpop.eup %3731 }
 0x73a   :  { %v1440_v10 = vmul.f32 1.442695, %v1437_v48  ;;  %v1171_v40 = vsel %vm859_vm2, %v4569_v53, 0.0 }
 0x73b   :  { %1172 = vadd.xlane.f32.xlu1 %v1171_v40  ;;  %v1556_v15 = vpop.xlane.xlu0 %1555 }
 0x73c   :  { %3739 = vpow2.f32 %v1440_v10  ;;  %v1560_v0 = vsub.f32 %v4511_v63, %v1556_v15 }
 0x73d   :  { %v4573_v52 = vpop.eup %3733 }
 0x73e   :  { %v1291_v12 = vsel %vm859_vm2, %v4573_v52, 0.0  ;;  %v1562_v1 = vmul.f32 1.442695, %v1560_v0 }
 0x73f   :  { %v1559_v21 = vpop.xlane.xlu1 %1558  ;;  %1292 = vadd.xlane.f32.xlu0 %v1291_v12 }
 0x740   :  { %v1561_v22 = vsub.f32 %v4515_v7, %v1559_v21 }
 0x741   :  { %v4578_v25 = vpop.eup %3735 }
 0x742   :  { %v1564_v55 = vmul.f32 1.442695, %v1561_v22  ;;  %v1294_v2 = vsel %vm859_vm2, %v4578_v25, 0.0 }
 0x743   :  { %v1679_v34 = vpop.xlane.xlu0 %1678  ;;  %1295 = vadd.xlane.f32.xlu1 %v1294_v2 }
 0x744   :  { %3741 = vpow2.f32 %v1564_v55  ;;  %v1683_v36 = vsub.f32 %v4519_v9, %v1679_v34 }
 0x745   :  { %v4583_v37 = vpop.eup %3737 }
 0x746   :  { %v1685_v39 = vmul.f32 1.442695, %v1683_v36  ;;  %v1442_v41 = vsel %vm859_vm2, %v4583_v37, 0.0 }
 0x747   :  { %v1682_v43 = vpop.xlane.xlu1 %1681  ;;  %1443 = vadd.xlane.f32.xlu1 %v1442_v41  ;;  %v923_v7 = vpop.xlane.xlu0 %922 }
 0x748   :  { %3743 = vpow2.f32 %v1685_v39  ;;  %v1684_v44 = vsub.f32 %v4525_v14, %v1682_v43 }
 0x749   :  { %v4588_v45 = vpop.eup %3739  ;;  %3745 = vrcp.f32 %v923_v7 }
 0x74a   :  { %v1687_v49 = vmul.f32 1.442695, %v1684_v44  ;;  %v1445_v50 = vsel %vm859_vm2, %v4588_v45, 0.0 }
 0x74b   :  { %v926_v9 = vpop.xlane.xlu1 %925  ;;  %1446 = vadd.xlane.f32.xlu1 %v1445_v50  ;;  %v1802_v32 = vpop.xlane.xlu0 %1801 }
 0x74c   :  { %3747 = vpow2.f32 %v1687_v49  ;;  %v1806_v4 = vsub.f32 %v4533_v29, %v1802_v32 }
 0x74d   :  { %3749 = vrcp.f32 %v926_v9 }
 0x74f   :  { %v1805_v51 = vpop.xlane.xlu1 %1804  ;;  %v1180_v61 = vpop.permute.xlu0 %1179 }
 0x750   :  { %v1807_v26 = vsub.f32 %v4539_v38, %v1805_v51 }
 0x751   :  { %v4593_v35 = vpop.eup %3741 }
 0x752   :  { %v1810_v54 = vmul.f32 1.442695, %v1807_v26  ;;  %v1569_v14 = vsel %vm859_vm2, %v4593_v35, 0.0 }
 0x753   :  { %1570 = vadd.xlane.f32.xlu1 %v1569_v14  ;;  %v1303_v8 = vpop.permute.xlu1 %1302 }
 0x754   :  { %3751 = vpow2.f32 %v1810_v54 }
 0x755   :  { %v4597_v23 = vpop.eup %3743  ;;  %1453 = vrot.lane.b32.xlu0 %v4421_v42, %s4035_s7  ;;  %3753 = vpow2.f32 %v1562_v1 }
 0x756   :  { %v1689_v47 = vsel %vm859_vm2, %v4597_v23, 0.0  ;;  %v3746_v56 = vpop.eup %3745 }
 0x757   :  { %1690 = vadd.xlane.f32.xlu1 %v1689_v47  ;;  %v929_v59 = vmul.f32 %v3746_v56, %v4523_v13  ;;  %v1808_v13 = vmul.f32 1.442695, %v1806_v4 }
 0x759   :  { %v4603_v57 = vpop.eup %3747  ;;  %3755 = vpow2.f32 %v1808_v13 }
 0x75a   :  { %v3750_v38 = vpop.eup %3749  ;;  %v1692_v18 = vsel %vm859_vm2, %v4603_v57, 0.0 }
 0x75b   :  { %1693 = vadd.xlane.f32.xlu1 %v1692_v18  ;;  %v930_v60 = vmul.f32 %v3750_v38, %v4531_v28 }
 0x75d   :  { %v931_v3 = vpack.c.bf16 %v930_v60, %v929_v59 }
 0x75f   :  { %3423 = vmatmul.mubr.msk.bf16.vlgmr.msra.gmra.mxu0 %vm859_vm2, %v931_v3 }
 0x760   :  { %3433 = vmatpush3.bf16.msra.mxu0 %v4549_v30  ;;  %3434 = vmatprep.mubr.msk.bf16.mxu0 %vm4039_vm1, %v4038_v24 }
 0x761   :  { %v4615_v5 = vpop.eup %3751  ;;  %3444 = vmatprep.subr.bf16.mxu0 %v4038_v24 }
 0x762   :  { %v1815_v63 = vsel %vm859_vm2, %v4615_v5, 0.0  ;;  %v4620_v28 = vpop.eup %3753 }
 0x763   :  { %1816 = vadd.xlane.f32.xlu1 %v1815_v63  ;;  %v1566_v29 = vsel %vm859_vm2, %v4620_v28, 0.0 }
 0x766   :  { %v4624_v30 = vpop.eup %3755 }
 0x767   :  { %v1812_v46 = vsel %vm859_vm2, %v4624_v30, 0.0 }
 0x774   :  { %1567 = vadd.xlane.f32.xlu0 %v1566_v29  ;;  %1577 = vrot.lane.b32.xlu1 %v4421_v42, %s4043_s0 }
 0x778   :  { %1813 = vadd.xlane.f32.xlu0 %v1812_v46 }
 0x78e   :  { %1700 = vrot.lane.b32.xlu0 %v4421_v42, %s4045_s3 }
 0x792   :  { %1823 = vrot.lane.b32.xlu0 %v4421_v42, %s4044_s6 }
 0x7b8   :  { %v1047_v48 = vpop.xlane.xlu0 %1046 }
 0x7b9   :  { %3757 = vrcp.f32 %v1047_v48 }
 0x7bc   :  { %v1050_v10 = vpop.xlane.xlu1 %1049 }
 0x7bd   :  { %3759 = vrcp.f32 %v1050_v10 }
 0x7c0   :  { %v1170_v40 = vpop.xlane.xlu0 %1169 }
 0x7c1   :  { %3761 = vrcp.f32 %v1170_v40 }
 0x7c4   :  { %v1173_v12 = vpop.xlane.xlu1 %1172 }
 0x7c5   :  { %3763 = vrcp.f32 %v1173_v12 }
 0x7c6   :  { %v3758_v15 = vpop.eup %3757 }
 0x7c7   :  { %v1053_v55 = vmul.f32 %v3758_v15, %v4554_v58 }
 0x7c8   :  { %v1293_v21 = vpop.xlane.xlu0 %1292 }
 0x7c9   :  { %3765 = vrcp.f32 %v1293_v21 }
 0x7ca   :  { %v3760_v22 = vpop.eup %3759 }
 0x7cb   :  { %v1054_v2 = vmul.f32 %v3760_v22, %v4559_v62 }
 0x7cc   :  { %v1296_v34 = vpop.xlane.xlu1 %1295 }
 0x7cd   :  { %3767 = vrcp.f32 %v1296_v34  ;;  %v1055_v42 = vpack.c.bf16 %v1054_v2, %v1053_v55 }
 0x7ce   :  { %v3762_v36 = vpop.eup %3761 }
 0x7cf   :  { %3435 = vmatmul.mubr.msk.bf16.vlgmr.msra.gmra.mxu0 %vm859_vm2, %v1055_v42  ;;  %v1176_v43 = vmul.f32 %v3762_v36, %v4564_v6 }
 0x7d0   :  { %3445 = vmatpush3.bf16.msra.mxu0 %v1180_v61  ;;  %v1444_v39 = vpop.xlane.xlu1 %1443  ;;  %3446 = vmatprep.mubr.msk.bf16.mxu0 %vm4039_vm1, %v4038_v24 }
 0x7d1   :  { %3456 = vmatprep.subr.bf16.mxu0 %v4038_v24  ;;  %3769 = vrcp.f32 %v1444_v39 }
 0x7d2   :  { %v3764_v41 = vpop.eup %3763 }
 0x7d3   :  { %v1177_v58 = vmul.f32 %v3764_v41, %v4569_v53  ;;  %v1454_v53 = vpop.permute.xlu0 %1453 }
 0x7d4   :  { %v1447_v62 = vpop.xlane.xlu1 %1446 }
 0x7d5   :  { %3771 = vrcp.f32 %v1447_v62  ;;  %v1178_v7 = vpack.c.bf16 %v1177_v58, %v1176_v43 }
 0x7d6   :  { %v3766_v44 = vpop.eup %3765 }
 0x7d7   :  { %3447 = vmatmul.mubr.msk.bf16.vlgmr.msra.gmra.mxu0 %vm859_vm2, %v1178_v7  ;;  %v1299_v50 = vmul.f32 %v3766_v44, %v4573_v52 }
 0x7d8   :  { %3457 = vmatpush3.bf16.msra.mxu0 %v1303_v8  ;;  %3458 = vmatprep.mubr.msk.bf16.mxu0 %vm4039_vm1, %v4038_v24 }
 0x7d9   :  { %3468 = vmatprep.subr.bf16.mxu0 %v4038_v24 }
 0x7da   :  { %v3768_v49 = vpop.eup %3767 }
 0x7db   :  { %v1300_v9 = vmul.f32 %v3768_v49, %v4578_v25 }
 0x7dc   :  { %v1571_v6 = vpop.xlane.xlu1 %1570 }
 0x7dd   :  { %v1301_v51 = vpack.c.bf16 %v1300_v9, %v1299_v50  ;;  %3773 = vrcp.f32 %v1571_v6  ;;  %v3645_v9 = vld [vmem:[%s5050_s26 + $0x18] sm:$0xff]  }
 0x7de   :  { %v3770_v26 = vpop.eup %3769  ;;  %3510 = vmatprep.subr.bf16.mxu1 %v3645_v9 }
 0x7df   :  { %3459 = vmatmul.mubr.msk.bf16.vlgmr.msra.gmra.mxu0 %vm859_vm2, %v1301_v51  ;;  %v1450_v47 = vmul.f32 %v3770_v26, %v4583_v37  ;;  %3511 = vmatpush3.bf16.msra.mxu1 %v3645_v9 }
 0x7e0   :  { %3469 = vmatpush3.bf16.msra.mxu0 %v1454_v53  ;;  %3470 = vmatprep.mubr.msk.bf16.mxu0 %vm4039_vm1, %v4038_v24  ;;  %v1691_v14 = vpop.xlane.xlu1 %1690  ;;  %v3646_v53 = vld [vmem:[%s5050_s26 + $0x10] sm:$0xff]  }
 0x7e1   :  { %3480 = vmatprep.subr.bf16.mxu0 %v4038_v24  ;;  %3512 = vmatprep.subr.bf16.mxu1 %v3646_v53 }
 0x7e2   :  { %v3772_v54 = vpop.eup %3771 }
 0x7e3   :  { %v1451_v52 = vmul.f32 %v3772_v54, %v4588_v45  ;;  %v3647_v54 = vld [vmem:[%s5050_s26 + $0x8] sm:$0xff]   ;;  %3513 = vmatpush3.bf16.msra.mxu1 %v3646_v53 }
 0x7e4   :  { %v1694_v25 = vpop.xlane.xlu1 %1693  ;;  %3514 = vmatprep.subr.bf16.mxu1 %v3647_v54 }
 0x7e5   :  { %v1452_v56 = vpack.c.bf16 %v1451_v52, %v1450_v47 }
 0x7e7   :  { %3471 = vmatmul.mubr.msk.bf16.vlgmr.msra.gmra.mxu0 %vm859_vm2, %v1452_v56  ;;  %3515 = vmatpush3.bf16.msra.mxu1 %v3647_v54 }
 0x7e8   :  { %3482 = vmatprep.mubr.msk.bf16.mxu0 %vm4039_vm1, %v4038_v24 }
 0x7ea   :  { %v3774_v59 = vpop.eup %3773 }
 0x7eb   :  { %v1575_v32 = vmul.f32 %v3774_v59, %v4593_v35 }
 0x7ec   :  { %v1817_v38 = vpop.xlane.xlu1 %1816 }
 0x7f0   :  { %v1578_v18 = vpop.permute.xlu1 %1577 }
 0x7f1   :  { %3481 = vmatpush3.bf16.msra.mxu0 %v1578_v18 }
 0x7f2   :  { %3492 = vmatprep.subr.bf16.mxu0 %v4038_v24 }
 0x7fd   :  { %v1568_v0 = vpop.xlane.xlu0 %1567 }
 0x7fe   :  { %3775 = vrcp.f32 %v1568_v0 }
 0x7ff   :  { %3777 = vrcp.f32 %v1694_v25  ;;  %v3648_v25 = vld [vmem:[%s5050_s26] sm:$0xff]  }
 0x800   :  { %3779 = vrcp.f32 %v1691_v14  ;;  %3516 = vmatprep.subr.bf16.mxu1 %v3648_v25 }
 0x801   :  { %v1814_v37 = vpop.xlane.xlu0 %1813  ;;  %3517 = vmatpush3.bf16.msra.mxu1 %v3648_v25 }
 0x802   :  { %3781 = vrcp.f32 %v1814_v37 }
 0x803   :  { %3783 = vrcp.f32 %v1817_v38 }
 0x805   :  { %v1701_v4 = vpop.permute.xlu0 %1700 }
 0x809   :  { %v1824_v61 = vpop.permute.xlu0 %1823 }
 0x80b   :  { %v3776_v45 = vpop.eup %3775 }
 0x80c   :  { %v1574_v60 = vmul.f32 %v3776_v45, %v4620_v28  ;;  %v3778_v1 = vpop.eup %3777 }
 0x80d   :  { %v3780_v63 = vpop.eup %3779  ;;  %v1698_v13 = vmul.f32 %v3778_v1, %v4603_v57 }
 0x80e   :  { %v1576_v3 = vpack.c.bf16 %v1575_v32, %v1574_v60  ;;  %v1697_v29 = vmul.f32 %v3780_v63, %v4597_v23 }
 0x80f   :  { %v3782_v28 = vpop.eup %3781 }
 0x810   :  { %3483 = vmatmul.mubr.msk.bf16.vlgmr.msra.gmra.mxu0 %vm859_vm2, %v1576_v3  ;;  %v1699_v46 = vpack.c.bf16 %v1698_v13, %v1697_v29  ;;  %v3784_v35 = vpop.eup %3783  ;;  %v1820_v8 = vmul.f32 %v3782_v28, %v4624_v30 }
 0x811   :  { %3493 = vmatpush3.bf16.msra.mxu0 %v1701_v4  ;;  %3494 = vmatprep.mubr.msk.bf16.mxu0 %vm4039_vm1, %v4038_v24  ;;  %v1821_v48 = vmul.f32 %v3784_v35, %v4615_v5 }
 0x812   :  { %3504 = vmatprep.subr.bf16.mxu0 %v4038_v24 }
 0x813   :  { %v1822_v10 = vpack.c.bf16 %v1821_v48, %v1820_v8 }
 0x818   :  { %3495 = vmatmul.mubr.msk.bf16.vlgmr.msra.gmra.mxu0 %vm859_vm2, %v1699_v46 }
 0x819   :  { %3505 = vmatpush3.bf16.msra.mxu0 %v1824_v61  ;;  %3506 = vmatprep.mubr.msk.bf16.mxu0 %vm4039_vm1, %v4038_v24 }
 0x81f   :  { %v4671_v40 = vpop.f32.mrf.mxu0 }
 0x820   :  { %3507 = vmatmul.mubr.msk.bf16.vlgmr.msra.gmra.mxu0 %vm859_vm2, %v1822_v10 }
 0x821   :  { %v3424_v23 = vpop.f32.mrf.mxu0 }
 0x823   :  { %v4674_v57 = vpop.f32.mrf.mxu0 }
 0x825   :  { %v3425_v12 = vpop.f32.mrf.mxu0 }
 0x88f   :  { %v1096_v15 = vpop.f32.mrf.mxu0 }
 0x891   :  { %v3436_v21 = vpop.f32.mrf.mxu0 }
 0x893   :  { %v1099_v22 = vpop.f32.mrf.mxu0 }
 0x894   :  { %v3579_v55 = vpack.i.bf16 %v1099_v22, %v1096_v15 }
 0x895   :  { %v3437_v2 = vpop.f32.mrf.mxu0 }
 0x896   :  { %3580 = vrot.lane.b32.xlu0 %v3579_v55, %s4044_s6 }
 0x897   :  { %v1219_v34 = vpop.f32.mrf.mxu0 }
 0x899   :  { %v3448_v30 = vpop.f32.mrf.mxu0 }
 0x89b   :  { %v1222_v42 = vpop.f32.mrf.mxu0 }
 0x89c   :  { %v3584_v5 = vpack.i.bf16 %v1222_v42, %v1219_v34 }
 0x89d   :  { %v3449_v36 = vpop.f32.mrf.mxu0 }
 0x89e   :  { %3585 = vrot.lane.b32.xlu1 %v3584_v5, %s4045_s3 }
 0x89f   :  { %v1342_v39 = vpop.f32.mrf.mxu0 }
 0x8a1   :  { %v3460_v41 = vpop.f32.mrf.mxu0 }
 0x8a3   :  { %v1345_v43 = vpop.f32.mrf.mxu0 }
 0x8a4   :  { %v3589_v58 = vpack.i.bf16 %v1345_v43, %v1342_v39 }
 0x8a5   :  { %v3461_v62 = vpop.f32.mrf.mxu0 }
 0x8a6   :  { %3590 = vrot.lane.b32.xlu1 %v3589_v58, %s4043_s0 }
 0x8a7   :  { %v1493_v7 = vpop.f32.mrf.mxu0 }
 0x8a9   :  { %v3472_v44 = vpop.f32.mrf.mxu0 }
 0x8ab   :  { %v1496_v49 = vpop.f32.mrf.mxu0 }
 0x8ad   :  { %v3473_v50 = vpop.f32.mrf.mxu0 }
 0x8d0   :  { %v1617_v6 = vpop.f32.mrf.mxu0 }
 0x8d2   :  { %v3484_v51 = vpop.f32.mrf.mxu0 }
 0x8d4   :  { %v1620_v26 = vpop.f32.mrf.mxu0 }
 0x8d5   :  { %v3594_v14 = vpack.i.bf16 %v1620_v26, %v1617_v6 }
 0x8d6   :  { %v3485_v47 = vpop.f32.mrf.mxu0 }
 0x8d7   :  { %3595 = vrot.lane.b32.xlu0 %v3594_v14, %s4044_s6 }
 0x8d8   :  { %v1740_v52 = vpop.f32.mrf.mxu0 }
 0x8da   :  { %v3496_v56 = vpop.f32.mrf.mxu0 }
 0x8dc   :  { %v1743_v38 = vpop.f32.mrf.mxu0 }
 0x8dd   :  { %v3599_v18 = vpack.i.bf16 %v1743_v38, %v1740_v52 }
 0x8de   :  { %v3497_v0 = vpop.f32.mrf.mxu0 }
 0x8df   :  { %3600 = vrot.lane.b32.xlu0 %v3599_v18, %s4045_s3 }
 0x8e0   :  { %v1863_v37 = vpop.f32.mrf.mxu0 }
 0x8e2   :  { %v3508_v59 = vpop.f32.mrf.mxu0 }
 0x8e4   :  { %v1866_v45 = vpop.f32.mrf.mxu0 }
 0x8e5   :  { %v3604_v60 = vpack.i.bf16 %v1866_v45, %v1863_v37 }
 0x8e6   :  { %v3509_v32 = vpop.f32.mrf.mxu0 }
 0x8e7   :  { %3605 = vrot.lane.b32.xlu1 %v3604_v60, %s4043_s0 }
 0x908   :  { %v3581_v3 = vpop.permute.xlu0 %3580 }
 0x909   :  { %v3583_v4 = vunpack.i.h.bf16 %v3581_v3  ;;  %v3582_v63 = vunpack.i.l.bf16 %v3581_v3 }
 0x90b   :  { %v1374_v28 = vsel %vm859_vm2, %v4674_v57, %v3583_v4  ;;  %v1373_v61 = vsel %vm859_vm2, %v4671_v40, %v3582_v63 }
 0x910   :  { %v3586_v1 = vpop.permute.xlu1 %3585 }
 0x911   :  { %v3588_v13 = vunpack.i.h.bf16 %v3586_v1  ;;  %v3587_v29 = vunpack.i.l.bf16 %v3586_v1 }
 0x913   :  { %v1377_v48 = vsel %vm1375_vm3, %v1374_v28, %v3588_v13  ;;  %v1376_v10 = vsel %vm1375_vm3, %v1373_v61, %v3587_v29  ;;  %v3649_v29 = vld [vmem:[%s5009_s10 + $0x18] sm:$0xff]   ;;  %v3651_v28 = vld [vmem:[%s5009_s10 + $0x10] sm:$0xff]  }
 0x914   :  { %v3652_v61 = vld [vmem:[%s5011_s12 + $0x10] sm:$0xff]   ;;  %3522 = vmatprep.subr.bf16.mxu0 %v3649_v29 }
 0x915   :  { %3523 = vmatpush3.bf16.msra.mxu0 %v3649_v29 }
 0x916   :  { %3524 = vmatprep.subr.bf16.mxu0 %v3651_v28 }
 0x918   :  { %v3591_v46 = vpop.permute.xlu1 %3590 }
 0x919   :  { %v3593_v35 = vunpack.i.h.bf16 %v3591_v46  ;;  %v3592_v8 = vunpack.i.l.bf16 %v3591_v46  ;;  %v3650_v46 = vld [vmem:[%s5011_s12 + $0x18] sm:$0xff]   ;;  %3525 = vmatpush3.bf16.msra.mxu0 %v3651_v28 }
 0x91a   :  { %3534 = vmatprep.subr.bf16.mxu1 %v3650_v46 }
 0x91b   :  { %v1379_v23 = vsel %vm1378_vm4, %v1376_v10, %v3592_v8  ;;  %v1380_v12 = vsel %vm1378_vm4, %v1377_v48, %v3593_v35  ;;  %v3653_v35 = vld [vmem:[%s5009_s10 + $0x8] sm:$0xff]   ;;  %v3655_v48 = vld [vmem:[%s5009_s10] sm:$0xff]  }
 0x91c   :  { %v1900_v15 = vpack.c.bf16 %v1380_v12, %v1379_v23  ;;  %v3654_v8 = vld [vmem:[%s5011_s12 + $0x8] sm:$0xff]   ;;  %3526 = vmatprep.subr.bf16.mxu0 %v3653_v35  ;;  %v3656_v10 = vld [vmem:[%s5011_s12] sm:$0xff]  }
 0x91d   :  { %3527 = vmatpush3.bf16.msra.mxu0 %v3653_v35 }
 0x91e   :  { %3518 = vmatprep.mubr.msk.bf16.mxu1 %vm158_vm0, %v1900_v15  ;;  %3528 = vmatprep.subr.bf16.mxu0 %v3655_v48 }
 0x921   :  { %3529 = vmatpush3.bf16.msra.mxu0 %v3655_v48 }
 0x949   :  { %v3596_v21 = vpop.permute.xlu0 %3595 }
 0x94a   :  { %v3598_v55 = vunpack.i.h.bf16 %v3596_v21  ;;  %v3597_v57 = vunpack.i.l.bf16 %v3596_v21 }
 0x94c   :  { %v1895_v30 = vsel %vm859_vm2, %v1496_v49, %v3598_v55  ;;  %v1894_v42 = vsel %vm859_vm2, %v1493_v7, %v3597_v57 }
 0x951   :  { %v3601_v22 = vpop.permute.xlu0 %3600 }
 0x952   :  { %v3603_v2 = vunpack.i.h.bf16 %v3601_v22  ;;  %v3602_v34 = vunpack.i.l.bf16 %v3601_v22 }
 0x954   :  { %v1897_v39 = vsel %vm1375_vm3, %v1895_v30, %v3603_v2  ;;  %v1896_v41 = vsel %vm1375_vm3, %v1894_v42, %v3602_v34 }
 0x959   :  { %v3606_v40 = vpop.permute.xlu1 %3605 }
 0x95a   :  { %v3608_v5 = vunpack.i.h.bf16 %v3606_v40  ;;  %v3607_v36 = vunpack.i.l.bf16 %v3606_v40 }
 0x95c   :  { %v1899_v43 = vsel %vm1378_vm4, %v1897_v39, %v3608_v5  ;;  %v1898_v58 = vsel %vm1378_vm4, %v1896_v41, %v3607_v36 }
 0x95d   :  { %v1901_v62 = vpack.c.bf16 %v1899_v43, %v1898_v58 }
 0x95f   :  { %3519 = vmatmul.mubr.msk.bf16.vlgmr.msra.gmra.mxu1 %vm158_vm0, %v1901_v62 }
 0x960   :  { %3535 = vmatpush3.bf16.msra.mxu1 %v3650_v46  ;;  %v3183_v46 = vld [vmem:[#allocation11] ss:$0 sm:$0xff] }
 0x961   :  { %3536 = vmatprep.subr.bf16.mxu1 %v3652_v61 }
 0x964   :  { %3537 = vmatpush3.bf16.msra.mxu1 %v3652_v61 }
 0x965   :  { %3538 = vmatprep.subr.bf16.mxu1 %v3654_v8 }
 0x968   :  { %3539 = vmatpush3.bf16.msra.mxu1 %v3654_v8 }
 0x969   :  { %3540 = vmatprep.subr.bf16.mxu1 %v3656_v10 }
 0x96c   :  { %3541 = vmatpush3.bf16.msra.mxu1 %v3656_v10 }
 0xa1f   :  { %v3520_v44 = vpop.f32.mrf.mxu1 }
 0xa20   :  { %v4714_v7 = vadd.f32 %v3520_v44, %v4365_v27 }
 0xa21   :  { %v1974_v50 = vpop.f32.mrf.mxu1 }
 0xa22   :  { %v4711_v9 = vadd.f32 %v1974_v50, %v4355_v11  ;;  %v1995_v11 = vsel %vm158_vm0, %v4714_v7, 0.0 }
 0xa23   :  { %v3521_v49 = vpop.f32.mrf.mxu1 }
 0xa24   :  { %v1989_v6 = vsel %vm158_vm0, %v4711_v9, 0.0  ;;  %v4722_v26 = vadd.f32 %v3521_v49, %v4370_v31 }
 0xa25   :  { %v1977_v51 = vpop.f32.mrf.mxu1  ;;  %1990 = vadd.xlane.f32.xlu0 %v1989_v6  ;;  %v3657_v6 = vld [vmem:[#allocation12 + $0x18] sm:$0xff]  }
 0xa26   :  { %v4719_v53 = vadd.f32 %v1977_v51, %v4360_v20  ;;  %v1998_v27 = vsel %vm158_vm0, %v4722_v26, 0.0  ;;  %v3658_v51 = vld [vmem:[#allocation12 + $0x10] sm:$0xff]   ;;  %3546 = vmatprep.subr.bf16.mxu0 %v3657_v6 }
 0xa28   :  { %v1992_v54 = vsel %vm158_vm0, %v4719_v53, 0.0 }
 0xa29   :  { %1993 = vadd.xlane.f32.xlu1 %v1992_v54  ;;  %1996 = vadd.xlane.f32.xlu0 %v1995_v11  ;;  %v3659_v54 = vld [vmem:[#allocation12 + $0x8] sm:$0xff]   ;;  %v3660_v11 = vld [vmem:[#allocation12] sm:$0xff]  }
 0xa2d   :  { %1999 = vadd.xlane.f32.xlu0 %v1998_v27  ;;  %v3190_v27 = vld [vmem:[%s5012_s13] ss:$0 sm:$0xff] }
 0xaae   :  { %v1991_v14 = vpop.xlane.xlu0 %1990 }
 0xaaf   :  { %v2001_v47 = vmul.f32 0.015625, %v1991_v14 }
 0xab1   :  { %v4731_v20 = vsub.f32 %v4711_v9, %v2001_v47 }
 0xab2   :  { %v1994_v52 = vpop.xlane.xlu1 %1993  ;;  %v1997_v31 = vpop.xlane.xlu0 %1996 }
 0xab3   :  { %v2002_v56 = vmul.f32 0.015625, %v1994_v52  ;;  %v2003_v25 = vmul.f32 0.015625, %v1997_v31  ;;  %v2009_v38 = vmul.f32 %v4731_v20, %v4731_v20 }
 0xab5   :  { %v2006_v18 = vsub.f32 %v4719_v53, %v2002_v56  ;;  %v4737_v0 = vsub.f32 %v4714_v7, %v2003_v25  ;;  %v2013_v37 = vsel %vm158_vm0, %v2009_v38, 0.0 }
 0xab6   :  { %2014 = vadd.xlane.f32.xlu0 %v2013_v37  ;;  %v2000_v59 = vpop.xlane.xlu0 %1999 }
 0xab7   :  { %v2004_v45 = vmul.f32 0.015625, %v2000_v59  ;;  %v2010_v60 = vmul.f32 %v2006_v18, %v2006_v18  ;;  %v2011_v32 = vmul.f32 %v4737_v0, %v4737_v0 }
 0xab9   :  { %v2008_v3 = vsub.f32 %v4722_v26, %v2004_v45  ;;  %v2016_v1 = vsel %vm158_vm0, %v2010_v60, 0.0  ;;  %v2019_v4 = vsel %vm158_vm0, %v2011_v32, 0.0 }
 0xaba   :  { %2017 = vadd.xlane.f32.xlu1 %v2016_v1  ;;  %2020 = vadd.xlane.f32.xlu0 %v2019_v4 }
 0xabb   :  { %v2012_v63 = vmul.f32 %v2008_v3, %v2008_v3 }
 0xabd   :  { %v2022_v13 = vsel %vm158_vm0, %v2012_v63, 0.0 }
 0xabe   :  { %2023 = vadd.xlane.f32.xlu1 %v2022_v13 }
 0xb3f   :  { %v2015_v23 = vpop.xlane.xlu0 %2014 }
 0xb40   :  { %v2025_v12 = vmul.f32 0.015625, %v2015_v23 }
 0xb42   :  { %v2029_v15 = vadd.f32 1e-05, %v2025_v12 }
 0xb43   :  { %v2018_v21 = vpop.xlane.xlu1 %2017  ;;  %v2021_v22 = vpop.xlane.xlu0 %2020 }
 0xb44   :  { %v2026_v55 = vmul.f32 0.015625, %v2018_v21  ;;  %v2027_v57 = vmul.f32 0.015625, %v2021_v22  ;;  %3785 = vrsqrt.f32 %v2029_v15 }
 0xb46   :  { %v2030_v2 = vadd.f32 1e-05, %v2026_v55  ;;  %v2031_v34 = vadd.f32 1e-05, %v2027_v57 }
 0xb47   :  { %v2024_v40 = vpop.xlane.xlu1 %2023 }
 0xb48   :  { %3787 = vrsqrt.f32 %v2030_v2  ;;  %v2028_v30 = vmul.f32 0.015625, %v2024_v40  ;;  %v3202_v40 = vld [vmem:[%s5013_s14 + $0x1] ss:$0 sm:$0xff] }
 0xb49   :  { %3789 = vrsqrt.f32 %v2031_v34  ;;  %v3201_v34 = vld [vmem:[%s5013_s14] ss:$0 sm:$0xff] }
 0xb4a   :  { %v2032_v42 = vadd.f32 1e-05, %v2028_v30 }
 0xb4c   :  { %3791 = vrsqrt.f32 %v2032_v42 }
 0xb51   :  { %v3786_v5 = vpop.eup %3785 }
 0xb52   :  { %v2037_v39 = vmul.f32 %v3786_v5, %v4731_v20 }
 0xb55   :  { %v3788_v36 = vpop.eup %3787 }
 0xb56   :  { %v2038_v41 = vmul.f32 %v3788_v36, %v2006_v18  ;;  %v3790_v43 = vpop.eup %3789 }
 0xb57   :  { %v2039_v44 = vmul.f32 %v3790_v43, %v4737_v0 }
 0xb58   :  { %v2041_v58 = vpack.c.bf16 %v2038_v41, %v2037_v39  ;;  %v3203_v39 = vld [vmem:[%s5013_s14 + $0x2] ss:$0 sm:$0xff] }
 0xb59   :  { %v3792_v62 = vpop.eup %3791 }
 0xb5a   :  { %3530 = vmatprep.mubr.msk.bf16.mxu0 %vm158_vm0, %v2041_v58  ;;  %3542 = vmatprep.mubr.msk.bf16.mxu1 %vm158_vm0, %v2041_v58  ;;  %v2040_v50 = vmul.f32 %v3792_v62, %v2008_v3 }
 0xb5c   :  { %v2042_v49 = vpack.c.bf16 %v2040_v50, %v2039_v44 }
 0xb5e   :  { %3531 = vmatmul.mubr.msk.bf16.vlgmr.msra.gmra.mxu0 %vm158_vm0, %v2042_v49  ;;  %3543 = vmatmul.mubr.msk.bf16.vlgmr.msra.gmra.mxu1 %vm158_vm0, %v2042_v49 }
 0xb5f   :  { %2705 = vmatprep.mubr.bf16.mxu1 %v4037_v33  ;;  %3547 = vmatpush3.bf16.msra.mxu0 %v3657_v6 }
 0xb60   :  { %3548 = vmatprep.subr.bf16.mxu0 %v3658_v51 }
 0xb63   :  { %3549 = vmatpush3.bf16.msra.mxu0 %v3658_v51 }
 0xb64   :  { %3550 = vmatprep.subr.bf16.mxu0 %v3659_v54 }
 0xb67   :  { %3551 = vmatpush3.bf16.msra.mxu0 %v3659_v54  ;;  %v3204_v54 = vld [vmem:[%s5013_s14 + $0x3] ss:$0 sm:$0xff] }
 0xb68   :  { %3552 = vmatprep.subr.bf16.mxu0 %v3660_v11 }
 0xb6b   :  { %3553 = vmatpush3.bf16.msra.mxu0 %v3660_v11 }
 0xc1e   :  { %v3544_v14 = vpop.f32.mrf.mxu1  ;;  %v3532_v63 = vpop.f32.mrf.mxu0 }
 0xc1f   :  { %v2219_v47 = vadd.f32 %v3544_v14, %v3190_v27  ;;  %v2131_v61 = vadd.f32 %v3532_v63, %v3183_v46  ;;  %v3206_v63 = vld [vmem:[%s5013_s14 + $0x5] ss:$0 sm:$0xff] }
 0xc20   :  { %v2210_v20 = vpop.f32.mrf.mxu1  ;;  %v2122_v29 = vpop.f32.mrf.mxu0 }
 0xc21   :  { %v3199_v24 = vmul.f32 -1.442695, %v2219_v47  ;;  %v2211_v52 = vadd.f32 %v3190_v27, %v2210_v20  ;;  %v2123_v48 = vadd.f32 %v3183_v46, %v2122_v29  ;;  %v3205_v20 = vld [vmem:[%s5013_s14 + $0x4] ss:$0 sm:$0xff] }
 0xc22   :  { %v3545_v31 = vpop.f32.mrf.mxu1  ;;  %v3533_v28 = vpop.f32.mrf.mxu0 }
 0xc23   :  { %3793 = vpow2.f32 %v3199_v24  ;;  %v3197_v56 = vmul.f32 -1.442695, %v2211_v52  ;;  %v2222_v25 = vadd.f32 %v3545_v31, %v3190_v27  ;;  %v2134_v15 = vadd.f32 %v3533_v28, %v3183_v46 }
 0xc24   :  { %v2213_v38 = vpop.f32.mrf.mxu1  ;;  %v2125_v23 = vpop.f32.mrf.mxu0 }
 0xc25   :  { %3795 = vpow2.f32 %v3197_v56  ;;  %v3200_v18 = vmul.f32 -1.442695, %v2222_v25  ;;  %v2214_v0 = vadd.f32 %v3190_v27, %v2213_v38  ;;  %v2126_v55 = vadd.f32 %v3183_v46, %v2125_v23 }
 0xc27   :  { %3797 = vpow2.f32 %v3200_v18  ;;  %v3198_v37 = vmul.f32 -1.442695, %v2214_v0 }
 0xc29   :  { %3799 = vpow2.f32 %v3198_v37 }
 0xc30   :  { %v3794_v59 = vpop.eup %3793 }
 0xc31   :  { %v2239_v45 = vadd.f32 1.0, %v3794_v59 }
 0xc32   :  { %v3796_v60 = vpop.eup %3795 }
 0xc33   :  { %3801 = vrcp.f32 %v2239_v45  ;;  %v2237_v32 = vadd.f32 1.0, %v3796_v60 }
 0xc34   :  { %v3798_v3 = vpop.eup %3797 }
 0xc35   :  { %3803 = vrcp.f32 %v2237_v32  ;;  %v2240_v1 = vadd.f32 1.0, %v3798_v3 }
 0xc36   :  { %v3800_v4 = vpop.eup %3799 }
 0xc37   :  { %3805 = vrcp.f32 %v2240_v1  ;;  %v2238_v13 = vadd.f32 1.0, %v3800_v4 }
 0xc39   :  { %3807 = vrcp.f32 %v2238_v13 }
 0xc40   :  { %v3802_v35 = vpop.eup %3801 }
 0xc41   :  { %v2251_v8 = vmul.f32 %v3802_v35, %v2131_v61 }
 0xc42   :  { %v3804_v10 = vpop.eup %3803 }
 0xc43   :  { %2261 = vst.msk [vmem:[#allocation2 + $0x1c] sm:$0xff] %vm158_vm0, %v2251_v8  ;;  %v2249_v12 = vmul.f32 %v3804_v10, %v2123_v48 }
 0xc44   :  { %v3806_v21 = vpop.eup %3805 }
 0xc45   :  { %2256 = vst.msk [vmem:[#allocation2 + $0x4] sm:$0xff] %vm158_vm0, %v2249_v12  ;;  %v2252_v22 = vmul.f32 %v3806_v21, %v2134_v15  ;;  %v3207_v15 = vld [vmem:[%s5013_s14 + $0x6] ss:$0 sm:$0xff] }
 0xc46   :  { %v3808_v57 = vpop.eup %3807 }
 0xc47   :  { %2262 = vst.msk [vmem:[#allocation2 + $0x24] sm:$0xff] %vm158_vm0, %v2252_v22  ;;  %v2250_v2 = vmul.f32 %v3808_v57, %v2126_v55 }
 0xc49   :  { %2257 = vst.msk [vmem:[#allocation2 + $0xc] sm:$0xff] %vm158_vm0, %v2250_v2 }
 0xc4a   :  { %v2274_v30 = vld [vmem:[#allocation2 + $0x18] sm:$0xff] }
 0xc4b   :  { %v2291_v42 = vld [vmem:[#allocation2 + $0x19] sm:$0xff]  ;;  %v2276_v5 = vmul.f32 %v3201_v34, %v2274_v30 }
 0xc4c   :  { %v2293_v36 = vmul.f32 %v3202_v40, %v2291_v42  ;;  %v2308_v41 = vld [vmem:[#allocation2 + $0x1a] sm:$0xff]  ;;  %v2298_v62 = vld [vmem:[#allocation2 + $0x2] sm:$0xff] }
 0xc4d   :  { %v2264_v43 = vld [vmem:[#allocation2] sm:$0xff]  ;;  %v2310_v51 = vmul.f32 %v3203_v39, %v2308_v41  ;;  %v2304_v47 = vmul.f32 %v3203_v39, %v2298_v62 }
 0xc4e   :  { %v2281_v58 = vld [vmem:[#allocation2 + $0x1] sm:$0xff]  ;;  %v2270_v44 = vmul.f32 %v3201_v34, %v2264_v43  ;;  %v2295_v49 = vadd.f32 %v2293_v36, %v2276_v5 }
 0xc4f   :  { %v2287_v50 = vmul.f32 %v3202_v40, %v2281_v58  ;;  %v2315_v6 = vld [vmem:[#allocation2 + $0x3] sm:$0xff]  ;;  %v2325_v52 = vld [vmem:[#allocation2 + $0x1b] sm:$0xff] }
 0xc50   :  { %v4800_v11 = vld [vmem:[#allocation2 + $0x20] sm:$0xff]  ;;  %v2265_v56 = vld [vmem:[#allocation2 + $0x8] sm:$0xff]  ;;  %v2312_v18 = vadd.f32 %v2310_v51, %v2295_v49  ;;  %v2321_v0 = vmul.f32 %v3204_v54, %v2315_v6  ;;  %v2327_v29 = vmul.f32 %v3204_v54, %v2325_v52 }
 0xc51   :  { %v2292_v27 = vld [vmem:[#allocation2 + $0x21] sm:$0xff]  ;;  %v2289_v14 = vadd.f32 %v2287_v50, %v2270_v44  ;;  %v2282_v25 = vld [vmem:[#allocation2 + $0x9] sm:$0xff]  ;;  %v2277_v37 = vmul.f32 %v3201_v34, %v4800_v11  ;;  %v2271_v59 = vmul.f32 %v3201_v34, %v2265_v56 }
 0xc52   :  { %v2332_v24 = vld [vmem:[#allocation2 + $0x4] sm:$0xff]  ;;  %v2342_v31 = vld [vmem:[#allocation2 + $0x1c] sm:$0xff]  ;;  %v2288_v45 = vmul.f32 %v3202_v40, %v2282_v25  ;;  %v2294_v1 = vmul.f32 %v3202_v40, %v2292_v27  ;;  %v2333_v35 = vld [vmem:[#allocation2 + $0xc] sm:$0xff]  ;;  %v2329_v42 = vadd.f32 %v2327_v29, %v2312_v18 }
 0xc53   :  { %v2299_v38 = vld [vmem:[#allocation2 + $0xa] sm:$0xff]  ;;  %v2306_v60 = vadd.f32 %v2304_v47, %v2289_v14  ;;  %v2309_v4 = vld [vmem:[#allocation2 + $0x22] sm:$0xff]  ;;  %v2338_v8 = vmul.f32 %v3205_v20, %v2332_v24  ;;  %v2344_v55 = vmul.f32 %v3205_v20, %v2342_v31  ;;  %v2339_v36 = vmul.f32 %v3205_v20, %v2333_v35 }
 0xc54   :  { %v2316_v32 = vld [vmem:[#allocation2 + $0xb] sm:$0xff]  ;;  %v2326_v13 = vld [vmem:[#allocation2 + $0x23] sm:$0xff]  ;;  %v2290_v46 = vadd.f32 %v2288_v45, %v2271_v59  ;;  %v2305_v28 = vmul.f32 %v3203_v39, %v2299_v38  ;;  %v2311_v21 = vmul.f32 %v3203_v39, %v2309_v4  ;;  %v2296_v30 = vadd.f32 %v2294_v1, %v2277_v37 }
 0xc55   :  { %v2349_v3 = vld [vmem:[#allocation2 + $0x5] sm:$0xff]  ;;  %v2323_v61 = vadd.f32 %v2321_v0, %v2306_v60  ;;  %v2359_v10 = vld [vmem:[#allocation2 + $0x1d] sm:$0xff]  ;;  %v2322_v23 = vmul.f32 %v3204_v54, %v2316_v32  ;;  %v2350_v34 = vld [vmem:[#allocation2 + $0xd] sm:$0xff]  ;;  %v2328_v58 = vmul.f32 %v3204_v54, %v2326_v13  ;;  %v2346_v6 = vadd.f32 %v2344_v55, %v2329_v42 }
 0xc56   :  { %v2366_v48 = vld [vmem:[#allocation2 + $0x6] sm:$0xff]  ;;  %v2355_v12 = vmul.f32 %v3206_v63, %v2349_v3  ;;  %v2307_v57 = vadd.f32 %v2305_v28, %v2290_v46  ;;  %v2376_v5 = vld [vmem:[#allocation2 + $0x1e] sm:$0xff]  ;;  %v2361_v62 = vmul.f32 %v3206_v63, %v2359_v10  ;;  %v2367_v39 = vld [vmem:[#allocation2 + $0xe] sm:$0xff]  ;;  %v2313_v49 = vadd.f32 %v2311_v21, %v2296_v30 }
 0xc57   :  { %v2343_v22 = vld [vmem:[#allocation2 + $0x24] sm:$0xff]  ;;  %v2340_v2 = vadd.f32 %v2338_v8, %v2323_v61  ;;  %v2372_v41 = vmul.f32 %v3207_v15, %v2366_v48  ;;  %v2356_v14 = vmul.f32 %v3206_v63, %v2350_v34  ;;  %v2378_v52 = vmul.f32 %v3207_v15, %v2376_v5  ;;  %v2384_v38 = vld [vmem:[#allocation2 + $0xf] sm:$0xff] }
 0xc58   :  { %v2383_v40 = vld [vmem:[#allocation2 + $0x7] sm:$0xff]  ;;  %v2324_v44 = vadd.f32 %v2322_v23, %v2307_v57  ;;  %v2393_v27 = vld [vmem:[#allocation2 + $0x1f] sm:$0xff]  ;;  %v2345_v24 = vmul.f32 %v3205_v20, %v2343_v22  ;;  %v2330_v54 = vadd.f32 %v2328_v58, %v2313_v49  ;;  %v2363_v0 = vadd.f32 %v2361_v62, %v2346_v6  ;;  %v2400_v4 = vld [vmem:[#allocation2 + $0x10] sm:$0xff] }
 0xc59   :  { %v3208_v43 = vld [vmem:[%s5013_s14 + $0x7] ss:$0 sm:$0xff]  ;;  %v2357_v50 = vadd.f32 %v2355_v12, %v2340_v2  ;;  %v3209_v18 = vld [vmem:[%s5013_s14 + $0x8] ss:$0 sm:$0xff]  ;;  %v2373_v59 = vmul.f32 %v3207_v15, %v2367_v39 }
 0xc5a   :  { %v2360_v51 = vld [vmem:[#allocation2 + $0x25] sm:$0xff]  ;;  %v2389_v47 = vmul.f32 %v3208_v43, %v2383_v40  ;;  %v2341_v31 = vadd.f32 %v2339_v36, %v2324_v44  ;;  %v2405_v45 = vmul.f32 %v3209_v18, %v2265_v56  ;;  %v2395_v32 = vmul.f32 %v3208_v43, %v2393_v27  ;;  %v3210_v56 = vld [vmem:[%s5014_s15] ss:$0 sm:$0xff] }
 0xc5b   :  { %v2374_v25 = vadd.f32 %v2372_v41, %v2357_v50  ;;  %v2377_v37 = vld [vmem:[#allocation2 + $0x26] sm:$0xff]  ;;  %v2362_v60 = vmul.f32 %v3206_v63, %v2360_v51  ;;  %v2347_v13 = vadd.f32 %v2345_v24, %v2330_v54  ;;  %v2380_v20 = vadd.f32 %v2378_v52, %v2363_v0 }
 0xc5c   :  { %v2358_v3 = vadd.f32 %v2356_v14, %v2341_v31  ;;  %v2394_v29 = vld [vmem:[#allocation2 + $0x27] sm:$0xff]  ;;  %v2390_v46 = vmul.f32 %v3208_v43, %v2384_v38  ;;  %v2379_v28 = vmul.f32 %v3207_v15, %v2377_v37  ;;  %v2410_v61 = vmul.f32 %v3209_v18, %v4800_v11  ;;  %v3215_v37 = vld [vmem:[%s5016_s17] ss:$0 sm:$0xff] }
 0xc5d   :  { %v2391_v1 = vadd.f32 %v2389_v47, %v2374_v25  ;;  %v2364_v48 = vadd.f32 %v2362_v60, %v2347_v13  ;;  %v2397_v10 = vadd.f32 %v2395_v32, %v2380_v20  ;;  %v2409_v23 = vld [vmem:[#allocation2 + $0x28] sm:$0xff]  ;;  %v2406_v12 = vmul.f32 %v3209_v18, %v2400_v4 }
 0xc5e   :  { %v2375_v35 = vadd.f32 %v2373_v59, %v2358_v3  ;;  %v2396_v63 = vmul.f32 %v3208_v43, %v2394_v29  ;;  %v2411_v2 = vmul.f32 %v3209_v18, %v2409_v23 }
 0xc5f   :  { %v2407_v8 = vadd.f32 %v2405_v45, %v2391_v1  ;;  %v2381_v55 = vadd.f32 %v2379_v28, %v2364_v48  ;;  %v2412_v57 = vadd.f32 %v2410_v61, %v2397_v10 }
 0xc60   :  { %v2392_v21 = vadd.f32 %v2390_v46, %v2375_v35 }
 0xc61   :  { %v2421_v22 = vadd.f32 %v3210_v56, %v2407_v8  ;;  %v2398_v40 = vadd.f32 %v2396_v63, %v2381_v55  ;;  %v2423_v11 = vadd.f32 %v3210_v56, %v2412_v57 }
 0xc62   :  { %v2408_v34 = vadd.f32 %v2406_v12, %v2392_v21 }
 0xc63   :  { %v3211_v15 = vmul.f32 -1.442695, %v2421_v22  ;;  %v2413_v42 = vadd.f32 %v2411_v2, %v2398_v40  ;;  %v3213_v5 = vmul.f32 -1.442695, %v2423_v11 }
 0xc64   :  { %v2422_v30 = vadd.f32 %v3210_v56, %v2408_v34 }
 0xc65   :  { %3809 = vpow2.f32 %v3211_v15  ;;  %v2424_v41 = vadd.f32 %v3210_v56, %v2413_v42  ;;  %v3661_v42 = vld [vmem:[%s5017_s18 + $0x30] ss:$8 sps:$4 sm:$0xff]  }
 0xc66   :  { %v3212_v36 = vmul.f32 -1.442695, %v2422_v30  ;;  %3811 = vpow2.f32 %v3213_v5  ;;  %v3663_v5 = vld [vmem:[%s5017_s18 + $0x34] ss:$8 sps:$4 sm:$0xff]  }
 0xc67   :  { %v3214_v58 = vmul.f32 -1.442695, %v2424_v41  ;;  %2681 = vmatprep.subr.bf16.mxu1 %v3663_v5 }
 0xc68   :  { %3813 = vpow2.f32 %v3212_v36  ;;  %v3666_v36 = vld [vmem:[%s5017_s18 + $0x24] ss:$8 sps:$4 sm:$0xff]   ;;  %2682 = vmatpush1.bf16.msra.mxu1 %v3661_v42 }
 0xc69   :  { %3815 = vpow2.f32 %v3214_v58  ;;  %2683 = vmatprep.subr.bf16.mxu1 %v3666_v36  ;;  %v3669_v58 = vld [vmem:[%s5017_s18 + $0x14] ss:$8 sps:$4 sm:$0xff]  }
 0xc72   :  { %v3810_v43 = vpop.eup %3809 }
 0xc73   :  { %v2437_v62 = vadd.f32 1.0, %v3810_v43  ;;  %v3812_v44 = vpop.eup %3811  ;;  %v3667_v43 = vld [vmem:[%s5017_s18 + $0x10] ss:$8 sps:$4 sm:$0xff]  }
 0xc74   :  { %v2439_v50 = vadd.f32 1.0, %v3812_v44  ;;  %v3670_v44 = vld [vmem:[%s5017_s18] ss:$8 sps:$4 sm:$0xff]  }
 0xc75   :  { %v3814_v39 = vpop.eup %3813  ;;  %3817 = vrcp.f32 %v2437_v62  ;;  %v3672_v62 = vld [vmem:[%s5017_s18 + $0x4] ss:$8 sps:$4 sm:$0xff]  }
 0xc76   :  { %v2438_v49 = vadd.f32 1.0, %v3814_v39  ;;  %v3816_v6 = vpop.eup %3815  ;;  %3819 = vrcp.f32 %v2439_v50 }
 0xc77   :  { %v2440_v51 = vadd.f32 1.0, %v3816_v6 }
 0xc78   :  { %3821 = vrcp.f32 %v2438_v49 }
 0xc79   :  { %3823 = vrcp.f32 %v2440_v51 }
 0xc82   :  { %v3818_v27 = vpop.eup %3817 }
 0xc83   :  { %v3820_v14 = vpop.eup %3819  ;;  %v2449_v24 = vmul.f32 %v3818_v27, %v2421_v22 }
 0xc84   :  { %v2451_v38 = vmul.f32 %v3820_v14, %v2423_v11 }
 0xc85   :  { %v3822_v47 = vpop.eup %3821 }
 0xc86   :  { %v2450_v52 = vmul.f32 %v3822_v47, %v2422_v30  ;;  %v3824_v31 = vpop.eup %3823 }
 0xc87   :  { %v2452_v18 = vmul.f32 %v3824_v31, %v2424_v41  ;;  %v3664_v41 = vld [vmem:[%s5017_s18 + $0x20] ss:$8 sps:$4 sm:$0xff]  }
 0xc88   :  { %v2453_v25 = vpack.c.bf16 %v2450_v52, %v2449_v24  ;;  %2684 = vmatpush1.bf16.msra.mxu1 %v3664_v41 }
 0xc89   :  { %v2454_v54 = vpack.c.bf16 %v2452_v18, %v2451_v38  ;;  %2685 = vmatprep.subr.bf16.mxu1 %v3669_v58 }
 0xc8a   :  { %3554 = vmatprep.mubr.msk.bf16.mxu0 %vm158_vm0, %v2453_v25 }
 0xc8b   :  { %3555 = vmatmul.mubr.msk.bf16.vlgmr.msra.gmra.mxu0 %vm158_vm0, %v2454_v54 }
 0xc8c   :  { %2686 = vmatpush1.bf16.msra.mxu1 %v3667_v43 }
 0xc8d   :  { %2687 = vmatprep.subr.bf16.mxu1 %v3672_v62 }
 0xc90   :  { %2688 = vmatpush1.bf16.msra.mxu1 %v3670_v44 }
 0xd4b   :  { %v3556_v0 = vpop.f32.mrf.mxu0 }
 0xd4c   :  { %v2543_v45 = vadd.f32 %v3556_v0, %v3215_v37 }
 0xd4d   :  { %v2534_v59 = vpop.f32.mrf.mxu0 }
 0xd4e   :  { %v2535_v60 = vadd.f32 %v3215_v37, %v2534_v59  ;;  %v4831_v4 = vadd.f32 %v2543_v45, %v4714_v7 }
 0xd4f   :  { %v3557_v32 = vpop.f32.mrf.mxu0 }
 0xd50   :  { %v4828_v3 = vadd.f32 %v2535_v60, %v4711_v9  ;;  %v2546_v13 = vadd.f32 %v3557_v32, %v3215_v37  ;;  %v2559_v61 = vsel %vm158_vm0, %v4831_v4, 0.0 }
 0xd51   :  { %v2537_v1 = vpop.f32.mrf.mxu0 }
 0xd52   :  { %v2538_v20 = vadd.f32 %v3215_v37, %v2537_v1  ;;  %v2553_v29 = vsel %vm158_vm0, %v4828_v3, 0.0  ;;  %v4839_v28 = vadd.f32 %v2546_v13, %v4722_v26  ;;  %v3673_v13 = vld [vmem:[%s5019_s20 + $0x78] sm:$0xff]  }
 0xd53   :  { %2554 = vadd.xlane.f32.xlu0 %v2553_v29  ;;  %3362 = vmatprep.subr.bf16.mxu0 %v3673_v13  ;;  %v3675_v29 = vld [vmem:[%s5019_s20 + $0x70] sm:$0xff]  }
 0xd54   :  { %v4836_v46 = vadd.f32 %v2538_v20, %v4719_v53  ;;  %v2562_v7 = vsel %vm158_vm0, %v4839_v28, 0.0  ;;  %v3674_v20 = vld [vmem:[%s5019_s20 + $0x38] sm:$0xff]  }
 0xd55   :  { %3363 = vmatpush3.bf16.msra.mxu0 %v3674_v20 }
 0xd56   :  { %v2556_v9 = vsel %vm158_vm0, %v4836_v46, 0.0  ;;  %3364 = vmatprep.subr.bf16.mxu0 %v3675_v29 }
 0xd57   :  { %2557 = vadd.xlane.f32.xlu1 %v2556_v9  ;;  %2560 = vadd.xlane.f32.xlu0 %v2559_v61  ;;  %v3677_v9 = vld [vmem:[%s5019_s20 + $0x68] sm:$0xff]  }
 0xd58   :  { %v3678_v61 = vld [vmem:[%s5019_s20 + $0x28] sm:$0xff]  }
 0xd5b   :  { %2563 = vadd.xlane.f32.xlu1 %v2562_v7  ;;  %v3679_v7 = vld [vmem:[%s5019_s20 + $0x60] sm:$0xff]  }
 0xddc   :  { %v2555_v35 = vpop.xlane.xlu0 %2554 }
 0xddd   :  { %v2565_v8 = vmul.f32 0.015625, %v2555_v35  ;;  %v3680_v35 = vld [vmem:[%s5019_s20 + $0x20] sm:$0xff]  }
 0xddf   :  { %v2569_v53 = vsub.f32 %v4828_v3, %v2565_v8  ;;  %v3681_v8 = vld [vmem:[%s5019_s20 + $0x58] sm:$0xff]  }
 0xde0   :  { %v2558_v48 = vpop.xlane.xlu1 %2557  ;;  %v2561_v10 = vpop.xlane.xlu0 %2560 }
 0xde1   :  { %v2566_v26 = vmul.f32 0.015625, %v2558_v48  ;;  %v2567_v23 = vmul.f32 0.015625, %v2561_v10  ;;  %v2573_v12 = vmul.f32 %v2569_v53, %v2569_v53  ;;  %v3683_v48 = vld [vmem:[%s5019_s20 + $0x50] sm:$0xff]  }
 0xde2   :  { %v3684_v10 = vld [vmem:[%s5019_s20 + $0x10] sm:$0xff]  }
 0xde3   :  { %v2570_v56 = vsub.f32 %v4836_v46, %v2566_v26  ;;  %v2571_v63 = vsub.f32 %v4831_v4, %v2567_v23  ;;  %v2577_v21 = vsel %vm158_vm0, %v2573_v12, 0.0  ;;  %v3685_v26 = vld [vmem:[%s5019_s20 + $0x48] sm:$0xff]   ;;  %v3687_v12 = vld [vmem:[%s5019_s20 + $0x40] sm:$0xff]  }
 0xde4   :  { %v2564_v22 = vpop.xlane.xlu1 %2563  ;;  %2578 = vadd.xlane.f32.xlu0 %v2577_v21  ;;  %v3686_v23 = vld [vmem:[%s5019_s20 + $0x8] sm:$0xff]  }
 0xde5   :  { %v2568_v55 = vmul.f32 0.015625, %v2564_v22  ;;  %v2574_v57 = vmul.f32 %v2570_v56, %v2570_v56  ;;  %v2575_v2 = vmul.f32 %v2571_v63, %v2571_v63 }
 0xde7   :  { %v2572_v34 = vsub.f32 %v4839_v28, %v2568_v55  ;;  %v2580_v15 = vsel %vm158_vm0, %v2574_v57, 0.0  ;;  %v2583_v40 = vsel %vm158_vm0, %v2575_v2, 0.0 }
 0xde8   :  { %2581 = vadd.xlane.f32.xlu1 %v2580_v15  ;;  %2584 = vadd.xlane.f32.xlu0 %v2583_v40 }
 0xde9   :  { %v2576_v11 = vmul.f32 %v2572_v34, %v2572_v34 }
 0xdeb   :  { %v2586_v30 = vsel %vm158_vm0, %v2576_v11, 0.0 }
 0xdec   :  { %2587 = vadd.xlane.f32.xlu1 %v2586_v30 }
 0xe6d   :  { %v2579_v50 = vpop.xlane.xlu0 %2578 }
 0xe6e   :  { %v2589_v39 = vmul.f32 0.015625, %v2579_v50 }
 0xe70   :  { %v2593_v49 = vadd.f32 1e-05, %v2589_v39 }
 0xe71   :  { %v2582_v6 = vpop.xlane.xlu1 %2581  ;;  %v2585_v51 = vpop.xlane.xlu0 %2584 }
 0xe72   :  { %v2590_v27 = vmul.f32 0.015625, %v2582_v6  ;;  %3825 = vrsqrt.f32 %v2593_v49  ;;  %v2591_v47 = vmul.f32 0.015625, %v2585_v51 }
 0xe74   :  { %v2594_v14 = vadd.f32 1e-05, %v2590_v27  ;;  %v2595_v31 = vadd.f32 1e-05, %v2591_v47 }
 0xe75   :  { %v2588_v24 = vpop.xlane.xlu1 %2587 }
 0xe76   :  { %3827 = vrsqrt.f32 %v2594_v14  ;;  %v2592_v52 = vmul.f32 0.015625, %v2588_v24 }
 0xe78   :  { %v2596_v25 = vadd.f32 1e-05, %v2592_v52 }
 0xe7a   :  { %3829 = vrsqrt.f32 %v2596_v25 }
 0xe7b   :  { %3831 = vrsqrt.f32 %v2595_v31 }
 0xe7f   :  { %v3826_v38 = vpop.eup %3825 }
 0xe80   :  { %v2601_v54 = vmul.f32 %v3826_v38, %v2569_v53  ;;  %v3682_v53 = vld [vmem:[%s5019_s20 + $0x18] sm:$0xff]  }
 0xe83   :  { %v3828_v18 = vpop.eup %3827 }
 0xe84   :  { %v2602_v0 = vmul.f32 %v3828_v18, %v2570_v56  ;;  %v3688_v56 = vld [vmem:[%s5019_s20] sm:$0xff]  }
 0xe86   :  { %v2605_v37 = vpack.c.bf16 %v2602_v0, %v2601_v54 }
 0xe87   :  { %v3830_v59 = vpop.eup %3829 }
 0xe88   :  { %3230 = vmatmul.mubr.msk.bf16.vlgmr.msra.gmra.mxu1 %vm158_vm0, %v2605_v37  ;;  %v3832_v45 = vpop.eup %3831  ;;  %v2604_v60 = vmul.f32 %v3830_v59, %v2572_v34 }
 0xe89   :  { %2715 = vmatprep.mubr.bf16.mxu1 %v4037_v33  ;;  %v2603_v32 = vmul.f32 %v3832_v45, %v2571_v63  ;;  %v3676_v33 = vld [vmem:[%s5019_s20 + $0x30] sm:$0xff]   ;;  %v2615_v63 = vld [vmem:[%s5018_s19] sm:$0x3] }
 0xe8a   :  { %3365 = vmatpush3.bf16.msra.mxu0 %v3676_v33  ;;  %v2620_v21 = vrot.slane %v2615_v63, %v226_v17  ;;  %v2624_v22 = vrot.slane %v2615_v63, %v230_v19 }
 0xe8b   :  { %v2606_v1 = vpack.c.bf16 %v2604_v60, %v2603_v32  ;;  %3366 = vmatprep.subr.bf16.mxu0 %v3677_v9 }
 0xe8e   :  { %3367 = vmatpush3.bf16.msra.mxu0 %v3678_v61 }
 0xe8f   :  { %3368 = vmatprep.subr.bf16.mxu0 %v3679_v7 }
 0xe90   :  { %3231 = vmatmul.mubr.msk.bf16.gmra.mxu1 %vm158_vm0, %v2606_v1 }
 0xe92   :  { %3369 = vmatpush3.bf16.msra.mxu0 %v3680_v35 }
 0xe93   :  { %3370 = vmatprep.subr.bf16.mxu0 %v3681_v8 }
 0xe96   :  { %3371 = vmatpush3.bf16.msra.mxu0 %v3682_v53 }
 0xe97   :  { %3372 = vmatprep.subr.bf16.mxu0 %v3683_v48 }
 0xe9a   :  { %3373 = vmatpush3.bf16.msra.mxu0 %v3684_v10 }
 0xe9b   :  { %3374 = vmatprep.subr.bf16.mxu0 %v3685_v26 }
 0xe9e   :  { %3375 = vmatpush3.bf16.msra.mxu0 %v3686_v23 }
 0xe9f   :  { %3376 = vmatprep.subr.bf16.mxu0 %v3687_v12 }
 0xea2   :  { %3377 = vmatpush3.bf16.msra.mxu0 %v3688_v56 }
 0xf48   :  { %v2707_v55 = vpop.f32.mrf.mxu1 }
 0xf49   :  { %v4937_v57 = vadd.f32 %v2707_v55, %v2620_v21 }
 0xf4a   :  { %v2709_v2 = vpop.f32.mrf.mxu1 }
 0xf4b   :  { %v2734_v34 = vmul.f32 0.044715, %v4937_v57  ;;  %v4940_v15 = vadd.f32 %v2709_v2, %v2624_v22 }
 0xf4c   :  { %v2711_v40 = vpop.f32.mrf.mxu1 }
 0xf4d   :  { %v2742_v11 = vmul.f32 %v2734_v34, %v4937_v57  ;;  %v2735_v30 = vmul.f32 0.044715, %v4940_v15  ;;  %v2712_v42 = vadd.f32 %v2711_v40, %v2620_v21 }
 0xf4e   :  { %v2713_v5 = vpop.f32.mrf.mxu1 }
 0xf4f   :  { %v2750_v17 = vmul.f32 %v2742_v11, %v4937_v57  ;;  %v2743_v16 = vmul.f32 %v2735_v30, %v4940_v15  ;;  %v2736_v19 = vmul.f32 0.044715, %v2712_v42  ;;  %v2714_v36 = vadd.f32 %v2713_v5, %v2624_v22 }
 0xf50   :  { %v2717_v41 = vpop.f32.mrf.mxu1  ;;  %v2728_v34 = vmul.f32 0.5, %v2712_v42  ;;  %v2727_v11 = vmul.f32 0.5, %v4940_v15 }
 0xf51   :  { %v2758_v58 = vadd.f32 %v2750_v17, %v4937_v57  ;;  %v2751_v43 = vmul.f32 %v2743_v16, %v4940_v15  ;;  %v2744_v62 = vmul.f32 %v2736_v19, %v2712_v42  ;;  %v2737_v44 = vmul.f32 0.044715, %v2714_v36 }
 0xf52   :  { %v4948_v50 = vadd.f32 %v2717_v41, %v2620_v21  ;;  %v2719_v39 = vpop.f32.mrf.mxu1  ;;  %v2729_v30 = vmul.f32 0.5, %v2714_v36  ;;  %v2726_v17 = vmul.f32 0.5, %v4937_v57 }
 0xf53   :  { %v2766_v49 = vmul.f32 0.7978846, %v2758_v58  ;;  %v2752_v6 = vmul.f32 %v2744_v62, %v2712_v42  ;;  %v2745_v51 = vmul.f32 %v2737_v44, %v2714_v36  ;;  %v4950_v27 = vadd.f32 %v2719_v39, %v2624_v22 }
 0xf54   :  { %v2738_v14 = vmul.f32 0.044715, %v4948_v50  ;;  %v2721_v47 = vpop.f32.mrf.mxu1  ;;  %v2759_v24 = vadd.f32 %v2751_v43, %v4940_v15 }
 0xf55   :  { %v2760_v52 = vadd.f32 %v2752_v6, %v2712_v42  ;;  %v2753_v31 = vmul.f32 %v2745_v51, %v2714_v36  ;;  %v2739_v25 = vmul.f32 0.044715, %v4950_v27  ;;  %3833 = vtanh.f32 %v2766_v49 }
 0xf56   :  { %v2746_v38 = vmul.f32 %v2738_v14, %v4948_v50  ;;  %v2722_v18 = vadd.f32 %v2721_v47, %v2620_v21  ;;  %v2723_v54 = vpop.f32.mrf.mxu1  ;;  %v2767_v0 = vmul.f32 0.7978846, %v2759_v24  ;;  %v2730_v24 = vmul.f32 0.5, %v4948_v50 }
 0xf57   :  { %v2768_v37 = vmul.f32 0.7978846, %v2760_v52  ;;  %v2747_v59 = vmul.f32 %v2739_v25, %v4950_v27  ;;  %v2724_v45 = vadd.f32 %v2723_v54, %v2624_v22  ;;  %v2761_v60 = vadd.f32 %v2753_v31, %v2714_v36 }
 0xf58   :  { %v2754_v32 = vmul.f32 %v2746_v38, %v4948_v50  ;;  %v2740_v1 = vmul.f32 0.044715, %v2722_v18  ;;  %3835 = vtanh.f32 %v2767_v0  ;;  %v2732_v42 = vmul.f32 0.5, %v2722_v18 }
 0xf59   :  { %3837 = vtanh.f32 %v2768_v37  ;;  %v2755_v13 = vmul.f32 %v2747_v59, %v4950_v27  ;;  %v2741_v20 = vmul.f32 0.044715, %v2724_v45  ;;  %v2769_v29 = vmul.f32 0.7978846, %v2761_v60 }
 0xf5a   :  { %v2748_v33 = vmul.f32 %v2740_v1, %v2722_v18  ;;  %v2762_v9 = vadd.f32 %v2754_v32, %v4948_v50  ;;  %v2731_v36 = vmul.f32 0.5, %v4950_v27  ;;  %v2733_v47 = vmul.f32 0.5, %v2724_v45 }
 0xf5b   :  { %v2749_v61 = vmul.f32 %v2741_v20, %v2724_v45  ;;  %3839 = vtanh.f32 %v2769_v29  ;;  %v2763_v7 = vadd.f32 %v2755_v13, %v4950_v27  ;;  %v3232_v27 = vld [vmem:[%s5020_s21] ss:$0 sm:$0xff] }
 0xf5c   :  { %v2756_v35 = vmul.f32 %v2748_v33, %v2722_v18  ;;  %v2770_v8 = vmul.f32 0.7978846, %v2762_v9 }
 0xf5d   :  { %v2757_v53 = vmul.f32 %v2749_v61, %v2724_v45  ;;  %v2771_v48 = vmul.f32 0.7978846, %v2763_v7 }
 0xf5e   :  { %v2764_v10 = vadd.f32 %v2756_v35, %v2722_v18 }
 0xf5f   :  { %v2765_v26 = vadd.f32 %v2757_v53, %v2724_v45  ;;  %3841 = vtanh.f32 %v2771_v48 }
 0xf60   :  { %v2772_v23 = vmul.f32 0.7978846, %v2764_v10  ;;  %3843 = vtanh.f32 %v2770_v8 }
 0xf61   :  { %v2773_v12 = vmul.f32 0.7978846, %v2765_v26 }
 0xf62   :  { %3845 = vtanh.f32 %v2772_v23  ;;  %v3834_v56 = vpop.eup %3833 }
 0xf63   :  { %3847 = vtanh.f32 %v2773_v12  ;;  %v2782_v40 = vadd.f32 1.0, %v3834_v56 }
 0xf65   :  { %v3836_v63 = vpop.eup %3835  ;;  %v2790_v43 = vmul.f32 %v2782_v40, %v2726_v17 }
 0xf66   :  { %v3838_v21 = vpop.eup %3837  ;;  %v2783_v22 = vadd.f32 1.0, %v3836_v63 }
 0xf67   :  { %v2784_v55 = vadd.f32 1.0, %v3838_v21 }
 0xf68   :  { %v3840_v2 = vpop.eup %3839  ;;  %v2791_v19 = vmul.f32 %v2783_v22, %v2727_v11 }
 0xf69   :  { %v2785_v5 = vadd.f32 1.0, %v3840_v2  ;;  %v2792_v16 = vmul.f32 %v2784_v55, %v2728_v34 }
 0xf6b   :  { %v2793_v41 = vmul.f32 %v2785_v5, %v2729_v30  ;;  %v2798_v39 = vpack.c.bf16 %v2792_v16, %v2790_v43 }
 0xf6c   :  { %v3842_v58 = vpop.eup %3841 }
 0xf6d   :  { %v3844_v62 = vpop.eup %3843  ;;  %v2799_v44 = vpack.c.bf16 %v2793_v41, %v2791_v19  ;;  %v2787_v6 = vadd.f32 1.0, %v3842_v58 }
 0xf6e   :  { %v2786_v14 = vadd.f32 1.0, %v3844_v62 }
 0xf6f   :  { %v3846_v49 = vpop.eup %3845  ;;  %2969 = vmatprep.mubr.bf16.mxu0 %v2799_v44  ;;  %v2795_v31 = vmul.f32 %v2787_v6, %v2731_v36 }
 0xf70   :  { %v3848_v51 = vpop.eup %3847  ;;  %2970 = vmatmul.mubr.bf16.vlgmr.msra.gmra.mxu0 %v2798_v39  ;;  %v2788_v15 = vadd.f32 1.0, %v3846_v49  ;;  %v2794_v38 = vmul.f32 %v2786_v14, %v2730_v24 }
 0xf71   :  { %v2789_v57 = vadd.f32 1.0, %v3848_v51 }
 0xf72   :  { %v2796_v52 = vmul.f32 %v2788_v15, %v2732_v42 }
 0xf73   :  { %v2797_v25 = vmul.f32 %v2789_v57, %v2733_v47 }
 0xf74   :  { %v2800_v0 = vpack.c.bf16 %v2796_v52, %v2794_v38 }
 0xf75   :  { %v2801_v54 = vpack.c.bf16 %v2797_v25, %v2795_v31 }
 0xf77   :  { %2977 = vmatprep.mubr.bf16.mxu0 %v2801_v54  ;;  %v3249_v54 = vld [vmem:[%s5021_s22] ss:$0 sm:$0xff] }
 0xf78   :  { %2978 = vmatmul.mubr.bf16.gmra.mxu0 %v2800_v0 }
0x1030   :  { %v3378_v37 = vpop.f32.mrf.mxu0 }
0x1032   :  { %v3379_v59 = vpop.f32.mrf.mxu0 }
0x1033   :  { %v3380_v32 = vadd.f32 %v3379_v59, %v3378_v37  ;;  %v3250_v37 = vld [vmem:[%s5022_s23] ss:$0 sm:$0xff] }
0x1034   :  { %v3381_v60 = vpop.f32.mrf.mxu0 }
0x1035   :  { %v2972_v50 = vadd.f32 %v3380_v32, %v3232_v27 }
0x1036   :  { %v3382_v18 = vpop.f32.mrf.mxu0 }
0x1037   :  { %v3383_v13 = vadd.f32 %v3382_v18, %v3381_v60  ;;  %v2986_v61 = vmul.f32 0.5, %v2972_v50 }
0x1038   :  { %v3384_v45 = vpop.f32.mrf.mxu0 }
0x1039   :  { %v2975_v7 = vadd.f32 %v3383_v13, %v3232_v27  ;;  %v2990_v12 = vadd.f32 %v2986_v61, %v4828_v3 }
0x103a   :  { %v3385_v1 = vpop.f32.mrf.mxu0 }
0x103b   :  { %v3386_v20 = vadd.f32 %v3385_v1, %v3384_v45  ;;  %v2987_v10 = vmul.f32 0.5, %v2975_v7  ;;  %v2994_v21 = vsel %vm158_vm0, %v2990_v12, 0.0 }
0x103c   :  { %v3387_v29 = vpop.f32.mrf.mxu0 }
0x103d   :  { %v2980_v33 = vadd.f32 %v3386_v20, %v3232_v27  ;;  %v2991_v22 = vadd.f32 %v2987_v10, %v4836_v46 }
0x103e   :  { %v3388_v9 = vpop.f32.mrf.mxu0 }
0x103f   :  { %v2988_v35 = vmul.f32 0.5, %v2980_v33  ;;  %v3389_v8 = vadd.f32 %v3388_v9, %v3387_v29  ;;  %v2997_v55 = vsel %vm158_vm0, %v2991_v22, 0.0 }
0x1041   :  { %v2983_v53 = vadd.f32 %v3389_v8, %v3232_v27  ;;  %v2992_v48 = vadd.f32 %v2988_v35, %v4831_v4 }
0x1043   :  { %v2989_v26 = vmul.f32 0.5, %v2983_v53  ;;  %v3000_v23 = vsel %vm158_vm0, %v2992_v48, 0.0 }
0x1044   :  { %3001 = vadd.xlane.f32.xlu0 %v3000_v23 }
0x1045   :  { %v2993_v56 = vadd.f32 %v2989_v26, %v4839_v28 }
0x1047   :  { %v3003_v63 = vsel %vm158_vm0, %v2993_v56, 0.0 }
0x1048   :  { %3004 = vadd.xlane.f32.xlu1 %v3003_v63  ;;  %2995 = vadd.xlane.f32.xlu0 %v2994_v21 }
0x104c   :  { %2998 = vadd.xlane.f32.xlu1 %v2997_v55 }
0x10cd   :  { %v3002_v4 = vpop.xlane.xlu0 %3001 }
0x10ce   :  { %v3008_v2 = vmul.f32 0.015625, %v3002_v4 }
0x10d0   :  { %v3012_v34 = vsub.f32 %v2992_v48, %v3008_v2 }
0x10d1   :  { %v3005_v40 = vpop.xlane.xlu1 %3004  ;;  %v2996_v11 = vpop.xlane.xlu0 %2995 }
0x10d2   :  { %v3009_v3 = vmul.f32 0.015625, %v3005_v40  ;;  %v3006_v30 = vmul.f32 0.015625, %v2996_v11  ;;  %v3016_v5 = vmul.f32 %v3012_v34, %v3012_v34 }
0x10d4   :  { %v3013_v28 = vsub.f32 %v2993_v56, %v3009_v3  ;;  %v3010_v17 = vsub.f32 %v2990_v12, %v3006_v30  ;;  %v3024_v16 = vsel %vm158_vm0, %v3016_v5, 0.0 }
0x10d5   :  { %v2999_v19 = vpop.xlane.xlu1 %2998  ;;  %3025 = vadd.xlane.f32.xlu0 %v3024_v16 }
0x10d6   :  { %v3007_v46 = vmul.f32 0.015625, %v2999_v19  ;;  %v3017_v41 = vmul.f32 %v3013_v28, %v3013_v28  ;;  %v3014_v58 = vmul.f32 %v3010_v17, %v3010_v17 }
0x10d8   :  { %v3011_v43 = vsub.f32 %v2991_v22, %v3007_v46  ;;  %v3027_v62 = vsel %vm158_vm0, %v3017_v41, 0.0  ;;  %v3018_v44 = vsel %vm158_vm0, %v3014_v58, 0.0 }
0x10d9   :  { %3028 = vadd.xlane.f32.xlu1 %v3027_v62  ;;  %3019 = vadd.xlane.f32.xlu0 %v3018_v44 }
0x10da   :  { %v3015_v39 = vmul.f32 %v3011_v43, %v3011_v43 }
0x10dc   :  { %v3021_v49 = vsel %vm158_vm0, %v3015_v39, 0.0 }
0x10dd   :  { %3022 = vadd.xlane.f32.xlu1 %v3021_v49 }
0x115e   :  { %v3026_v6 = vpop.xlane.xlu0 %3025 }
0x115f   :  { %v3032_v51 = vmul.f32 0.015625, %v3026_v6 }
0x1161   :  { %v3036_v42 = vadd.f32 1e-05, %v3032_v51 }
0x1162   :  { %v3029_v14 = vpop.xlane.xlu1 %3028  ;;  %v3020_v15 = vpop.xlane.xlu0 %3019 }
0x1163   :  { %3849 = vrsqrt.f32 %v3036_v42  ;;  %v3033_v36 = vmul.f32 0.015625, %v3029_v14  ;;  %v3030_v47 = vmul.f32 0.015625, %v3020_v15 }
0x1165   :  { %v3037_v57 = vadd.f32 1e-05, %v3033_v36  ;;  %v3034_v24 = vadd.f32 1e-05, %v3030_v47 }
0x1166   :  { %v3023_v52 = vpop.xlane.xlu1 %3022 }
0x1167   :  { %3851 = vrsqrt.f32 %v3037_v57  ;;  %v3031_v31 = vmul.f32 0.015625, %v3023_v52 }
0x1168   :  { %3853 = vrsqrt.f32 %v3034_v24 }
0x1169   :  { %v3035_v25 = vadd.f32 1e-05, %v3031_v31 }
0x116b   :  { %3855 = vrsqrt.f32 %v3035_v25 }
0x1170   :  { %v3850_v38 = vpop.eup %3849 }
0x1171   :  { %v3044_v0 = vmul.f32 %v3850_v38, %v3012_v34 }
0x1173   :  { %v3055_v59 = vmul.f32 %v3249_v54, %v3044_v0 }
0x1174   :  { %v3852_v60 = vpop.eup %3851 }
0x1175   :  { %3988 = shalt.err (!%p3985_p6)
}
0x1176   :  { %3103 = dma.vmem_to_hbm [thread:$0]  %s3098_s11, 256, %s5024_s25, [#allocation16], %s4035_s7, %s4035_s7, %s4036_s8   ;;  %v3854_v18 = vpop.eup %3853  ;;  %v3066_v32 = vadd.f32 %v3250_v37, %v3055_v59  ;;  %v3045_v27 = vmul.f32 %v3852_v60, %v3013_v28 }
0x1177   :  { %v3042_v45 = vmul.f32 %v3854_v18, %v3010_v17  ;;  %s4047_s23 = smov [#allocation14]  }
0x1178   :  { %3070 = vrot.lane.b32.xlu0 %v3066_v32, %s4035_s7  ;;  %v3056_v1 = vmul.f32 %v3249_v54, %v3045_v27  ;;  %v3856_v50 = vpop.eup %3855  ;;  %s3085_s25 = sshll.u32 %s4047_s23, 4  ;;  %s3086_s25 = int_to_ptr.vmem [resolvable:$true] %s3085_s25 }
0x1179   :  { %v3053_v13 = vmul.f32 %v3249_v54, %v3042_v45  ;;  %v3043_v29 = vmul.f32 %v3856_v50, %v3011_v43  ;;  %s3997_s8 = scalar_lea.vmem %s3086_s25, 256  ;;  %p4002_p8 = scmp.lt.s32.totalorder %s3086_s25, %s3086_s25 }
0x117a   :  { %v3067_v20 = vadd.f32 %v3250_v37, %v3056_v1  ;;  %p3998_p7 = scmp.ne.s32.totalorder %s3086_s25, %s3997_s8  ;;  %p4003_p9 = scmp.lt.s32.totalorder %s3997_s8, %s3997_s8 }
0x117b   :  { %v3064_v33 = vadd.f32 %v3250_v37, %v3053_v13  ;;  %v3054_v9 = vmul.f32 %v3249_v54, %v3043_v29 }
0x117c   :  { %3072 = vrot.lane.b32.xlu1 %v3067_v20, %s4035_s7  ;;  %p4004_p10 = por %p4003_p9, %p4002_p8 }
0x117d   :  { %v3065_v61 = vadd.f32 %v3250_v37, %v3054_v9 }
0x117e   :  { %p4005_p11 = pnand %p4004_p10, %p3998_p7 }
0x11ea   :  { %v3071_v7 = vpop.permute.xlu0 %3070 }
0x11eb   :  { %v3076_v35 = vsel %vm158_vm0, %v3064_v33, %v3071_v7 }
0x11ec   :  { %3078 = vst [vmem:[#allocation14] sm:$0xff] %v3076_v35 }
0x11ee   :  { %v3073_v8 = vpop.permute.xlu1 %3072 }
0x11ef   :  { %v3077_v53 = vsel %vm158_vm0, %v3065_v61, %v3073_v8 }
0x11f0   :  { %3079 = vst [vmem:[#allocation14 + $0x8] sm:$0xff] %v3077_v53 }
0x11f1   :  { %4008 = shalt.err (!%p4005_p11)
}
0x11f2   :  { %s4048_s7 = smov 128   ;;  %s4049_s9 = smov 8  }
0x11f3   :  { %3091 = dma.vmem_to_hbm [thread:$0]  %s3086_s25, 256, %s5023_s24, [#allocation5], %s4048_s7, %s4048_s7, %s4049_s9  }
0x11f4   :  { %4025 = dma.done.wait [#allocation5], 256  }
0x11f5   :  { %4026 = vsyncadd [#allocation5], 4294967040 }
0x11f6   :  { %4027 = dma.done.wait [#allocation16], 256  }
0x11f7   :  { %4028 = vsyncadd [#allocation16], 4294967040 }
0x11f8   :  { %3110 = vsyncpa [#allocation4], 1 }
0x11f9   :  { %3111 = vsyncpa [#allocation7], 1 }
0x11fa   :  { %3112 = vsyncpa [#allocation10], 1 }
0x11fb   :  { %3113 = vsyncpa [#allocation13], 1 }
0x11fc   :  { %3114 = vsyncpa [#allocation5], 1 }
0x11fd   :  { %3115 = vsyncpa [#allocation16], 1 }

</bundles_post_ra>
